<compile_context>
chip_gen: v6e
topology: v6e:2x2x1
jax: 0.10.0
libtpu: 0.0.40
codegen_flags: <defaults>
</compile_context>

<pallas_src>
import functools

import jax
import jax.numpy as jnp
from jax.experimental import pallas as pl
from jax.experimental.pallas import tpu as pltpu


LANE = 128


def _round_up(x, m):
    return (x + m - 1) // m * m


# ------------------------------ Pallas kernel -------------------------------


def down_block_kernel(cols1_ref, masks_ref, w1_ref, wr1_ref, wr2_ref, wab_ref,
                      vecs_ref, o_ref, *, Ho, Wo, C, num_groups, eps):
    HW = Ho * Wo
    Cp = o_ref.shape[-1]                 # padded (lane-dense) channel count
    cg = C // num_groups                 # real channels per group

    # (HW, 1) W-edge masks, precomputed in the wrapper; broadcast across lanes.
    lmask = masks_ref[:, 0:1].astype(jnp.bfloat16)   # a dw = -1 neighbour exists
    rmask = masks_ref[:, 1:2].astype(jnp.bfloat16)   # a dw = +1 neighbour exists

    zpad = _round_up(Wo + 1, 8)          # vreg-aligned zero border for row shifts

    def conv3x3(x_b, w_taps_ref, bias_row):
        """3x3 / stride-1 / pad-1 conv on the flat (HW, Cp) bf16 activation:
        9 shifted bf16 matmuls accumulated in f32 (no im2col, no HBM)."""
        zeros = jnp.zeros((zpad, Cp), jnp.bfloat16)
        xz = jnp.concatenate([zeros, x_b, zeros], axis=0)      # bf16, built once
        acc = jnp.zeros((HW, Cp), jnp.float32)
        tap = 0
        for dh in (-1, 0, 1):
            for dw in (-1, 0, 1):
                d = dh * Wo + dw
                shifted = xz[zpad + d: zpad + d + HW, :]       # rows r+d, 0-filled
                if dw == -1:                                   # mask W wrap-around
                    shifted = shifted * lmask
                elif dw == 1:
                    shifted = shifted * rmask
                acc = acc + jnp.dot(shifted, w_taps_ref[tap],
                                    preferred_element_type=jnp.float32)
                tap += 1
        return acc + bias_row

    ch = jax.lax.broadcasted_iota(jnp.int32, (1, Cp), 1)       # channel index
    inv_n = 1.0 / float(HW * cg)

    def group_combine(per_channel):
        # Combine per-channel sums into per-group means on tiny (1, Cp) vectors.
        out = jnp.zeros((1, Cp), jnp.float32)
        for g in range(num_groups):                            # static, tiny
            m = (ch >= g * cg) & (ch < (g + 1) * cg)
            val = jnp.sum(jnp.where(m, per_channel, 0.0), keepdims=True) * inv_n
            out = jnp.where(m, val, out)
        return out

    def gn_silu(y, gamma_row, beta_row):
        # Two-pass GroupNorm: mean first, then variance of the centred values
        # (y - mean is needed for normalization anyway -> no extra full pass).
        mean = group_combine(jnp.sum(y, axis=0, keepdims=True))
        yc = y - mean
        var = group_combine(jnp.sum(yc * yc, axis=0, keepdims=True))
        yn = yc * jax.lax.rsqrt(var + eps) * gamma_row + beta_row
        # SiLU with exp + reciprocal on the EUP slot (VALU relief).
        return yn * pl.reciprocal(1.0 + jnp.exp(-yn), approx=True)

    # ---- conv1: 3x3 stride-2 (patches pre-extracted) ------------------------
    out1 = (jnp.dot(cols1_ref[0], w1_ref[...],
                    preferred_element_type=jnp.float32) + vecs_ref[0:1])
    out1_b = out1.astype(jnp.bfloat16)       # single bf16 copy, reused twice

    # ---- residual block (everything stays resident in VMEM) -----------------
    h_b = gn_silu(conv3x3(out1_b, wr1_ref, vecs_ref[1:2]),
                  vecs_ref[2:3], vecs_ref[3:4]).astype(jnp.bfloat16)
    res_b = gn_silu(conv3x3(h_b, wr2_ref, vecs_ref[4:5]),
                    vecs_ref[5:6], vecs_ref[6:7]).astype(jnp.bfloat16)

    # ---- fused channel-concat + 1x1 conv_adjust (single K=2*Cp matmul) -------
    cat = jnp.concatenate([out1_b, res_b], axis=1)             # (HW, 2*Cp) bf16
    y = (jnp.dot(cat, wab_ref[...], preferred_element_type=jnp.float32)
         + vecs_ref[7:8])
    o_ref[0] = y.astype(o_ref.dtype)                           # lane-dense bf16 store


# ------------------------------- JAX wrapper ---------------------------------


def prepare_params(p):
    """One-time parameter re-layout (outside the per-call path):
    OIHW conv weights -> channel-padded bf16 matmul operands, plus one packed
    (8, Cp) f32 tensor holding [b1, br1, g1, be1, br2, g2, be2, badj]."""
    Cout, Cin = p["w1"].shape[0], p["w1"].shape[1]
    K1 = 9 * Cin
    K1p = _round_up(K1, LANE)
    Cp = _round_up(Cout, LANE)

    def padmat(a, rows, cols):
        return jnp.pad(a, ((0, rows - a.shape[0]), (0, cols - a.shape[1])))

    def vec(b):
        return jnp.pad(b, (0, Cp - b.shape[0])).astype(jnp.float32)

    def taps(w):  # (Cout, Cin', 3, 3) -> (9, Cp, Cp) bf16, tap = kh*3 + kw
        c_out, c_in = w.shape[0], w.shape[1]
        t = jnp.transpose(w, (2, 3, 1, 0)).reshape(9, c_in, c_out)
        return jnp.pad(t, ((0, 0), (0, Cp - c_in), (0, Cp - c_out))).astype(jnp.bfloat16)

    w1m = jnp.transpose(p["w1"], (2, 3, 1, 0)).reshape(K1, Cout)
    wadjT = jnp.transpose(p["wadj"][:, :, 0, 0], (1, 0))       # (2*Cout, Cout)
    wa = padmat(wadjT[:Cout], Cp, Cp)                          # applies to out1
    wb = padmat(wadjT[Cout:], Cp, Cp)                          # applies to res

    vecs = jnp.stack([vec(p["b1"]), vec(p["br1"]), vec(p["g1"]), vec(p["be1"]),
                      vec(p["br2"]), vec(p["g2"]), vec(p["be2"]), vec(p["badj"])],
                     axis=0)                                   # (8, Cp) f32

    prep = {
        "Cin": Cin, "Cout": Cout, "Cp": Cp, "K1p": K1p,
        "w1": padmat(w1m, K1p, Cp).astype(jnp.bfloat16),
        "wr1": taps(p["wr1"]), "wr2": taps(p["wr2"]),
        "wab": jnp.concatenate([wa, wb], axis=0).astype(jnp.bfloat16),
        "vecs": vecs,
    }
    # Padded-lane invariant: every bias/gamma/beta/weight lane beyond the real
    # channel count must be ZERO so the sliced-off output lanes stay exactly 0
    # (a future "pad gamma with ones" change would silently leak garbage).
    assert bool(jnp.all(vecs[:, Cout:] == 0.0))
    return prep


def _im2col_stride2(x_nhwc, K1p):
    """3x3 / stride-2 / pad-1 patch extraction for conv1 (thin wrapper glue;
    the stride-1 convs form their patches inside the kernel)."""
    N, H, W, Cin = x_nhwc.shape
    Ho = (H - 1) // 2 + 1
    Wo = (W - 1) // 2 + 1
    xp = jnp.pad(x_nhwc, ((0, 0), (1, 1), (1, 1), (0, 0)))
    cols = []
    for kh in range(3):
        for kw in range(3):
            cols.append(xp[:, kh:kh + 2 * Ho:2, kw:kw + 2 * Wo:2, :])
    col = jnp.stack(cols, axis=3).reshape(N, Ho * Wo, 9 * Cin)
    col = jnp.pad(col, ((0, 0), (0, 0), (0, K1p - 9 * Cin)))
    return col.astype(jnp.bfloat16), Ho, Wo


def _edge_masks(Ho, Wo):
    """(HW, 2) f32 masks: col>=1 (left neighbour exists), col<=Wo-2 (right)."""
    col = jnp.tile(jnp.arange(Wo, dtype=jnp.int32), Ho)
    return jnp.stack([col >= 1, col <= Wo - 2], axis=1).astype(jnp.float32)


def _pick_vmem_limit_bytes():
    """~3/4 of physical VMEM (96 MiB on v5e/v6e, 48 MiB on v7x), 48 MiB fallback."""
    try:
        cap = pltpu.get_tpu_info().vmem_capacity_bytes
        if cap:
            return int(min(cap * 3 // 4, 100 * 1024 * 1024))
    except Exception:
        pass
    return 48 * 1024 * 1024


def down_block_pallas(x_nchw, prep):
    N, Cin, H, W = x_nchw.shape
    assert Cin == prep["Cin"]
    Cout, Cp, K1p = prep["Cout"], prep["Cp"], prep["K1p"]

    x = jnp.transpose(x_nchw, (0, 2, 3, 1)).astype(jnp.float32)   # NHWC
    cols1, Ho, Wo = _im2col_stride2(x, K1p)
    HW = Ho * Wo
    masks = _edge_masks(Ho, Wo)

    kern = functools.partial(down_block_kernel, Ho=Ho, Wo=Wo, C=Cout,
                             num_groups=2, eps=1e-5)

    out = pl.pallas_call(
        kern,
        out_shape=jax.ShapeDtypeStruct((N, HW, Cp), jnp.bfloat16),
        grid=(N,),
        in_specs=[
            pl.BlockSpec((1, HW, K1p), lambda n: (n, 0, 0)),   # conv1 patches
            pl.BlockSpec((HW, 2), lambda n: (0, 0)),           # W-edge masks
            pl.BlockSpec((K1p, Cp), lambda n: (0, 0)),         # w1
            pl.BlockSpec((9, Cp, Cp), lambda n: (0, 0, 0)),    # wr1 taps
            pl.BlockSpec((9, Cp, Cp), lambda n: (0, 0, 0)),    # wr2 taps
            pl.BlockSpec((2 * Cp, Cp), lambda n: (0, 0)),      # [Wa; Wb] stacked
            pl.BlockSpec((8, Cp), lambda n: (0, 0)),           # packed biases/γ/β
        ],
        out_specs=pl.BlockSpec((1, HW, Cp), lambda n: (n, 0, 0)),
        compiler_params=pltpu.CompilerParams(
            dimension_semantics=("parallel",),
            vmem_limit_bytes=_pick_vmem_limit_bytes()),
    )(cols1, masks, prep["w1"], prep["wr1"], prep["wr2"], prep["wab"], prep["vecs"])

    y = out[:, :, :Cout].astype(jnp.float32).reshape(N, Ho, Wo, Cout)
    return jnp.transpose(y, (0, 3, 1, 2))                      # back to NCHW


# --------------------------- pure-JAX reference ------------------------------


def _conv_ref(x, w, b, stride, pad):
    return jax.lax.conv_general_dilated(
        x, w, window_strides=(stride, stride),
        padding=[(pad, pad), (pad, pad)],
        dimension_numbers=("NCHW", "OIHW", "NCHW"),
        precision=jax.lax.Precision.HIGHEST,
    ) + b[None, :, None, None]


def _gn_ref(x, num_groups, gamma, beta, eps=1e-5):
    N, C, H, W = x.shape
    xg = x.reshape(N, num_groups, C // num_groups, H, W)
    mu = xg.mean(axis=(2, 3, 4), keepdims=True)
    var = xg.var(axis=(2, 3, 4), keepdims=True)
    xn = ((xg - mu) / jnp.sqrt(var + eps)).reshape(N, C, H, W)
    return xn * gamma[None, :, None, None] + beta[None, :, None, None]


def _silu(x):
    return x * jax.nn.sigmoid(x)


def down_block_ref(x, p):
    out = _conv_ref(x, p["w1"], p["b1"], 2, 1)
    h = _silu(_gn_ref(_conv_ref(out, p["wr1"], p["br1"], 1, 1), 2, p["g1"], p["be1"]))
    res = _silu(_gn_ref(_conv_ref(h, p["wr2"], p["br2"], 1, 1), 2, p["g2"], p["be2"]))
    cat = jnp.concatenate([out, res], axis=1)
    return _conv_ref(cat, p["wadj"], p["badj"], 1, 0)


# ---------------------------------- main -------------------------------------


if __name__ == "__main__":
    key = jax.random.PRNGKey(0)
    N, Cin, H, W = 2, 4, 16, 16
    Cout = 8

    ks = jax.random.split(key, 16)

    def rnd(k, shape, fan_in):
        return jax.random.normal(k, shape, jnp.float32) / jnp.sqrt(float(fan_in))

    params = {
        "w1": rnd(ks[0], (Cout, Cin, 3, 3), Cin * 9),
        "b1": rnd(ks[1], (Cout,), Cin * 9),
        "wr1": rnd(ks[2], (Cout, Cout, 3, 3), Cout * 9),
        "br1": rnd(ks[3], (Cout,), Cout * 9),
        "g1": 1.0 + 0.1 * jax.random.normal(ks[4], (Cout,), jnp.float32),
        "be1": 0.1 * jax.random.normal(ks[5], (Cout,), jnp.float32),
        "wr2": rnd(ks[6], (Cout, Cout, 3, 3), Cout * 9),
        "br2": rnd(ks[7], (Cout,), Cout * 9),
        "g2": 1.0 + 0.1 * jax.random.normal(ks[8], (Cout,), jnp.float32),
        "be2": 0.1 * jax.random.normal(ks[9], (Cout,), jnp.float32),
        "wadj": rnd(ks[10], (Cout, 2 * Cout, 1, 1), 2 * Cout),
        "badj": rnd(ks[11], (Cout,), 2 * Cout),
    }

    x = jax.random.normal(ks[12], (N, Cin, H, W), jnp.float32)

    prep = prepare_params(params)                     # one-time weight re-layout
    forward = jax.jit(lambda xx: down_block_pallas(xx, prep))

    out = jax.block_until_ready(forward(x))
    ref = jax.block_until_ready(down_block_ref(x, params))

    assert out.shape == (N, Cout, H // 2, W // 2), out.shape
    # bf16 MXU inputs (f32 accumulation, f32 two-pass GroupNorm stats), approx-EUP
    # sigmoid and bf16 output writeback -> bf16-level tolerance vs. the f32
    # HIGHEST-precision reference.
    assert jnp.allclose(out, ref, atol=3e-2, rtol=3e-2), (
        float(jnp.max(jnp.abs(out - ref)))
    )
    print("KERNEL_OK")
</pallas_src>

<mosaic_0001>
module attributes {stable_mosaic.version = 11 : i64} {
  func.func @down_block_kernel(%arg0: i32, %arg1: memref<1x64x128xbf16, #tpu.memory_space<vmem>>, %arg2: memref<64x2xf32, #tpu.memory_space<vmem>>, %arg3: memref<128x128xbf16, #tpu.memory_space<vmem>>, %arg4: memref<9x128x128xbf16, #tpu.memory_space<vmem>>, %arg5: memref<9x128x128xbf16, #tpu.memory_space<vmem>>, %arg6: memref<256x128xbf16, #tpu.memory_space<vmem>>, %arg7: memref<8x128xf32, #tpu.memory_space<vmem>>, %arg8: memref<1x64x128xbf16, #tpu.memory_space<vmem>>) attributes {dimension_semantics = [#tpu.dimension_semantics<parallel>], iteration_bounds = array<i64: 2>, scalar_prefetch = 0 : i64, scratch_operands = 0 : i64, tpu.core_type = #tpu.core_type<tc>, window_params = [{transform_indices = @transform_0, window_bounds = array<i64: 1, 64, 128>}, {pipeline_mode = #tpu.pipeline_mode<synchronous>, transform_indices = @transform_1, window_bounds = array<i64: 64, 2>}, {pipeline_mode = #tpu.pipeline_mode<synchronous>, transform_indices = @transform_2, window_bounds = array<i64: 128, 128>}, {pipeline_mode = #tpu.pipeline_mode<synchronous>, transform_indices = @transform_3, window_bounds = array<i64: 9, 128, 128>}, {pipeline_mode = #tpu.pipeline_mode<synchronous>, transform_indices = @transform_4, window_bounds = array<i64: 9, 128, 128>}, {pipeline_mode = #tpu.pipeline_mode<synchronous>, transform_indices = @transform_5, window_bounds = array<i64: 256, 128>}, {pipeline_mode = #tpu.pipeline_mode<synchronous>, transform_indices = @transform_6, window_bounds = array<i64: 8, 128>}, {transform_indices = @transform_7, window_bounds = array<i64: 1, 64, 128>}]} {
    %c0 = arith.constant 0 : index
    %c0_0 = arith.constant 0 : index
    %0 = vector.load %arg2[%c0, %c0_0] : memref<64x2xf32, #tpu.memory_space<vmem>>, vector<64x1xf32>
    %1 = arith.truncf %0 : vector<64x1xf32> to vector<64x1xbf16>
    %c0_1 = arith.constant 0 : index
    %c1 = arith.constant 1 : index
    %2 = vector.load %arg2[%c0_1, %c1] : memref<64x2xf32, #tpu.memory_space<vmem>>, vector<64x1xf32>
    %3 = arith.truncf %2 : vector<64x1xf32> to vector<64x1xbf16>
    %4 = tpu.iota {dimensions = array<i32: 1>} : vector<1x128xi32>
    %c0_2 = arith.constant 0 : index
    %c0_3 = arith.constant 0 : index
    %c0_4 = arith.constant 0 : index
    %5 = vector.load %arg1[%c0_2, %c0_3, %c0_4] : memref<1x64x128xbf16, #tpu.memory_space<vmem>>, vector<1x64x128xbf16>
    %6 = vector.shape_cast %5 : vector<1x64x128xbf16> to vector<64x128xbf16>
    %c0_5 = arith.constant 0 : index
    %c0_6 = arith.constant 0 : index
    %7 = vector.load %arg3[%c0_5, %c0_6] : memref<128x128xbf16, #tpu.memory_space<vmem>>, vector<128x128xbf16>
    %cst = arith.constant dense<0.000000e+00> : vector<64x128xf32>
    %8 = tpu.matmul %6, %7, %cst {dimension_numbers = #tpu.dot_dimension_numbers<[1], [0], [0], [1], [0, 0, 1, 1], [], []>} : vector<64x128xbf16>, vector<128x128xbf16>, vector<64x128xf32> -> vector<64x128xf32>
    %c0_7 = arith.constant 0 : index
    %c0_8 = arith.constant 0 : index
    %9 = vector.load %arg7[%c0_7, %c0_8] : memref<8x128xf32, #tpu.memory_space<vmem>>, vector<1x128xf32>
    %10 = vector.broadcast %9 : vector<1x128xf32> to vector<64x128xf32>
    %11 = arith.addf %8, %10 : vector<64x128xf32>
    %12 = arith.truncf %11 : vector<64x128xf32> to vector<64x128xbf16>
    %c1_9 = arith.constant 1 : index
    %c0_10 = arith.constant 0 : index
    %13 = vector.load %arg7[%c1_9, %c0_10] : memref<8x128xf32, #tpu.memory_space<vmem>>, vector<1x128xf32>
    %cst_11 = arith.constant 0.000000e+00 : bf16
    %14 = vector.broadcast %cst_11 : bf16 to vector<16x128xbf16>
    %15 = tpu.concatenate %14, %12, %14 in 0 : vector<16x128xbf16>, vector<64x128xbf16>, vector<16x128xbf16> -> vector<96x128xbf16>
    %cst_12 = arith.constant 0.000000e+00 : f32
    %16 = vector.broadcast %cst_12 : f32 to vector<64x128xf32>
    %17 = vector.extract_strided_slice %15 {offsets = [7, 0], sizes = [64, 128], strides = [1, 1]} : vector<96x128xbf16> to vector<64x128xbf16>
    %18 = vector.broadcast %1 : vector<64x1xbf16> to vector<64x128xbf16>
    %19 = arith.mulf %17, %18 : vector<64x128xbf16>
    %c0_13 = arith.constant 0 : index
    %c0_14 = arith.constant 0 : index
    %c0_15 = arith.constant 0 : index
    %20 = vector.load %arg4[%c0_13, %c0_14, %c0_15] : memref<9x128x128xbf16, #tpu.memory_space<vmem>>, vector<1x128x128xbf16>
    %21 = vector.shape_cast %20 : vector<1x128x128xbf16> to vector<128x128xbf16>
    %cst_16 = arith.constant dense<0.000000e+00> : vector<64x128xf32>
    %22 = tpu.matmul %19, %21, %cst_16 {dimension_numbers = #tpu.dot_dimension_numbers<[1], [0], [0], [1], [0, 0, 1, 1], [], []>} : vector<64x128xbf16>, vector<128x128xbf16>, vector<64x128xf32> -> vector<64x128xf32>
    %23 = arith.addf %16, %22 : vector<64x128xf32>
    %24 = vector.extract_strided_slice %15 {offsets = [8, 0], sizes = [64, 128], strides = [1, 1]} : vector<96x128xbf16> to vector<64x128xbf16>
    %c1_17 = arith.constant 1 : index
    %c0_18 = arith.constant 0 : index
    %c0_19 = arith.constant 0 : index
    %25 = vector.load %arg4[%c1_17, %c0_18, %c0_19] : memref<9x128x128xbf16, #tpu.memory_space<vmem>>, vector<1x128x128xbf16>
    %26 = vector.shape_cast %25 : vector<1x128x128xbf16> to vector<128x128xbf16>
    %cst_20 = arith.constant dense<0.000000e+00> : vector<64x128xf32>
    %27 = tpu.matmul %24, %26, %cst_20 {dimension_numbers = #tpu.dot_dimension_numbers<[1], [0], [0], [1], [0, 0, 1, 1], [], []>} : vector<64x128xbf16>, vector<128x128xbf16>, vector<64x128xf32> -> vector<64x128xf32>
    %28 = arith.addf %23, %27 : vector<64x128xf32>
    %29 = vector.extract_strided_slice %15 {offsets = [9, 0], sizes = [64, 128], strides = [1, 1]} : vector<96x128xbf16> to vector<64x128xbf16>
    %30 = vector.broadcast %3 : vector<64x1xbf16> to vector<64x128xbf16>
    %31 = arith.mulf %29, %30 : vector<64x128xbf16>
    %c2 = arith.constant 2 : index
    %c0_21 = arith.constant 0 : index
    %c0_22 = arith.constant 0 : index
    %32 = vector.load %arg4[%c2, %c0_21, %c0_22] : memref<9x128x128xbf16, #tpu.memory_space<vmem>>, vector<1x128x128xbf16>
    %33 = vector.shape_cast %32 : vector<1x128x128xbf16> to vector<128x128xbf16>
    %cst_23 = arith.constant dense<0.000000e+00> : vector<64x128xf32>
    %34 = tpu.matmul %31, %33, %cst_23 {dimension_numbers = #tpu.dot_dimension_numbers<[1], [0], [0], [1], [0, 0, 1, 1], [], []>} : vector<64x128xbf16>, vector<128x128xbf16>, vector<64x128xf32> -> vector<64x128xf32>
    %35 = arith.addf %28, %34 : vector<64x128xf32>
    %36 = vector.extract_strided_slice %15 {offsets = [15, 0], sizes = [64, 128], strides = [1, 1]} : vector<96x128xbf16> to vector<64x128xbf16>
    %37 = vector.broadcast %1 : vector<64x1xbf16> to vector<64x128xbf16>
    %38 = arith.mulf %36, %37 : vector<64x128xbf16>
    %c3 = arith.constant 3 : index
    %c0_24 = arith.constant 0 : index
    %c0_25 = arith.constant 0 : index
    %39 = vector.load %arg4[%c3, %c0_24, %c0_25] : memref<9x128x128xbf16, #tpu.memory_space<vmem>>, vector<1x128x128xbf16>
    %40 = vector.shape_cast %39 : vector<1x128x128xbf16> to vector<128x128xbf16>
    %cst_26 = arith.constant dense<0.000000e+00> : vector<64x128xf32>
    %41 = tpu.matmul %38, %40, %cst_26 {dimension_numbers = #tpu.dot_dimension_numbers<[1], [0], [0], [1], [0, 0, 1, 1], [], []>} : vector<64x128xbf16>, vector<128x128xbf16>, vector<64x128xf32> -> vector<64x128xf32>
    %42 = arith.addf %35, %41 : vector<64x128xf32>
    %43 = vector.extract_strided_slice %15 {offsets = [16, 0], sizes = [64, 128], strides = [1, 1]} : vector<96x128xbf16> to vector<64x128xbf16>
    %c4 = arith.constant 4 : index
    %c0_27 = arith.constant 0 : index
    %c0_28 = arith.constant 0 : index
    %44 = vector.load %arg4[%c4, %c0_27, %c0_28] : memref<9x128x128xbf16, #tpu.memory_space<vmem>>, vector<1x128x128xbf16>
    %45 = vector.shape_cast %44 : vector<1x128x128xbf16> to vector<128x128xbf16>
    %cst_29 = arith.constant dense<0.000000e+00> : vector<64x128xf32>
    %46 = tpu.matmul %43, %45, %cst_29 {dimension_numbers = #tpu.dot_dimension_numbers<[1], [0], [0], [1], [0, 0, 1, 1], [], []>} : vector<64x128xbf16>, vector<128x128xbf16>, vector<64x128xf32> -> vector<64x128xf32>
    %47 = arith.addf %42, %46 : vector<64x128xf32>
    %48 = vector.extract_strided_slice %15 {offsets = [17, 0], sizes = [64, 128], strides = [1, 1]} : vector<96x128xbf16> to vector<64x128xbf16>
    %49 = vector.broadcast %3 : vector<64x1xbf16> to vector<64x128xbf16>
    %50 = arith.mulf %48, %49 : vector<64x128xbf16>
    %c5 = arith.constant 5 : index
    %c0_30 = arith.constant 0 : index
    %c0_31 = arith.constant 0 : index
    %51 = vector.load %arg4[%c5, %c0_30, %c0_31] : memref<9x128x128xbf16, #tpu.memory_space<vmem>>, vector<1x128x128xbf16>
    %52 = vector.shape_cast %51 : vector<1x128x128xbf16> to vector<128x128xbf16>
    %cst_32 = arith.constant dense<0.000000e+00> : vector<64x128xf32>
    %53 = tpu.matmul %50, %52, %cst_32 {dimension_numbers = #tpu.dot_dimension_numbers<[1], [0], [0], [1], [0, 0, 1, 1], [], []>} : vector<64x128xbf16>, vector<128x128xbf16>, vector<64x128xf32> -> vector<64x128xf32>
    %54 = arith.addf %47, %53 : vector<64x128xf32>
    %55 = vector.extract_strided_slice %15 {offsets = [23, 0], sizes = [64, 128], strides = [1, 1]} : vector<96x128xbf16> to vector<64x128xbf16>
    %56 = vector.broadcast %1 : vector<64x1xbf16> to vector<64x128xbf16>
    %57 = arith.mulf %55, %56 : vector<64x128xbf16>
    %c6 = arith.constant 6 : index
    %c0_33 = arith.constant 0 : index
    %c0_34 = arith.constant 0 : index
    %58 = vector.load %arg4[%c6, %c0_33, %c0_34] : memref<9x128x128xbf16, #tpu.memory_space<vmem>>, vector<1x128x128xbf16>
    %59 = vector.shape_cast %58 : vector<1x128x128xbf16> to vector<128x128xbf16>
    %cst_35 = arith.constant dense<0.000000e+00> : vector<64x128xf32>
    %60 = tpu.matmul %57, %59, %cst_35 {dimension_numbers = #tpu.dot_dimension_numbers<[1], [0], [0], [1], [0, 0, 1, 1], [], []>} : vector<64x128xbf16>, vector<128x128xbf16>, vector<64x128xf32> -> vector<64x128xf32>
    %61 = arith.addf %54, %60 : vector<64x128xf32>
    %62 = vector.extract_strided_slice %15 {offsets = [24, 0], sizes = [64, 128], strides = [1, 1]} : vector<96x128xbf16> to vector<64x128xbf16>
    %c7 = arith.constant 7 : index
    %c0_36 = arith.constant 0 : index
    %c0_37 = arith.constant 0 : index
    %63 = vector.load %arg4[%c7, %c0_36, %c0_37] : memref<9x128x128xbf16, #tpu.memory_space<vmem>>, vector<1x128x128xbf16>
    %64 = vector.shape_cast %63 : vector<1x128x128xbf16> to vector<128x128xbf16>
    %cst_38 = arith.constant dense<0.000000e+00> : vector<64x128xf32>
    %65 = tpu.matmul %62, %64, %cst_38 {dimension_numbers = #tpu.dot_dimension_numbers<[1], [0], [0], [1], [0, 0, 1, 1], [], []>} : vector<64x128xbf16>, vector<128x128xbf16>, vector<64x128xf32> -> vector<64x128xf32>
    %66 = arith.addf %61, %65 : vector<64x128xf32>
    %67 = vector.extract_strided_slice %15 {offsets = [25, 0], sizes = [64, 128], strides = [1, 1]} : vector<96x128xbf16> to vector<64x128xbf16>
    %68 = vector.broadcast %3 : vector<64x1xbf16> to vector<64x128xbf16>
    %69 = arith.mulf %67, %68 : vector<64x128xbf16>
    %c8 = arith.constant 8 : index
    %c0_39 = arith.constant 0 : index
    %c0_40 = arith.constant 0 : index
    %70 = vector.load %arg4[%c8, %c0_39, %c0_40] : memref<9x128x128xbf16, #tpu.memory_space<vmem>>, vector<1x128x128xbf16>
    %71 = vector.shape_cast %70 : vector<1x128x128xbf16> to vector<128x128xbf16>
    %cst_41 = arith.constant dense<0.000000e+00> : vector<64x128xf32>
    %72 = tpu.matmul %69, %71, %cst_41 {dimension_numbers = #tpu.dot_dimension_numbers<[1], [0], [0], [1], [0, 0, 1, 1], [], []>} : vector<64x128xbf16>, vector<128x128xbf16>, vector<64x128xf32> -> vector<64x128xf32>
    %73 = arith.addf %66, %72 : vector<64x128xf32>
    %74 = vector.broadcast %13 : vector<1x128xf32> to vector<64x128xf32>
    %75 = arith.addf %73, %74 : vector<64x128xf32>
    %c2_42 = arith.constant 2 : index
    %c0_43 = arith.constant 0 : index
    %76 = vector.load %arg7[%c2_42, %c0_43] : memref<8x128xf32, #tpu.memory_space<vmem>>, vector<1x128xf32>
    %c3_44 = arith.constant 3 : index
    %c0_45 = arith.constant 0 : index
    %77 = vector.load %arg7[%c3_44, %c0_45] : memref<8x128xf32, #tpu.memory_space<vmem>>, vector<1x128xf32>
    %cst_46 = arith.constant dense<0.000000e+00> : vector<128xf32>
    %78 = vector.multi_reduction <add>, %75, %cst_46 [0] : vector<64x128xf32> to vector<128xf32>
    %79 = vector.shape_cast %78 : vector<128xf32> to vector<1x128xf32>
    %cst_47 = arith.constant 0.000000e+00 : f32
    %80 = vector.broadcast %cst_47 : f32 to vector<1x128xf32>
    %c0_i32 = arith.constant 0 : i32
    %81 = vector.broadcast %c0_i32 : i32 to vector<1x128xi32>
    %82 = arith.cmpi sge, %4, %81 : vector<1x128xi32>
    %c4_i32 = arith.constant 4 : i32
    %83 = vector.broadcast %c4_i32 : i32 to vector<1x128xi32>
    %84 = arith.cmpi slt, %4, %83 : vector<1x128xi32>
    %85 = arith.andi %82, %84 : vector<1x128xi1>
    %cst_48 = arith.constant 0.000000e+00 : f32
    %86 = vector.broadcast %cst_48 : f32 to vector<1x128xf32>
    %87 = arith.select %85, %79, %86 : vector<1x128xi1>, vector<1x128xf32>
    %88 = vector.shape_cast %87 : vector<1x128xf32> to vector<1x1x128xf32>
    %cst_49 = arith.constant dense<0.000000e+00> : vector<1xf32>
    %89 = vector.multi_reduction <add>, %88, %cst_49 [1, 2] : vector<1x1x128xf32> to vector<1xf32>
    %90 = vector.shape_cast %89 : vector<1xf32> to vector<1x1x1xf32>
    %91 = vector.extract %90[0, 0, 0] : f32 from vector<1x1x1xf32>
    %92 = vector.broadcast %91 : f32 to vector<1x1xf32>
    %cst_50 = arith.constant 3.906250e-03 : f32
    %93 = vector.broadcast %cst_50 : f32 to vector<1x1xf32>
    %94 = arith.mulf %92, %93 : vector<1x1xf32>
    %95 = vector.shape_cast %94 : vector<1x1xf32> to vector<1x1xf32>
    %96 = vector.broadcast %95 : vector<1x1xf32> to vector<1x128xf32>
    %97 = arith.select %85, %96, %80 : vector<1x128xi1>, vector<1x128xf32>
    %c4_i32_51 = arith.constant 4 : i32
    %98 = vector.broadcast %c4_i32_51 : i32 to vector<1x128xi32>
    %99 = arith.cmpi sge, %4, %98 : vector<1x128xi32>
    %c8_i32 = arith.constant 8 : i32
    %100 = vector.broadcast %c8_i32 : i32 to vector<1x128xi32>
    %101 = arith.cmpi slt, %4, %100 : vector<1x128xi32>
    %102 = arith.andi %99, %101 : vector<1x128xi1>
    %cst_52 = arith.constant 0.000000e+00 : f32
    %103 = vector.broadcast %cst_52 : f32 to vector<1x128xf32>
    %104 = arith.select %102, %79, %103 : vector<1x128xi1>, vector<1x128xf32>
    %105 = vector.shape_cast %104 : vector<1x128xf32> to vector<1x1x128xf32>
    %cst_53 = arith.constant dense<0.000000e+00> : vector<1xf32>
    %106 = vector.multi_reduction <add>, %105, %cst_53 [1, 2] : vector<1x1x128xf32> to vector<1xf32>
    %107 = vector.shape_cast %106 : vector<1xf32> to vector<1x1x1xf32>
    %108 = vector.extract %107[0, 0, 0] : f32 from vector<1x1x1xf32>
    %109 = vector.broadcast %108 : f32 to vector<1x1xf32>
    %cst_54 = arith.constant 3.906250e-03 : f32
    %110 = vector.broadcast %cst_54 : f32 to vector<1x1xf32>
    %111 = arith.mulf %109, %110 : vector<1x1xf32>
    %112 = vector.shape_cast %111 : vector<1x1xf32> to vector<1x1xf32>
    %113 = vector.broadcast %112 : vector<1x1xf32> to vector<1x128xf32>
    %114 = arith.select %102, %113, %97 : vector<1x128xi1>, vector<1x128xf32>
    %115 = vector.broadcast %114 : vector<1x128xf32> to vector<64x128xf32>
    %116 = arith.subf %75, %115 : vector<64x128xf32>
    %117 = arith.mulf %116, %116 : vector<64x128xf32>
    %cst_55 = arith.constant dense<0.000000e+00> : vector<128xf32>
    %118 = vector.multi_reduction <add>, %117, %cst_55 [0] : vector<64x128xf32> to vector<128xf32>
    %119 = vector.shape_cast %118 : vector<128xf32> to vector<1x128xf32>
    %cst_56 = arith.constant 0.000000e+00 : f32
    %120 = vector.broadcast %cst_56 : f32 to vector<1x128xf32>
    %c0_i32_57 = arith.constant 0 : i32
    %121 = vector.broadcast %c0_i32_57 : i32 to vector<1x128xi32>
    %122 = arith.cmpi sge, %4, %121 : vector<1x128xi32>
    %c4_i32_58 = arith.constant 4 : i32
    %123 = vector.broadcast %c4_i32_58 : i32 to vector<1x128xi32>
    %124 = arith.cmpi slt, %4, %123 : vector<1x128xi32>
    %125 = arith.andi %122, %124 : vector<1x128xi1>
    %cst_59 = arith.constant 0.000000e+00 : f32
    %126 = vector.broadcast %cst_59 : f32 to vector<1x128xf32>
    %127 = arith.select %125, %119, %126 : vector<1x128xi1>, vector<1x128xf32>
    %128 = vector.shape_cast %127 : vector<1x128xf32> to vector<1x1x128xf32>
    %cst_60 = arith.constant dense<0.000000e+00> : vector<1xf32>
    %129 = vector.multi_reduction <add>, %128, %cst_60 [1, 2] : vector<1x1x128xf32> to vector<1xf32>
    %130 = vector.shape_cast %129 : vector<1xf32> to vector<1x1x1xf32>
    %131 = vector.extract %130[0, 0, 0] : f32 from vector<1x1x1xf32>
    %132 = vector.broadcast %131 : f32 to vector<1x1xf32>
    %cst_61 = arith.constant 3.906250e-03 : f32
    %133 = vector.broadcast %cst_61 : f32 to vector<1x1xf32>
    %134 = arith.mulf %132, %133 : vector<1x1xf32>
    %135 = vector.shape_cast %134 : vector<1x1xf32> to vector<1x1xf32>
    %136 = vector.broadcast %135 : vector<1x1xf32> to vector<1x128xf32>
    %137 = arith.select %125, %136, %120 : vector<1x128xi1>, vector<1x128xf32>
    %c4_i32_62 = arith.constant 4 : i32
    %138 = vector.broadcast %c4_i32_62 : i32 to vector<1x128xi32>
    %139 = arith.cmpi sge, %4, %138 : vector<1x128xi32>
    %c8_i32_63 = arith.constant 8 : i32
    %140 = vector.broadcast %c8_i32_63 : i32 to vector<1x128xi32>
    %141 = arith.cmpi slt, %4, %140 : vector<1x128xi32>
    %142 = arith.andi %139, %141 : vector<1x128xi1>
    %cst_64 = arith.constant 0.000000e+00 : f32
    %143 = vector.broadcast %cst_64 : f32 to vector<1x128xf32>
    %144 = arith.select %142, %119, %143 : vector<1x128xi1>, vector<1x128xf32>
    %145 = vector.shape_cast %144 : vector<1x128xf32> to vector<1x1x128xf32>
    %cst_65 = arith.constant dense<0.000000e+00> : vector<1xf32>
    %146 = vector.multi_reduction <add>, %145, %cst_65 [1, 2] : vector<1x1x128xf32> to vector<1xf32>
    %147 = vector.shape_cast %146 : vector<1xf32> to vector<1x1x1xf32>
    %148 = vector.extract %147[0, 0, 0] : f32 from vector<1x1x1xf32>
    %149 = vector.broadcast %148 : f32 to vector<1x1xf32>
    %cst_66 = arith.constant 3.906250e-03 : f32
    %150 = vector.broadcast %cst_66 : f32 to vector<1x1xf32>
    %151 = arith.mulf %149, %150 : vector<1x1xf32>
    %152 = vector.shape_cast %151 : vector<1x1xf32> to vector<1x1xf32>
    %153 = vector.broadcast %152 : vector<1x1xf32> to vector<1x128xf32>
    %154 = arith.select %142, %153, %137 : vector<1x128xi1>, vector<1x128xf32>
    %cst_67 = arith.constant 9.99999974E-6 : f32
    %155 = vector.broadcast %cst_67 : f32 to vector<1x128xf32>
    %156 = arith.addf %154, %155 : vector<1x128xf32>
    %157 = math.rsqrt %156 : vector<1x128xf32>
    %158 = vector.broadcast %157 : vector<1x128xf32> to vector<64x128xf32>
    %159 = arith.mulf %116, %158 : vector<64x128xf32>
    %160 = vector.broadcast %76 : vector<1x128xf32> to vector<64x128xf32>
    %161 = arith.mulf %159, %160 : vector<64x128xf32>
    %162 = vector.broadcast %77 : vector<1x128xf32> to vector<64x128xf32>
    %163 = arith.addf %161, %162 : vector<64x128xf32>
    %cst_68 = arith.constant 0.000000e+00 : f32
    %164 = vector.broadcast %cst_68 : f32 to vector<64x128xf32>
    %165 = arith.subf %164, %163 : vector<64x128xf32>
    %166 = math.exp %165 : vector<64x128xf32>
    %cst_69 = arith.constant 1.000000e+00 : f32
    %167 = vector.broadcast %cst_69 : f32 to vector<64x128xf32>
    %168 = arith.addf %167, %166 : vector<64x128xf32>
    %169 = tpu.reciprocal %168 {approx = true} : vector<64x128xf32> -> vector<64x128xf32>
    %170 = arith.mulf %163, %169 : vector<64x128xf32>
    %171 = arith.truncf %170 : vector<64x128xf32> to vector<64x128xbf16>
    %c4_70 = arith.constant 4 : index
    %c0_71 = arith.constant 0 : index
    %172 = vector.load %arg7[%c4_70, %c0_71] : memref<8x128xf32, #tpu.memory_space<vmem>>, vector<1x128xf32>
    %cst_72 = arith.constant 0.000000e+00 : bf16
    %173 = vector.broadcast %cst_72 : bf16 to vector<16x128xbf16>
    %174 = tpu.concatenate %173, %171, %173 in 0 : vector<16x128xbf16>, vector<64x128xbf16>, vector<16x128xbf16> -> vector<96x128xbf16>
    %cst_73 = arith.constant 0.000000e+00 : f32
    %175 = vector.broadcast %cst_73 : f32 to vector<64x128xf32>
    %176 = vector.extract_strided_slice %174 {offsets = [7, 0], sizes = [64, 128], strides = [1, 1]} : vector<96x128xbf16> to vector<64x128xbf16>
    %177 = vector.broadcast %1 : vector<64x1xbf16> to vector<64x128xbf16>
    %178 = arith.mulf %176, %177 : vector<64x128xbf16>
    %c0_74 = arith.constant 0 : index
    %c0_75 = arith.constant 0 : index
    %c0_76 = arith.constant 0 : index
    %179 = vector.load %arg5[%c0_74, %c0_75, %c0_76] : memref<9x128x128xbf16, #tpu.memory_space<vmem>>, vector<1x128x128xbf16>
    %180 = vector.shape_cast %179 : vector<1x128x128xbf16> to vector<128x128xbf16>
    %cst_77 = arith.constant dense<0.000000e+00> : vector<64x128xf32>
    %181 = tpu.matmul %178, %180, %cst_77 {dimension_numbers = #tpu.dot_dimension_numbers<[1], [0], [0], [1], [0, 0, 1, 1], [], []>} : vector<64x128xbf16>, vector<128x128xbf16>, vector<64x128xf32> -> vector<64x128xf32>
    %182 = arith.addf %175, %181 : vector<64x128xf32>
    %183 = vector.extract_strided_slice %174 {offsets = [8, 0], sizes = [64, 128], strides = [1, 1]} : vector<96x128xbf16> to vector<64x128xbf16>
    %c1_78 = arith.constant 1 : index
    %c0_79 = arith.constant 0 : index
    %c0_80 = arith.constant 0 : index
    %184 = vector.load %arg5[%c1_78, %c0_79, %c0_80] : memref<9x128x128xbf16, #tpu.memory_space<vmem>>, vector<1x128x128xbf16>
    %185 = vector.shape_cast %184 : vector<1x128x128xbf16> to vector<128x128xbf16>
    %cst_81 = arith.constant dense<0.000000e+00> : vector<64x128xf32>
    %186 = tpu.matmul %183, %185, %cst_81 {dimension_numbers = #tpu.dot_dimension_numbers<[1], [0], [0], [1], [0, 0, 1, 1], [], []>} : vector<64x128xbf16>, vector<128x128xbf16>, vector<64x128xf32> -> vector<64x128xf32>
    %187 = arith.addf %182, %186 : vector<64x128xf32>
    %188 = vector.extract_strided_slice %174 {offsets = [9, 0], sizes = [64, 128], strides = [1, 1]} : vector<96x128xbf16> to vector<64x128xbf16>
    %189 = vector.broadcast %3 : vector<64x1xbf16> to vector<64x128xbf16>
    %190 = arith.mulf %188, %189 : vector<64x128xbf16>
    %c2_82 = arith.constant 2 : index
    %c0_83 = arith.constant 0 : index
    %c0_84 = arith.constant 0 : index
    %191 = vector.load %arg5[%c2_82, %c0_83, %c0_84] : memref<9x128x128xbf16, #tpu.memory_space<vmem>>, vector<1x128x128xbf16>
    %192 = vector.shape_cast %191 : vector<1x128x128xbf16> to vector<128x128xbf16>
    %cst_85 = arith.constant dense<0.000000e+00> : vector<64x128xf32>
    %193 = tpu.matmul %190, %192, %cst_85 {dimension_numbers = #tpu.dot_dimension_numbers<[1], [0], [0], [1], [0, 0, 1, 1], [], []>} : vector<64x128xbf16>, vector<128x128xbf16>, vector<64x128xf32> -> vector<64x128xf32>
    %194 = arith.addf %187, %193 : vector<64x128xf32>
    %195 = vector.extract_strided_slice %174 {offsets = [15, 0], sizes = [64, 128], strides = [1, 1]} : vector<96x128xbf16> to vector<64x128xbf16>
    %196 = vector.broadcast %1 : vector<64x1xbf16> to vector<64x128xbf16>
    %197 = arith.mulf %195, %196 : vector<64x128xbf16>
    %c3_86 = arith.constant 3 : index
    %c0_87 = arith.constant 0 : index
    %c0_88 = arith.constant 0 : index
    %198 = vector.load %arg5[%c3_86, %c0_87, %c0_88] : memref<9x128x128xbf16, #tpu.memory_space<vmem>>, vector<1x128x128xbf16>
    %199 = vector.shape_cast %198 : vector<1x128x128xbf16> to vector<128x128xbf16>
    %cst_89 = arith.constant dense<0.000000e+00> : vector<64x128xf32>
    %200 = tpu.matmul %197, %199, %cst_89 {dimension_numbers = #tpu.dot_dimension_numbers<[1], [0], [0], [1], [0, 0, 1, 1], [], []>} : vector<64x128xbf16>, vector<128x128xbf16>, vector<64x128xf32> -> vector<64x128xf32>
    %201 = arith.addf %194, %200 : vector<64x128xf32>
    %202 = vector.extract_strided_slice %174 {offsets = [16, 0], sizes = [64, 128], strides = [1, 1]} : vector<96x128xbf16> to vector<64x128xbf16>
    %c4_90 = arith.constant 4 : index
    %c0_91 = arith.constant 0 : index
    %c0_92 = arith.constant 0 : index
    %203 = vector.load %arg5[%c4_90, %c0_91, %c0_92] : memref<9x128x128xbf16, #tpu.memory_space<vmem>>, vector<1x128x128xbf16>
    %204 = vector.shape_cast %203 : vector<1x128x128xbf16> to vector<128x128xbf16>
    %cst_93 = arith.constant dense<0.000000e+00> : vector<64x128xf32>
    %205 = tpu.matmul %202, %204, %cst_93 {dimension_numbers = #tpu.dot_dimension_numbers<[1], [0], [0], [1], [0, 0, 1, 1], [], []>} : vector<64x128xbf16>, vector<128x128xbf16>, vector<64x128xf32> -> vector<64x128xf32>
    %206 = arith.addf %201, %205 : vector<64x128xf32>
    %207 = vector.extract_strided_slice %174 {offsets = [17, 0], sizes = [64, 128], strides = [1, 1]} : vector<96x128xbf16> to vector<64x128xbf16>
    %208 = vector.broadcast %3 : vector<64x1xbf16> to vector<64x128xbf16>
    %209 = arith.mulf %207, %208 : vector<64x128xbf16>
    %c5_94 = arith.constant 5 : index
    %c0_95 = arith.constant 0 : index
    %c0_96 = arith.constant 0 : index
    %210 = vector.load %arg5[%c5_94, %c0_95, %c0_96] : memref<9x128x128xbf16, #tpu.memory_space<vmem>>, vector<1x128x128xbf16>
    %211 = vector.shape_cast %210 : vector<1x128x128xbf16> to vector<128x128xbf16>
    %cst_97 = arith.constant dense<0.000000e+00> : vector<64x128xf32>
    %212 = tpu.matmul %209, %211, %cst_97 {dimension_numbers = #tpu.dot_dimension_numbers<[1], [0], [0], [1], [0, 0, 1, 1], [], []>} : vector<64x128xbf16>, vector<128x128xbf16>, vector<64x128xf32> -> vector<64x128xf32>
    %213 = arith.addf %206, %212 : vector<64x128xf32>
    %214 = vector.extract_strided_slice %174 {offsets = [23, 0], sizes = [64, 128], strides = [1, 1]} : vector<96x128xbf16> to vector<64x128xbf16>
    %215 = vector.broadcast %1 : vector<64x1xbf16> to vector<64x128xbf16>
    %216 = arith.mulf %214, %215 : vector<64x128xbf16>
    %c6_98 = arith.constant 6 : index
    %c0_99 = arith.constant 0 : index
    %c0_100 = arith.constant 0 : index
    %217 = vector.load %arg5[%c6_98, %c0_99, %c0_100] : memref<9x128x128xbf16, #tpu.memory_space<vmem>>, vector<1x128x128xbf16>
    %218 = vector.shape_cast %217 : vector<1x128x128xbf16> to vector<128x128xbf16>
    %cst_101 = arith.constant dense<0.000000e+00> : vector<64x128xf32>
    %219 = tpu.matmul %216, %218, %cst_101 {dimension_numbers = #tpu.dot_dimension_numbers<[1], [0], [0], [1], [0, 0, 1, 1], [], []>} : vector<64x128xbf16>, vector<128x128xbf16>, vector<64x128xf32> -> vector<64x128xf32>
    %220 = arith.addf %213, %219 : vector<64x128xf32>
    %221 = vector.extract_strided_slice %174 {offsets = [24, 0], sizes = [64, 128], strides = [1, 1]} : vector<96x128xbf16> to vector<64x128xbf16>
    %c7_102 = arith.constant 7 : index
    %c0_103 = arith.constant 0 : index
    %c0_104 = arith.constant 0 : index
    %222 = vector.load %arg5[%c7_102, %c0_103, %c0_104] : memref<9x128x128xbf16, #tpu.memory_space<vmem>>, vector<1x128x128xbf16>
    %223 = vector.shape_cast %222 : vector<1x128x128xbf16> to vector<128x128xbf16>
    %cst_105 = arith.constant dense<0.000000e+00> : vector<64x128xf32>
    %224 = tpu.matmul %221, %223, %cst_105 {dimension_numbers = #tpu.dot_dimension_numbers<[1], [0], [0], [1], [0, 0, 1, 1], [], []>} : vector<64x128xbf16>, vector<128x128xbf16>, vector<64x128xf32> -> vector<64x128xf32>
    %225 = arith.addf %220, %224 : vector<64x128xf32>
    %226 = vector.extract_strided_slice %174 {offsets = [25, 0], sizes = [64, 128], strides = [1, 1]} : vector<96x128xbf16> to vector<64x128xbf16>
    %227 = vector.broadcast %3 : vector<64x1xbf16> to vector<64x128xbf16>
    %228 = arith.mulf %226, %227 : vector<64x128xbf16>
    %c8_106 = arith.constant 8 : index
    %c0_107 = arith.constant 0 : index
    %c0_108 = arith.constant 0 : index
    %229 = vector.load %arg5[%c8_106, %c0_107, %c0_108] : memref<9x128x128xbf16, #tpu.memory_space<vmem>>, vector<1x128x128xbf16>
    %230 = vector.shape_cast %229 : vector<1x128x128xbf16> to vector<128x128xbf16>
    %cst_109 = arith.constant dense<0.000000e+00> : vector<64x128xf32>
    %231 = tpu.matmul %228, %230, %cst_109 {dimension_numbers = #tpu.dot_dimension_numbers<[1], [0], [0], [1], [0, 0, 1, 1], [], []>} : vector<64x128xbf16>, vector<128x128xbf16>, vector<64x128xf32> -> vector<64x128xf32>
    %232 = arith.addf %225, %231 : vector<64x128xf32>
    %233 = vector.broadcast %172 : vector<1x128xf32> to vector<64x128xf32>
    %234 = arith.addf %232, %233 : vector<64x128xf32>
    %c5_110 = arith.constant 5 : index
    %c0_111 = arith.constant 0 : index
    %235 = vector.load %arg7[%c5_110, %c0_111] : memref<8x128xf32, #tpu.memory_space<vmem>>, vector<1x128xf32>
    %c6_112 = arith.constant 6 : index
    %c0_113 = arith.constant 0 : index
    %236 = vector.load %arg7[%c6_112, %c0_113] : memref<8x128xf32, #tpu.memory_space<vmem>>, vector<1x128xf32>
    %cst_114 = arith.constant dense<0.000000e+00> : vector<128xf32>
    %237 = vector.multi_reduction <add>, %234, %cst_114 [0] : vector<64x128xf32> to vector<128xf32>
    %238 = vector.shape_cast %237 : vector<128xf32> to vector<1x128xf32>
    %cst_115 = arith.constant 0.000000e+00 : f32
    %239 = vector.broadcast %cst_115 : f32 to vector<1x128xf32>
    %c0_i32_116 = arith.constant 0 : i32
    %240 = vector.broadcast %c0_i32_116 : i32 to vector<1x128xi32>
    %241 = arith.cmpi sge, %4, %240 : vector<1x128xi32>
    %c4_i32_117 = arith.constant 4 : i32
    %242 = vector.broadcast %c4_i32_117 : i32 to vector<1x128xi32>
    %243 = arith.cmpi slt, %4, %242 : vector<1x128xi32>
    %244 = arith.andi %241, %243 : vector<1x128xi1>
    %cst_118 = arith.constant 0.000000e+00 : f32
    %245 = vector.broadcast %cst_118 : f32 to vector<1x128xf32>
    %246 = arith.select %244, %238, %245 : vector<1x128xi1>, vector<1x128xf32>
    %247 = vector.shape_cast %246 : vector<1x128xf32> to vector<1x1x128xf32>
    %cst_119 = arith.constant dense<0.000000e+00> : vector<1xf32>
    %248 = vector.multi_reduction <add>, %247, %cst_119 [1, 2] : vector<1x1x128xf32> to vector<1xf32>
    %249 = vector.shape_cast %248 : vector<1xf32> to vector<1x1x1xf32>
    %250 = vector.extract %249[0, 0, 0] : f32 from vector<1x1x1xf32>
    %251 = vector.broadcast %250 : f32 to vector<1x1xf32>
    %cst_120 = arith.constant 3.906250e-03 : f32
    %252 = vector.broadcast %cst_120 : f32 to vector<1x1xf32>
    %253 = arith.mulf %251, %252 : vector<1x1xf32>
    %254 = vector.shape_cast %253 : vector<1x1xf32> to vector<1x1xf32>
    %255 = vector.broadcast %254 : vector<1x1xf32> to vector<1x128xf32>
    %256 = arith.select %244, %255, %239 : vector<1x128xi1>, vector<1x128xf32>
    %c4_i32_121 = arith.constant 4 : i32
    %257 = vector.broadcast %c4_i32_121 : i32 to vector<1x128xi32>
    %258 = arith.cmpi sge, %4, %257 : vector<1x128xi32>
    %c8_i32_122 = arith.constant 8 : i32
    %259 = vector.broadcast %c8_i32_122 : i32 to vector<1x128xi32>
    %260 = arith.cmpi slt, %4, %259 : vector<1x128xi32>
    %261 = arith.andi %258, %260 : vector<1x128xi1>
    %cst_123 = arith.constant 0.000000e+00 : f32
    %262 = vector.broadcast %cst_123 : f32 to vector<1x128xf32>
    %263 = arith.select %261, %238, %262 : vector<1x128xi1>, vector<1x128xf32>
    %264 = vector.shape_cast %263 : vector<1x128xf32> to vector<1x1x128xf32>
    %cst_124 = arith.constant dense<0.000000e+00> : vector<1xf32>
    %265 = vector.multi_reduction <add>, %264, %cst_124 [1, 2] : vector<1x1x128xf32> to vector<1xf32>
    %266 = vector.shape_cast %265 : vector<1xf32> to vector<1x1x1xf32>
    %267 = vector.extract %266[0, 0, 0] : f32 from vector<1x1x1xf32>
    %268 = vector.broadcast %267 : f32 to vector<1x1xf32>
    %cst_125 = arith.constant 3.906250e-03 : f32
    %269 = vector.broadcast %cst_125 : f32 to vector<1x1xf32>
    %270 = arith.mulf %268, %269 : vector<1x1xf32>
    %271 = vector.shape_cast %270 : vector<1x1xf32> to vector<1x1xf32>
    %272 = vector.broadcast %271 : vector<1x1xf32> to vector<1x128xf32>
    %273 = arith.select %261, %272, %256 : vector<1x128xi1>, vector<1x128xf32>
    %274 = vector.broadcast %273 : vector<1x128xf32> to vector<64x128xf32>
    %275 = arith.subf %234, %274 : vector<64x128xf32>
    %276 = arith.mulf %275, %275 : vector<64x128xf32>
    %cst_126 = arith.constant dense<0.000000e+00> : vector<128xf32>
    %277 = vector.multi_reduction <add>, %276, %cst_126 [0] : vector<64x128xf32> to vector<128xf32>
    %278 = vector.shape_cast %277 : vector<128xf32> to vector<1x128xf32>
    %cst_127 = arith.constant 0.000000e+00 : f32
    %279 = vector.broadcast %cst_127 : f32 to vector<1x128xf32>
    %c0_i32_128 = arith.constant 0 : i32
    %280 = vector.broadcast %c0_i32_128 : i32 to vector<1x128xi32>
    %281 = arith.cmpi sge, %4, %280 : vector<1x128xi32>
    %c4_i32_129 = arith.constant 4 : i32
    %282 = vector.broadcast %c4_i32_129 : i32 to vector<1x128xi32>
    %283 = arith.cmpi slt, %4, %282 : vector<1x128xi32>
    %284 = arith.andi %281, %283 : vector<1x128xi1>
    %cst_130 = arith.constant 0.000000e+00 : f32
    %285 = vector.broadcast %cst_130 : f32 to vector<1x128xf32>
    %286 = arith.select %284, %278, %285 : vector<1x128xi1>, vector<1x128xf32>
    %287 = vector.shape_cast %286 : vector<1x128xf32> to vector<1x1x128xf32>
    %cst_131 = arith.constant dense<0.000000e+00> : vector<1xf32>
    %288 = vector.multi_reduction <add>, %287, %cst_131 [1, 2] : vector<1x1x128xf32> to vector<1xf32>
    %289 = vector.shape_cast %288 : vector<1xf32> to vector<1x1x1xf32>
    %290 = vector.extract %289[0, 0, 0] : f32 from vector<1x1x1xf32>
    %291 = vector.broadcast %290 : f32 to vector<1x1xf32>
    %cst_132 = arith.constant 3.906250e-03 : f32
    %292 = vector.broadcast %cst_132 : f32 to vector<1x1xf32>
    %293 = arith.mulf %291, %292 : vector<1x1xf32>
    %294 = vector.shape_cast %293 : vector<1x1xf32> to vector<1x1xf32>
    %295 = vector.broadcast %294 : vector<1x1xf32> to vector<1x128xf32>
    %296 = arith.select %284, %295, %279 : vector<1x128xi1>, vector<1x128xf32>
    %c4_i32_133 = arith.constant 4 : i32
    %297 = vector.broadcast %c4_i32_133 : i32 to vector<1x128xi32>
    %298 = arith.cmpi sge, %4, %297 : vector<1x128xi32>
    %c8_i32_134 = arith.constant 8 : i32
    %299 = vector.broadcast %c8_i32_134 : i32 to vector<1x128xi32>
    %300 = arith.cmpi slt, %4, %299 : vector<1x128xi32>
    %301 = arith.andi %298, %300 : vector<1x128xi1>
    %cst_135 = arith.constant 0.000000e+00 : f32
    %302 = vector.broadcast %cst_135 : f32 to vector<1x128xf32>
    %303 = arith.select %301, %278, %302 : vector<1x128xi1>, vector<1x128xf32>
    %304 = vector.shape_cast %303 : vector<1x128xf32> to vector<1x1x128xf32>
    %cst_136 = arith.constant dense<0.000000e+00> : vector<1xf32>
    %305 = vector.multi_reduction <add>, %304, %cst_136 [1, 2] : vector<1x1x128xf32> to vector<1xf32>
    %306 = vector.shape_cast %305 : vector<1xf32> to vector<1x1x1xf32>
    %307 = vector.extract %306[0, 0, 0] : f32 from vector<1x1x1xf32>
    %308 = vector.broadcast %307 : f32 to vector<1x1xf32>
    %cst_137 = arith.constant 3.906250e-03 : f32
    %309 = vector.broadcast %cst_137 : f32 to vector<1x1xf32>
    %310 = arith.mulf %308, %309 : vector<1x1xf32>
    %311 = vector.shape_cast %310 : vector<1x1xf32> to vector<1x1xf32>
    %312 = vector.broadcast %311 : vector<1x1xf32> to vector<1x128xf32>
    %313 = arith.select %301, %312, %296 : vector<1x128xi1>, vector<1x128xf32>
    %cst_138 = arith.constant 9.99999974E-6 : f32
    %314 = vector.broadcast %cst_138 : f32 to vector<1x128xf32>
    %315 = arith.addf %313, %314 : vector<1x128xf32>
    %316 = math.rsqrt %315 : vector<1x128xf32>
    %317 = vector.broadcast %316 : vector<1x128xf32> to vector<64x128xf32>
    %318 = arith.mulf %275, %317 : vector<64x128xf32>
    %319 = vector.broadcast %235 : vector<1x128xf32> to vector<64x128xf32>
    %320 = arith.mulf %318, %319 : vector<64x128xf32>
    %321 = vector.broadcast %236 : vector<1x128xf32> to vector<64x128xf32>
    %322 = arith.addf %320, %321 : vector<64x128xf32>
    %cst_139 = arith.constant 0.000000e+00 : f32
    %323 = vector.broadcast %cst_139 : f32 to vector<64x128xf32>
    %324 = arith.subf %323, %322 : vector<64x128xf32>
    %325 = math.exp %324 : vector<64x128xf32>
    %cst_140 = arith.constant 1.000000e+00 : f32
    %326 = vector.broadcast %cst_140 : f32 to vector<64x128xf32>
    %327 = arith.addf %326, %325 : vector<64x128xf32>
    %328 = tpu.reciprocal %327 {approx = true} : vector<64x128xf32> -> vector<64x128xf32>
    %329 = arith.mulf %322, %328 : vector<64x128xf32>
    %330 = arith.truncf %329 : vector<64x128xf32> to vector<64x128xbf16>
    %331 = tpu.concatenate %12, %330 in 1 : vector<64x128xbf16>, vector<64x128xbf16> -> vector<64x256xbf16>
    %c0_141 = arith.constant 0 : index
    %c0_142 = arith.constant 0 : index
    %332 = vector.load %arg6[%c0_141, %c0_142] : memref<256x128xbf16, #tpu.memory_space<vmem>>, vector<256x128xbf16>
    %cst_143 = arith.constant dense<0.000000e+00> : vector<64x128xf32>
    %333 = tpu.matmul %331, %332, %cst_143 {dimension_numbers = #tpu.dot_dimension_numbers<[1], [0], [0], [1], [0, 0, 1, 1], [], []>} : vector<64x256xbf16>, vector<256x128xbf16>, vector<64x128xf32> -> vector<64x128xf32>
    %c7_144 = arith.constant 7 : index
    %c0_145 = arith.constant 0 : index
    %334 = vector.load %arg7[%c7_144, %c0_145] : memref<8x128xf32, #tpu.memory_space<vmem>>, vector<1x128xf32>
    %335 = vector.broadcast %334 : vector<1x128xf32> to vector<64x128xf32>
    %336 = arith.addf %333, %335 : vector<64x128xf32>
    %337 = arith.truncf %336 : vector<64x128xf32> to vector<64x128xbf16>
    %c0_146 = arith.constant 0 : index
    %c0_147 = arith.constant 0 : index
    %c0_148 = arith.constant 0 : index
    %338 = vector.load %arg8[%c0_146, %c0_147, %c0_148] : memref<1x64x128xbf16, #tpu.memory_space<vmem>>, vector<1x64x128xbf16>
    %339 = vector.shape_cast %338 : vector<1x64x128xbf16> to vector<64x128xbf16>
    %340 = vector.shape_cast %337 : vector<64x128xbf16> to vector<1x64x128xbf16>
    tpu.vector_store %arg8[%c0_146, %c0_147, %c0_148], %340 {strides = array<i32>} : memref<1x64x128xbf16, #tpu.memory_space<vmem>>, vector<1x64x128xbf16>,
    return
  }
  func.func @transform_0(%arg0: i32) -> (i32, i32, i32) {
    %c0_i32 = arith.constant 0 : i32
    %c0_i32_0 = arith.constant 0 : i32
    %c0_i32_1 = arith.constant 0 : i32
    return %arg0, %c0_i32, %c0_i32_0 : i32, i32, i32
  }
  func.func @transform_1(%arg0: i32) -> (i32, i32) {
    %c0_i32 = arith.constant 0 : i32
    %c0_i32_0 = arith.constant 0 : i32
    %c0_i32_1 = arith.constant 0 : i32
    return %c0_i32, %c0_i32_0 : i32, i32
  }
  func.func @transform_2(%arg0: i32) -> (i32, i32) {
    %c0_i32 = arith.constant 0 : i32
    %c0_i32_0 = arith.constant 0 : i32
    %c0_i32_1 = arith.constant 0 : i32
    return %c0_i32, %c0_i32_0 : i32, i32
  }
  func.func @transform_3(%arg0: i32) -> (i32, i32, i32) {
    %c0_i32 = arith.constant 0 : i32
    %c0_i32_0 = arith.constant 0 : i32
    %c0_i32_1 = arith.constant 0 : i32
    %c0_i32_2 = arith.constant 0 : i32
    return %c0_i32, %c0_i32_0, %c0_i32_1 : i32, i32, i32
  }
  func.func @transform_4(%arg0: i32) -> (i32, i32, i32) {
    %c0_i32 = arith.constant 0 : i32
    %c0_i32_0 = arith.constant 0 : i32
    %c0_i32_1 = arith.constant 0 : i32
    %c0_i32_2 = arith.constant 0 : i32
    return %c0_i32, %c0_i32_0, %c0_i32_1 : i32, i32, i32
  }
  func.func @transform_5(%arg0: i32) -> (i32, i32) {
    %c0_i32 = arith.constant 0 : i32
    %c0_i32_0 = arith.constant 0 : i32
    %c0_i32_1 = arith.constant 0 : i32
    return %c0_i32, %c0_i32_0 : i32, i32
  }
  func.func @transform_6(%arg0: i32) -> (i32, i32) {
    %c0_i32 = arith.constant 0 : i32
    %c0_i32_0 = arith.constant 0 : i32
    %c0_i32_1 = arith.constant 0 : i32
    return %c0_i32, %c0_i32_0 : i32, i32
  }
  func.func @transform_7(%arg0: i32) -> (i32, i32, i32) {
    %c0_i32 = arith.constant 0 : i32
    %c0_i32_0 = arith.constant 0 : i32
    %c0_i32_1 = arith.constant 0 : i32
    return %arg0, %c0_i32, %c0_i32_0 : i32, i32, i32
  }
}

</mosaic_0001>

<bundles_post_ra>
// kernel: _lambda_.1
= control target key start
LH: loop header
LB: loop body
LE: loop exit
PB: predicated region body
PF: predicated region fallthrough
CT: control target
= control target key end

     0   :  { %s5878_s24 = smov 0   ;;  %s7231_s0 = inlined_call_operand.vmem [shape: bf16[2,64,128], index: 0, kind: input, shape index: {}]   ;;  %s7232_s1 = inlined_call_operand.vmem [shape: f32[64,2], index: 1, kind: input, shape index: {}]   ;;  %s7233_s2 = inlined_call_operand.vmem [shape: bf16[128,128], index: 2, kind: input, shape index: {}]   ;;  %s7234_s3 = inlined_call_operand.vmem [shape: bf16[9,128,128], index: 3, kind: input, shape index: {}]   ;;  %s7235_s4 = inlined_call_operand.vmem [shape: bf16[9,128,128], index: 4, kind: input, shape index: {}]   ;;  %s7236_s5 = inlined_call_operand.vmem [shape: bf16[256,128], index: 5, kind: input, shape index: {}]   ;;  %s7237_s6 = inlined_call_operand.vmem [shape: f32[8,128], index: 6, kind: input, shape index: {}]   ;;  %s7238_s7 = inlined_call_operand.vmem [shape: bf16[2,64,128], index: 7, kind: output, shape index: {}]  }
   0x1 LB: > { %s4345_s25 = sadd.s32 4294967295, %s5834_s24   ;;  %p4349_p0 = scmp.ge.s32.totalorder %s5834_s24, 1  ;;  %s5834_s24 = sphi %s5878_s24, %s17_s24  }
   0x2   : > { %p237_p1 = scmp.lt.s32.totalorder %s5834_s24, 3 }
   0x4   : > { %p238_p2 = pnand %p4349_p0, %p237_p1 }
   0x6   : > { %241 = sbr.rel (%p238_p2) target bundleno = 2213 (0x8a5), region = 48 }
   0xb   : > { %v5588_v0 = vld [vmem:[%s7233_s2 + $0x38] sm:$0xff]   ;;  %p269_p3 = scmp.lt.s32.totalorder %s4345_s25, 1  ;;  %v5589_v1 = vld [vmem:[%s7233_s2 + $0x30] sm:$0xff]   ;;  %v5836_v2 = vmov 0   ;;  %v5590_v3 = vld [vmem:[%s7233_s2 + $0x28] sm:$0xff]   ;;  %v5837_v19 = vmov 1  }
   0xc   : > { %5101 = vmatprep.subr.bf16.mxu0 %v5588_v0  ;;  %5584 = vset.pattern.permute.xlu1 %v5836_v2  ;;  %v5591_v4 = vld [vmem:[%s7233_s2 + $0x20] sm:$0xff]   ;;  %v5592_v6 = vld [vmem:[%s7233_s2 + $0x18] sm:$0xff]   ;;  %v285_v8 = vld [vmem:[%s7232_s1 + $0x28] sm:$0xff]  ;;  %vm481_vm0 = vsmask.f32 3328  ;;  %vm561_vm3 = vcmask 1043456  }
   0xd   : > { %s7402_s25 = smov (!%p269_p3, %s4345_s25), 1  ;;  %5102 = vmatpush3.bf16.msra.mxu0 %v5588_v0  ;;  %5583 = vset.pattern.permute.xlu0 %v5836_v2  ;;  %v284_v7 = vld [vmem:[%s7232_s1 + $0x20] sm:$0xff]  ;;  %v281_v11 = vld [vmem:[%s7232_s1 + $0x8] sm:$0xff]  ;;  %v282_v12 = vld [vmem:[%s7232_s1 + $0x10] sm:$0xff]  ;;  %vm1089_vm1 = vsmask.f32 7424 }
   0xe   : > { %5103 = vmatprep.subr.bf16.mxu0 %v5589_v1  ;;  %s4800_s9 = sshll.u32 %s7402_s25, 5  ;;  %v280_v9 = vld [vmem:[%s7232_s1] sm:$0xff]  ;;  %v290_v10 = vpack.c.bf16 %v285_v8, %v284_v7  ;;  %v283_v13 = vld [vmem:[%s7232_s1 + $0x18] sm:$0xff]  ;;  %v5593_v16 = vld [vmem:[%s7233_s2 + $0x10] sm:$0xff]   ;;  %v6044_v8 = vrot.slane %v5836_v2, 4  ;;  %vm2180_vm9 = vcmask 1040384  }
   0xf   : > { %s5905_s12 = scalar_lea.vmem %s7231_s0, %s4800_s9  ;;  %v288_v14 = vpack.c.bf16 %v281_v11, %v280_v9  ;;  %v5600_v15 = vld [vmem:[%s7234_s3 + $0x78] sm:$0xff]   ;;  %v289_v17 = vpack.c.bf16 %v283_v13, %v282_v12  ;;  %v5601_v18 = vld [vmem:[%s7234_s3 + $0x70] sm:$0xff]   ;;  %v5603_v20 = vld [vmem:[%s7234_s3 + $0x68] sm:$0xff]   ;;  %vm688_vm2 = vsmask.f32 4352 }
  0x10   : > { %v5596_v5 = vld [vmem:[%s5905_s12] sm:$0xff]   ;;  %475 = vperm.xlu1 %5584, %v290_v10   ;;  %5125 = vmatprep.subr.bf16.mxu1 %v5600_v15  ;;  %v5594_v21 = vld [vmem:[%s7233_s2 + $0x8] sm:$0xff]   ;;  %v286_v22 = vld [vmem:[%s7232_s1 + $0x30] sm:$0xff]  ;;  %7285 = vst [vmem:[#allocation3_spill] sm:$0xff] %v6044_v8  ;;  %vm1128_vm4 = vsmask.f32 256 }
  0x11   : > { %5104 = vmatpush3.bf16.msra.mxu0 %v5589_v1  ;;  %5117 = vmatprep.mubr.bf16.mxu0 %v5596_v5  ;;  %v287_v23 = vld [vmem:[%s7232_s1 + $0x38] sm:$0xff]  ;;  %v5605_v24 = vld [vmem:[%s7234_s3 + $0x60] sm:$0xff]   ;;  %v5597_v29 = vld [vmem:[%s5905_s12 + $0x8] sm:$0xff]  }
  0x12   : > { %5105 = vmatprep.subr.bf16.mxu0 %v5590_v3  ;;  %467 = vperm.xlu0 %5583, %v288_v14   ;;  %v5595_v25 = vld [vmem:[%s7233_s2] sm:$0xff]   ;;  %v291_v26 = vpack.c.bf16 %v287_v23, %v286_v22  ;;  %v5607_v27 = vld [vmem:[%s7234_s3 + $0x58] sm:$0xff]   ;;  %v5598_v30 = vld [vmem:[%s5905_s12 + $0x10] sm:$0xff]  }
  0x13   : > { %5126 = vmatpush3.bf16.msra.mxu1 %v5600_v15  ;;  %v5602_v28 = vld [vmem:[%s7234_s3 + $0x38] sm:$0xff]   ;;  %v5604_v31 = vld [vmem:[%s7234_s3 + $0x30] sm:$0xff]   ;;  %v5606_v32 = vld [vmem:[%s7234_s3 + $0x28] sm:$0xff]  }
  0x14   : > { %5585 = vset.pattern.permute.xlu1 %v5837_v19  ;;  %5127 = vmatprep.subr.bf16.mxu1 %v5601_v18  ;;  %v5599_v33 = vld [vmem:[%s5905_s12 + $0x18] sm:$0xff]   ;;  %v5608_v34 = vld [vmem:[%s7234_s3 + $0x20] sm:$0xff]   ;;  %v5609_v35 = vld [vmem:[%s7234_s3 + $0x50] sm:$0xff]  }
  0x15   : > { %5106 = vmatpush3.bf16.msra.mxu0 %v5590_v3  ;;  %851 = vperm.xlu1 %5585, %v288_v14   ;;  %v5610_v36 = vld [vmem:[%s7234_s3 + $0x18] sm:$0xff]   ;;  %v5611_v37 = vld [vmem:[%s7234_s3 + $0x48] sm:$0xff]   ;;  %v5612_v38 = vld [vmem:[%s7234_s3 + $0x10] sm:$0xff]  }
  0x16   : > { %5107 = vmatprep.subr.bf16.mxu0 %v5591_v4  ;;  %471 = vperm.xlu0 %5583, %v289_v17   ;;  %v5613_v39 = vld [vmem:[%s7234_s3 + $0x40] sm:$0xff]   ;;  %v5614_v40 = vld [vmem:[%s7234_s3 + $0x8] sm:$0xff]   ;;  %v5999_v41 = vld [vmem:[%s7234_s3 + $0xb8] sm:$0xff]  }
  0x17   : > { %5128 = vmatpush3.bf16.msra.mxu1 %v5601_v18  ;;  %v5616_v42 = vld [vmem:[%s7234_s3] sm:$0xff]   ;;  %v6008_v43 = vld [vmem:[%s7234_s3 + $0xf8] sm:$0xff]  }
  0x18   : > { %5129 = vmatprep.subr.bf16.mxu1 %v5603_v20 }
  0x19   : > { %5108 = vmatpush3.bf16.msra.mxu0 %v5591_v4  ;;  %857 = vperm.xlu1 %5585, %v290_v10  }
  0x1a   : > { %5109 = vmatprep.subr.bf16.mxu0 %v5592_v6  ;;  %5586 = vset.pattern.permute.xlu0 %v5837_v19 }
  0x1b   : > { %854 = vperm.xlu0 %5586, %v289_v17   ;;  %5130 = vmatpush3.bf16.msra.mxu1 %v5603_v20 }
  0x1c   : > { %5131 = vmatprep.subr.bf16.mxu1 %v5605_v24 }
  0x1d   : > { %5110 = vmatpush3.bf16.msra.mxu0 %v5592_v6  ;;  %5587 = vset.pattern.permute.xlu1 %v5836_v2 }
  0x1e   : > { %5111 = vmatprep.subr.bf16.mxu0 %v5593_v16  ;;  %479 = vperm.xlu1 %5587, %v291_v26  }
  0x1f   : > { %860 = vperm.xlu0 %5586, %v291_v26   ;;  %5132 = vmatpush3.bf16.msra.mxu1 %v5605_v24 }
  0x20   : > { %5133 = vmatprep.subr.bf16.mxu1 %v5607_v27 }
  0x21   : > { %5112 = vmatpush3.bf16.msra.mxu0 %v5593_v16 }
  0x22   : > { %5113 = vmatprep.subr.bf16.mxu0 %v5594_v21 }
  0x23   : > { %5134 = vmatpush3.bf16.msra.mxu1 %v5607_v27 }
  0x24   : > { %5135 = vmatprep.subr.bf16.mxu1 %v5609_v35 }
  0x25   : > { %5114 = vmatpush3.bf16.msra.mxu0 %v5594_v21  ;;  %v4354_v21 = vld [vmem:[%s7237_s6] ss:$0 sm:$0xff] }
  0x26   : > { %5115 = vmatprep.subr.bf16.mxu0 %v5595_v25 }
  0x27   : > { %5136 = vmatpush3.bf16.msra.mxu1 %v5609_v35 }
  0x28   : > { %5137 = vmatprep.subr.bf16.mxu1 %v5611_v37 }
  0x29   : > { %5116 = vmatpush3.bf16.msra.mxu0 %v5595_v25 }
  0x2a   : > { %5149 = vmatprep.subr.bf16.mxu0 %v5602_v28 }
  0x2b   : > { %5138 = vmatpush3.bf16.msra.mxu1 %v5611_v37 }
  0x2c   : > { %5118 = vmatmul.mubr.bf16.vlgmr.msra.gmra.mxu0 %v5597_v29  ;;  %5139 = vmatprep.subr.bf16.mxu1 %v5613_v39 }
  0x2d   : > { %5121 = vmatprep.mubr.bf16.mxu0 %v5598_v30  ;;  %5150 = vmatpush3.bf16.msra.mxu0 %v5602_v28 }
  0x2e   : > { %5151 = vmatprep.subr.bf16.mxu0 %v5604_v31 }
  0x2f   : > { %5140 = vmatpush3.bf16.msra.mxu1 %v5613_v39 }
  0x30   : > { %5173 = vmatprep.subr.bf16.mxu1 %v5999_v41 }
  0x31   : > { %5152 = vmatpush3.bf16.msra.mxu0 %v5604_v31 }
  0x32   : > { %5153 = vmatprep.subr.bf16.mxu0 %v5606_v32 }
  0x34   : > { %5122 = vmatmul.mubr.bf16.gmra.mxu0 %v5599_v33 }
  0x35   : > { %5154 = vmatpush3.bf16.msra.mxu0 %v5606_v32 }
  0x36   : > { %5155 = vmatprep.subr.bf16.mxu0 %v5608_v34 }
  0x39   : > { %5156 = vmatpush3.bf16.msra.mxu0 %v5608_v34 }
  0x3a   : > { %5157 = vmatprep.subr.bf16.mxu0 %v5610_v36 }
  0x3d   : > { %5158 = vmatpush3.bf16.msra.mxu0 %v5610_v36 }
  0x3e   : > { %5159 = vmatprep.subr.bf16.mxu0 %v5612_v38 }
  0x41   : > { %5160 = vmatpush3.bf16.msra.mxu0 %v5612_v38 }
  0x42   : > { %5161 = vmatprep.subr.bf16.mxu0 %v5614_v40 }
  0x45   : > { %5162 = vmatpush3.bf16.msra.mxu0 %v5614_v40 }
  0x46   : > { %5163 = vmatprep.subr.bf16.mxu0 %v5616_v42 }
  0x49   : > { %5164 = vmatpush3.bf16.msra.mxu0 %v5616_v42 }
  0x4a   : > { %5197 = vmatprep.subr.bf16.mxu0 %v6008_v43 }
  0x8b   : > { %v6011_v45 = vpop.permute.xlu1 %475 }
  0x8c   : > { %v497_v55 = vshrl.u32 %v6011_v45, 16  ;;  %v500_v56 = vshll.u32 %v6011_v45, 16  ;;  %v5627_v45 = vld [vmem:[%s7234_s3 + $0x88] sm:$0xff]  }
  0x8d   : > { %v468_v44 = vpop.permute.xlu0 %467 }
  0x8e   : > { %v482_v48 = vshrl.u32 %v468_v44, 16  ;;  %v485_v49 = vshll.u32 %v468_v44, 16  ;;  %v499_v3 = vrot.slane %v497_v55, 4  ;;  %v502_v4 = vrot.slane %v500_v56, 5 }
  0x90   : > { %v6015_v47 = vpop.permute.xlu1 %851  ;;  %v484_v52 = vrot.slane %v482_v48, 4  ;;  %v487_v53 = vrot.slane %v485_v49, 5  ;;  %v1090_v60 = vrot.slane %v485_v49, 1  ;;  %v6057_v18 = vor.u32 %v502_v4, %v499_v3 }
  0x91   : > { %v6013_v46 = vpop.permute.xlu0 %471  ;;  %v862_v50 = vshrl.u32 %v6015_v47, 16  ;;  %v865_v51 = vshll.u32 %v6015_v47, 16  ;;  %v5633_v47 = vld [vmem:[%s7234_s3 + $0x130] sm:$0xff]  }
  0x92   : > { %v489_v57 = vshrl.u32 %v6013_v46, 16  ;;  %v492_v58 = vshll.u32 %v6013_v46, 16  ;;  %v6033_v1 = vor.u32 %v487_v53, %v484_v52  ;;  %v1106_v9 = vmul.bf16 0, %v1090_v60  ;;  %v5626_v46 = vld [vmem:[%s7234_s3 + $0xd8] sm:$0xff]  }
  0x93   : > { %v864_v61 = vrot.slane %v862_v50, 3  ;;  %v867_v62 = vrot.slane %v865_v51, 4  ;;  %v1091_v11 = vor.u32 %v1090_v60, %v482_v48 }
  0x94   : > { %v6025_v59 = vpop.permute.xlu1 %857  ;;  %7284 = vst [vmem:[#allocation2_spill] sm:$0xff] %v6033_v1  ;;  %v491_v5 = vrot.slane %v489_v57, 4  ;;  %v494_v6 = vrot.slane %v492_v58, 5  ;;  %v518_v10 = vmul.bf16 0, %v6033_v1  ;;  %v6059_v20 = vrot.slane %v492_v58, 1 }
  0x95   : > { %v6047_v12 = vor.u32 %v867_v62, %v864_v61  ;;  %v6065_v24 = vshrl.u32 %v1106_v9, 16  ;;  %v7240_v28 = vshrl.u32 %v6025_v59, 16  ;;  %v880_v37 = vshll.u32 %v6025_v59, 16 }
  0x96   : > { %v6019_v54 = vpop.permute.xlu0 %854  ;;  %v495_v19 = vor.u32 %v494_v6, %v491_v5  ;;  %v690_v25 = vshrl.u32 %v518_v10, 16  ;;  %v693_v26 = vshll.u32 %v518_v10, 16  ;;  %v6069_v27 = vsel %vm1089_vm1, %v1091_v11, %v6059_v20 }
  0x97   : > { %v869_v63 = vshrl.u32 %v6019_v54, 16  ;;  %v7241_v0 = vshll.u32 %v6019_v54, 16  ;;  %7286 = vst [vmem:[#allocation4_spill] sm:$0xff] %v6047_v12  ;;  %v898_v23 = vmul.bf16 0, %v6047_v12  ;;  %7287 = vst [vmem:[#allocation5_spill] sm:$0xff] %v6065_v24  ;;  %v6092_v52 = vrot.slane %v7240_v28, 3 }
  0x98   : > { %7288 = vst [vmem:[#allocation6_spill] sm:$0xff] %v6069_v27  ;;  %v6081_v36 = vsel %vm481_vm0, %v495_v19, %v6057_v18  ;;  %v6086_v42 = vsel %vm481_vm0, %v6033_v1, %v495_v19  ;;  %v692_v61 = vrot.slane %v690_v25, 3  ;;  %v695_v10 = vrot.slane %v693_v26, 4 }
  0x99   : > { %v6041_v7 = vpop.permute.xlu1 %479  ;;  %v871_v14 = vrot.slane %v869_v63, 3  ;;  %v874_v15 = vrot.slane %v7241_v0, 4  ;;  %7289 = vst [vmem:[#allocation7_spill] sm:$0xff] %v6081_v36  ;;  %v921_v39 = vshrl.u32 %v898_v23, 16  ;;  %v924_v40 = vshll.u32 %v898_v23, 16  ;;  %7290 = vst [vmem:[#allocation8_spill] sm:$0xff] %v6086_v42 }
  0x9a   : > { %v505_v16 = vshrl.u32 %v6041_v7, 16  ;;  %v508_v2 = vshll.u32 %v6041_v7, 16  ;;  %v6055_v17 = vpop.permute.xlu0 %860  ;;  %v6137_v0 = vor.u32 %v695_v10, %v692_v61 }
  0x9b   : > { %v6072_v29 = vor.u32 %v874_v15, %v871_v14  ;;  %v7239_v31 = vshrl.u32 %v6055_v17, 16  ;;  %v888_v60 = vshll.u32 %v6055_v17, 16  ;;  %v923_v11 = vrot.slane %v921_v39, 4 }
  0x9c   : > { %v507_v34 = vrot.slane %v505_v16, 4  ;;  %v510_v35 = vrot.slane %v508_v2, 5  ;;  %7297 = vst [vmem:[#allocation15_spill] sm:$0xff] %v6137_v0 }
  0x9d   : > { %v6096_v58 = vrot.slane %v7239_v31, 3  ;;  %v6102_v62 = vsel %vm688_vm2, %v6047_v12, %v6072_v29 }
  0x9e   : > { %7292 = vst [vmem:[#allocation10_spill] sm:$0xff] %v6102_v62  ;;  %v6106_v4 = vor.u32 %v510_v35, %v507_v34 }
  0xa0   : > { %7294 = vst [vmem:[#allocation12_spill] sm:$0xff] %v6106_v4 }
  0xec   : > { %v5119_v13 = vpop.f32.mrf.mxu0 }
  0xed   : > { %v438_v32 = vadd.f32 %v5119_v13, %v4354_v21  ;;  %v926_v13 = vrot.slane %v924_v40, 5 }
  0xee   : > { %v429_v22 = vpop.f32.mrf.mxu0 }
  0xef   : > { %v430_v44 = vadd.f32 %v4354_v21, %v429_v22 }
  0xf0   : > { %v5120_v30 = vpop.f32.mrf.mxu0 }
  0xf1   : > { %v441_v33 = vadd.f32 %v5120_v30, %v4354_v21 }
  0xf2   : > { %v432_v38 = vpop.f32.mrf.mxu0 }
  0xf3   : > { %v6088_v48 = vpack.c.bf16 %v441_v33, %v438_v32  ;;  %v433_v49 = vadd.f32 %v4354_v21, %v432_v38  ;;  %v5617_v38 = vld [vmem:[%s7234_s3 + $0xb0] sm:$0xff]  }
  0xf4   : > { %v5123_v53 = vpop.f32.mrf.mxu0 }
  0xf5   : > { %7291 = vst [vmem:[#allocation9_spill] sm:$0xff] %v6088_v48  ;;  %v6104_v3 = vpack.c.bf16 %v433_v49, %v430_v44  ;;  %v520_v5 = vmul.bf16 %v6081_v36, %v6088_v48  ;;  %v454_v6 = vadd.f32 %v5123_v53, %v4354_v21  ;;  %v565_v15 = vrot.slane %v6088_v48, 4 }
  0xf6   : > { %v445_v9 = vpop.f32.mrf.mxu0 }
  0xf7   : > { %7293 = vst [vmem:[#allocation11_spill] sm:$0xff] %v6104_v3  ;;  %v563_v14 = vrot.slane %v6104_v3, 4  ;;  %v519_v19 = vmul.bf16 %v6086_v42, %v6104_v3  ;;  %v707_v22 = vshrl.u32 %v520_v5, 16  ;;  %v446_v23 = vadd.f32 %v4354_v21, %v445_v9 }
  0xf8   : > { %v5124_v25 = vpop.f32.mrf.mxu0  ;;  %v710_v30 = vshll.u32 %v520_v5, 16  ;;  %v899_v32 = vmul.bf16 %v6102_v62, %v6104_v3  ;;  %v6118_v33 = vmul.bf16 %v6069_v27, %v6104_v3 }
  0xf9   : > { %v457_v26 = vadd.f32 %v5124_v25, %v4354_v21  ;;  %v564_v34 = vsel %vm561_vm3, %v6044_v8, %v563_v14  ;;  %v6123_v35 = vsel %vm561_vm3, %v563_v14, %v565_v15  ;;  %v698_v39 = vshrl.u32 %v519_v19, 16 }
  0xfa   : > { %v448_v40 = vpop.f32.mrf.mxu0  ;;  %5141 = vmatprep.mubr.bf16.mxu1 %v564_v34  ;;  %v701_v44 = vshll.u32 %v519_v19, 16  ;;  %v709_v49 = vrot.slane %v707_v22, 3  ;;  %v712_v53 = vrot.slane %v710_v30, 4  ;;  %v929_v5 = vshrl.u32 %v899_v32, 16 }
  0xfb   : > { %v6128_v9 = vpack.c.bf16 %v457_v26, %v454_v6  ;;  %v449_v25 = vadd.f32 %v4354_v21, %v448_v40  ;;  %5142 = vmatmul.mubr.bf16.vlgmr.msra.gmra.mxu1 %v6123_v35  ;;  %v700_v31 = vrot.slane %v698_v39, 3  ;;  %v932_v28 = vshll.u32 %v899_v32, 16  ;;  %v5619_v21 = vld [vmem:[%s7234_s3 + $0xa8] sm:$0xff]  }
  0xfc   : > { %v6134_v14 = vsel %vm481_vm0, %v6057_v18, %v6106_v4  ;;  %5174 = vmatpush3.bf16.msra.mxu1 %v5999_v41  ;;  %v703_v19 = vrot.slane %v701_v44, 4  ;;  %v931_v22 = vrot.slane %v929_v5, 4  ;;  %v713_v34 = vor.u32 %v712_v53, %v709_v49  ;;  %v5621_v5 = vld [vmem:[%s7234_s3 + $0xa0] sm:$0xff]  }
  0xfd   : > { %7295 = vst [vmem:[#allocation13_spill] sm:$0xff] %v6128_v9  ;;  %7296 = vst [vmem:[#allocation14_spill] sm:$0xff] %v6134_v14  ;;  %v6139_v30 = vpack.c.bf16 %v449_v25, %v446_v23  ;;  %5175 = vmatprep.subr.bf16.mxu1 %v5617_v38  ;;  %v569_v6 = vrot.slane %v6128_v9, 4  ;;  %v934_v32 = vrot.slane %v932_v28, 5  ;;  %v522_v18 = vmul.bf16 %v6106_v4, %v6128_v9 }
  0xfe   : > { %v704_v26 = vor.u32 %v703_v19, %v700_v31  ;;  %v6147_v41 = vor.u32 %v926_v13, %v923_v11  ;;  %v1134_v61 = vshrl.u32 %v6118_v33, 16  ;;  %v890_v28 = vrot.slane %v888_v60, 4 }
  0xff   : > { %7298 = vst [vmem:[#allocation16_spill] sm:$0xff] %v6139_v30  ;;  %v567_v10 = vrot.slane %v6139_v30, 4  ;;  %v6151_v23 = vor.u32 %v934_v32, %v931_v22  ;;  %v521_v39 = vmul.bf16 %v6134_v14, %v6139_v30  ;;  %v725_v40 = vshrl.u32 %v522_v18, 16 }
 0x100   : > { %7299 = vst [vmem:[#allocation17_spill] sm:$0xff] %v6147_v41  ;;  %5176 = vmatpush3.bf16.msra.mxu1 %v5617_v38  ;;  %v705_v31 = vsel %vm688_vm2, %v6137_v0, %v704_v26  ;;  %v714_v11 = vsel %vm688_vm2, %v704_v26, %v713_v34  ;;  %v728_v13 = vshll.u32 %v522_v18, 16  ;;  %v882_v44 = vrot.slane %v880_v37, 4  ;;  %v5620_v38 = vld [vmem:[%s7234_s3 + $0xf0] sm:$0xff]  }
 0x101   : > { %5165 = vmatprep.mubr.bf16.mxu0 %v705_v31  ;;  %v6163_v49 = vsel %vm561_vm3, %v565_v15, %v567_v10  ;;  %5177 = vmatprep.subr.bf16.mxu1 %v5619_v21  ;;  %v6168_v53 = vsel %vm561_vm3, %v567_v10, %v569_v6  ;;  %v716_v25 = vshrl.u32 %v521_v39, 16  ;;  %v719_v15 = vshll.u32 %v521_v39, 16 }
 0x102   : > { %5166 = vmatmul.mubr.bf16.vlgmr.msra.gmra.mxu0 %v714_v11  ;;  %5145 = vmatprep.mubr.bf16.mxu1 %v6163_v49  ;;  %v727_v19 = vrot.slane %v725_v40, 3  ;;  %v730_v22 = vrot.slane %v728_v13, 4  ;;  %v6177_v32 = vrot.slane %v1134_v61, 7  ;;  %v936_v18 = vsel %vm481_vm0, %v6147_v41, %v6151_v23  ;;  %v5622_v61 = vld [vmem:[%s7234_s3 + $0xe8] sm:$0xff]   ;;  %v5623_v11 = vld [vmem:[%s7234_s3 + $0x98] sm:$0xff]  }
 0x103   : > { %5198 = vmatpush3.bf16.msra.mxu0 %v6008_v43  ;;  %5146 = vmatmul.mubr.bf16.gmra.mxu1 %v6168_v53  ;;  %v718_v26 = vrot.slane %v716_v25, 3  ;;  %v6185_v10 = vor.u32 %v890_v28, %v6096_v58  ;;  %v721_v31 = vrot.slane %v719_v15, 4  ;;  %v1137_v43 = vshll.u32 %v6118_v33, 16 }
 0x104   : > { %5178 = vmatpush3.bf16.msra.mxu1 %v5619_v21  ;;  %5189 = vmatprep.mubr.bf16.mxu1 %v936_v18  ;;  %v731_v39 = vor.u32 %v730_v22, %v727_v19  ;;  %v883_v40 = vor.u32 %v882_v44, %v6092_v52  ;;  %v7243_v21 = vrot.slane %v6065_v24, 7  ;;  %v5624_v44 = vld [vmem:[%s7234_s3 + $0xe0] sm:$0xff]   ;;  %v1095_v25 = vrot.slane %v500_v56, 1  ;;  %v5628_v18 = vld [vmem:[%s7234_s3 + $0xd0] sm:$0xff]  }
 0x105   : > { %7300 = vst [vmem:[#allocation18_spill] sm:$0xff] %v6185_v10  ;;  %5199 = vmatprep.subr.bf16.mxu0 %v5620_v38  ;;  %5179 = vmatprep.subr.bf16.mxu1 %v5621_v5  ;;  %v722_v58 = vor.u32 %v721_v31, %v718_v26  ;;  %v1139_v28 = vor.u32 %v1137_v43, %v6177_v32  ;;  %v1428_v43 = vrot.slane %v862_v50, 7  ;;  %v6260_v50 = vrot.slane %v869_v63, 7 }
 0x106   : > { %v6199_v13 = vsel %vm688_vm2, %v883_v40, %v6185_v10  ;;  %v1097_v15 = vor.u32 %v1095_v25, %v497_v55 }
 0x107   : > { %5200 = vmatpush3.bf16.msra.mxu0 %v5620_v38  ;;  %7301 = vst [vmem:[#allocation19_spill] sm:$0xff] %v6199_v13  ;;  %v723_v33 = vsel %vm688_vm2, %v713_v34, %v722_v58  ;;  %v732_v52 = vsel %vm688_vm2, %v722_v58, %v731_v39  ;;  %v6210_v38 = vsel %vm688_vm2, %v6072_v29, %v883_v40  ;;  %v5625_v34 = vld [vmem:[%s7234_s3 + $0x90] sm:$0xff]   ;;  %v1098_v29 = vrot.slane %v508_v2, 1 }
 0x108   : > { %5180 = vmatpush3.bf16.msra.mxu1 %v5621_v5  ;;  %5201 = vmatprep.subr.bf16.mxu0 %v5622_v61  ;;  %7302 = vst [vmem:[#allocation20_spill] sm:$0xff] %v6210_v38  ;;  %v1094_v5 = vor.u32 %v6059_v20, %v489_v57  ;;  %v1140_v56 = vsel %vm1128_vm4, %v7243_v21, %v1139_v28 }
 0x109   : > { %5169 = vmatprep.mubr.bf16.mxu0 %v723_v33  ;;  %5181 = vmatprep.subr.bf16.mxu1 %v5623_v11  ;;  %v901_v19 = vmul.bf16 %v6199_v13, %v6139_v30  ;;  %v900_v57 = vmul.bf16 %v6210_v38, %v6088_v48  ;;  %v6239_v2 = vsel %vm1089_vm1, %v1097_v15, %v1098_v29  ;;  %v5630_v33 = vld [vmem:[%s7234_s3 + $0xc8] sm:$0xff]  }
 0x10a   : > { %5170 = vmatmul.mubr.bf16.gmra.mxu0 %v732_v52  ;;  %v6236_v55 = vsel %vm1089_vm1, %v1094_v5, %v1095_v25  ;;  %7304 = vst [vmem:[#allocation22_spill] sm:$0xff] %v6239_v2  ;;  %v1109_v40 = vmul.bf16 %v6239_v2, %v6139_v30  ;;  %v902_v28 = vmul.bf16 %v6185_v10, %v6128_v9 }
 0x10b   : > { %5202 = vmatpush3.bf16.msra.mxu0 %v5622_v61  ;;  %5213 = vmatprep.mubr.bf16.mxu0 %v1140_v56  ;;  %7303 = vst [vmem:[#allocation21_spill] sm:$0xff] %v6236_v55  ;;  %v947_v20 = vshrl.u32 %v901_v19, 16  ;;  %v950_v22 = vshll.u32 %v901_v19, 16  ;;  %v938_v26 = vshrl.u32 %v900_v57, 16  ;;  %v941_v31 = vshll.u32 %v900_v57, 16  ;;  %v5629_v61 = vld [vmem:[%s7234_s3 + $0x80] sm:$0xff]  }
 0x10c   : > { %5182 = vmatpush3.bf16.msra.mxu1 %v5623_v11  ;;  %5203 = vmatprep.subr.bf16.mxu0 %v5624_v44  ;;  %v1108_v39 = vmul.bf16 %v6236_v55, %v6088_v48  ;;  %v6264_v25 = vor.u32 %v1098_v29, %v505_v16  ;;  %v6271_v56 = vor.u32 %v1428_v43, %v865_v51  ;;  %v1150_v15 = vshrl.u32 %v1109_v40, 16  ;;  %v5632_v57 = vld [vmem:[%s7234_s3 + $0xc0] sm:$0xff]  }
 0x10d   : > { %5183 = vmatprep.subr.bf16.mxu1 %v5625_v34  ;;  %v949_v11 = vrot.slane %v947_v20, 4  ;;  %v952_v58 = vrot.slane %v950_v22, 5  ;;  %v940_v52 = vrot.slane %v938_v26, 4  ;;  %v959_v63 = vshll.u32 %v902_v28, 16 }
 0x10e   : > { %7305 = vst [vmem:[#allocation23_spill] sm:$0xff] %v6264_v25  ;;  %v1142_v5 = vshrl.u32 %v1108_v39, 16  ;;  %7306 = vst [vmem:[#allocation24_spill] sm:$0xff] %v6271_v56  ;;  %v7307_v16 = vshll.u32 %v6019_v54, 16  ;;  %v1152_v22 = vrot.slane %v1150_v15, 7  ;;  %v1153_v54 = vshll.u32 %v1109_v40, 16 }
 0x10f   : > { %5204 = vmatpush3.bf16.msra.mxu0 %v5624_v44  ;;  %v943_v44 = vrot.slane %v941_v31, 5  ;;  %v953_v19 = vor.u32 %v952_v58, %v949_v11  ;;  %v1145_v31 = vshll.u32 %v1108_v39, 16  ;;  %v961_v11 = vrot.slane %v959_v63, 5  ;;  %v5634_v58 = vld [vmem:[%s7234_s3 + $0x178] sm:$0xff]  }
 0x110   : > { %5184 = vmatpush3.bf16.msra.mxu1 %v5625_v34  ;;  %5205 = vmatprep.subr.bf16.mxu0 %v5626_v46  ;;  %v5631_v34 = vld [vmem:[%s7234_s3 + $0x138] sm:$0xff]   ;;  %v1431_v29 = vor.u32 %v6260_v50, %v7307_v16  ;;  %v1144_v51 = vrot.slane %v1142_v5, 7  ;;  %v1155_v39 = vor.u32 %v1153_v54, %v1152_v22  ;;  %v5640_v54 = vld [vmem:[%s7234_s3 + $0x160] sm:$0xff]  }
 0x111   : > { %5185 = vmatprep.subr.bf16.mxu1 %v5627_v45  ;;  %v944_v7 = vor.u32 %v943_v44, %v940_v52 }
 0x112   : > { %v1147_v40 = vor.u32 %v1145_v31, %v1144_v51  ;;  %v1156_v63 = vsel %vm1128_vm4, %v1144_v51, %v1155_v39  ;;  %v5644_v39 = vld [vmem:[%s7234_s3 + $0x150] sm:$0xff]  }
 0x113   : > { %5206 = vmatpush3.bf16.msra.mxu0 %v5626_v46  ;;  %v956_v46 = vshrl.u32 %v902_v28, 16  ;;  %v945_v20 = vsel %vm481_vm0, %v6151_v23, %v944_v7  ;;  %v954_v26 = vsel %vm481_vm0, %v944_v7, %v953_v19  ;;  %v6293_v23 = vsel %vm1128_vm4, %v1428_v43, %v1431_v29  ;;  %v5635_v28 = vld [vmem:[%s7234_s3 + $0x128] sm:$0xff]   ;;  %v5637_v7 = vld [vmem:[%s7234_s3 + $0x120] sm:$0xff]  }
 0x114   : > { %5186 = vmatpush3.bf16.msra.mxu1 %v5627_v45  ;;  %5207 = vmatprep.subr.bf16.mxu0 %v5628_v18  ;;  %v1110_v45 = vmul.bf16 %v6264_v25, %v6128_v9  ;;  %7308 = vst [vmem:[#allocation25_spill] sm:$0xff] %v6293_v23  ;;  %v6303_v43 = vmul.bf16 %v6293_v23, %v6088_v48 }
 0x115   : > { %5187 = vmatprep.subr.bf16.mxu1 %v5629_v61  ;;  %v1148_v5 = vsel %vm1128_vm4, %v6177_v32, %v1147_v40  ;;  %v5638_v32 = vld [vmem:[%s7234_s3 + $0x168] sm:$0xff]  }
 0x117   : > { %5208 = vmatpush3.bf16.msra.mxu0 %v5628_v18  ;;  %v1444_v18 = vmul.bf16 %v6271_v56, %v6104_v3 }
 0x118   : > { %5188 = vmatpush3.bf16.msra.mxu1 %v5629_v61  ;;  %5209 = vmatprep.subr.bf16.mxu0 %v5630_v33  ;;  %v958_v61 = vrot.slane %v956_v46, 4  ;;  %v1161_v46 = vshll.u32 %v1110_v45, 16 }
 0x119   : > { %5221 = vmatprep.subr.bf16.mxu1 %v5631_v34  ;;  %v1469_v52 = vshll.u32 %v1444_v18, 16 }
 0x11a   : > { %v962_v44 = vor.u32 %v961_v11, %v958_v61  ;;  %v5641_v11 = vld [vmem:[%s7234_s3 + $0x110] sm:$0xff]  }
 0x11b   : > { %5210 = vmatpush3.bf16.msra.mxu0 %v5630_v33  ;;  %5190 = vmatmul.mubr.bf16.vlgmr.msra.gmra.mxu1 %v945_v20  ;;  %v1158_v33 = vshrl.u32 %v1110_v45, 16  ;;  %v1471_v16 = vrot.slane %v1469_v52, 1  ;;  %v5639_v20 = vld [vmem:[%s7234_s3 + $0x118] sm:$0xff]  }
 0x11c   : > { %5193 = vmatprep.mubr.bf16.mxu1 %v954_v26  ;;  %5222 = vmatpush3.bf16.msra.mxu1 %v5631_v34  ;;  %v5636_v34 = vld [vmem:[%s7234_s3 + $0x170] sm:$0xff]   ;;  %v963_v29 = vsel %vm481_vm0, %v953_v19, %v962_v44  ;;  %v5646_v44 = vld [vmem:[%s7234_s3 + $0x148] sm:$0xff]  }
 0x11d   : > { %5211 = vmatprep.subr.bf16.mxu0 %v5632_v57  ;;  %5223 = vmatprep.subr.bf16.mxu1 %v5633_v47  ;;  %v1160_v15 = vrot.slane %v1158_v33, 7  ;;  %v5643_v33 = vld [vmem:[%s7234_s3 + $0x108] sm:$0xff]  }
 0x11f   : > { %5212 = vmatpush3.bf16.msra.mxu0 %v5632_v57  ;;  %v1467_v57 = vshrl.u32 %v1444_v18, 16  ;;  %v1163_v51 = vor.u32 %v1161_v46, %v1160_v15  ;;  %v7309_v18 = vshrl.u32 %v6025_v59, 16  ;;  %v5648_v15 = vld [vmem:[%s7234_s3 + $0x140] sm:$0xff]  }
 0x120   : > { %5224 = vmatpush3.bf16.msra.mxu1 %v5633_v47  ;;  %5245 = vmatprep.subr.bf16.mxu0 %v5634_v58  ;;  %v1474_v47 = vshll.u32 %v6303_v43, 16 }
 0x121   : > { %5225 = vmatprep.subr.bf16.mxu1 %v5635_v28  ;;  %v1472_v45 = vor.u32 %v1471_v16, %v1467_v57  ;;  %v1433_v26 = vrot.slane %v7309_v18, 7  ;;  %v1164_v31 = vsel %vm1128_vm4, %v1152_v22, %v1163_v51  ;;  %v7310_v22 = vshrl.u32 %v6055_v17, 16 }
 0x122   : > { %5214 = vmatmul.mubr.bf16.vlgmr.msra.gmra.mxu0 %v1148_v5  ;;  %v6320_v19 = vrot.slane %v1474_v47, 1  ;;  %v1628_v5 = vmul.bf16 %v6086_v42, %v6088_v48 }
 0x123   : > { %5217 = vmatprep.mubr.bf16.mxu0 %v1156_v63  ;;  %5246 = vmatpush3.bf16.msra.mxu0 %v5634_v58  ;;  %v5642_v58 = vld [vmem:[%s7234_s3 + $0x158] sm:$0xff]   ;;  %v1434_v40 = vor.u32 %v1433_v26, %v880_v37  ;;  %v5645_v37 = vld [vmem:[%s7234_s3 + $0x100] sm:$0xff]  }
 0x124   : > { %5194 = vmatmul.mubr.bf16.gmra.mxu1 %v963_v29  ;;  %5247 = vmatprep.subr.bf16.mxu0 %v5636_v34  ;;  %v1477_v61 = vsel %vm1089_vm1, %v1472_v45, %v6320_v19  ;;  %v5649_v29 = vld [vmem:[%s7234_s3 + $0x1b0] sm:$0xff]   ;;  %v1658_v57 = vshrl.u32 %v1628_v5, 16  ;;  %v1661_v47 = vshll.u32 %v1628_v5, 16  ;;  %v5650_v45 = vld [vmem:[%s7234_s3 + $0x1f8] sm:$0xff]  }
 0x125   : > { %5226 = vmatpush3.bf16.msra.mxu1 %v5635_v28  ;;  %5237 = vmatprep.mubr.bf16.mxu1 %v6104_v3  ;;  %v1436_v28 = vrot.slane %v7310_v22, 7  ;;  %v6348_v52 = vsel %vm1128_vm4, %v6260_v50, %v1434_v40  ;;  %v1627_v50 = vmul.bf16 %v6033_v1, %v6104_v3 }
 0x126   : > { %5227 = vmatprep.subr.bf16.mxu1 %v5637_v7  ;;  %7311 = vst [vmem:[#allocation26_spill] sm:$0xff] %v6348_v52  ;;  %v1663_v40 = vrot.slane %v1661_v47, 4  ;;  %v5659_v47 = vld [vmem:[%s7234_s3 + $0x188] sm:$0xff]  }
 0x127   : > { %5248 = vmatpush3.bf16.msra.mxu0 %v5636_v34  ;;  %v1437_v59 = vor.u32 %v1436_v28, %v888_v60  ;;  %v1446_v34 = vmul.bf16 %v6348_v52, %v6139_v30  ;;  %v5647_v60 = vld [vmem:[%s7234_s3 + $0x1b8] sm:$0xff]   ;;  %v1653_v16 = vshll.u32 %v1627_v50, 16 }
 0x128   : > { %5249 = vmatprep.subr.bf16.mxu0 %v5638_v32 }
 0x129   : > { %5228 = vmatpush3.bf16.msra.mxu1 %v5637_v7  ;;  %v6363_v17 = vsel %vm1128_vm4, %v1433_v26, %v1437_v59  ;;  %v1482_v46 = vshll.u32 %v1446_v34, 16  ;;  %v1650_v7 = vshrl.u32 %v1627_v50, 16  ;;  %v1655_v18 = vrot.slane %v1653_v16, 4  ;;  %v5657_v16 = vld [vmem:[%s7234_s3 + $0x190] sm:$0xff]  }
 0x12a   : > { %5218 = vmatmul.mubr.bf16.gmra.mxu0 %v1164_v31  ;;  %5229 = vmatprep.subr.bf16.mxu1 %v5639_v20  ;;  %7312 = vst [vmem:[#allocation27_spill] sm:$0xff] %v6363_v17  ;;  %v1447_v63 = vmul.bf16 %v6363_v17, %v6128_v9  ;;  %v1448_v26 = vmul.bf16 0, %v1436_v28  ;;  %v1478_v31 = vshrl.u32 %v6303_v43, 16  ;;  %v5652_v43 = vld [vmem:[%s7234_s3 + $0x1f0] sm:$0xff]  }
 0x12b   : > { %5250 = vmatpush3.bf16.msra.mxu0 %v5638_v32  ;;  %5261 = vmatprep.mubr.bf16.mxu0 %v1477_v61  ;;  %v1486_v32 = vshrl.u32 %v1446_v34, 16  ;;  %v1484_v51 = vrot.slane %v1482_v46, 1  ;;  %v5655_v46 = vld [vmem:[%s7234_s3 + $0x198] sm:$0xff]  }
 0x12c   : > { %5251 = vmatprep.subr.bf16.mxu0 %v5640_v54  ;;  %v1480_v22 = vor.u32 %v1478_v31, %v6320_v19  ;;  %v6391_v28 = vshll.u32 %v1448_v26, 16  ;;  %v5653_v19 = vld [vmem:[%s7234_s3 + $0x1a0] sm:$0xff]  }
 0x12d   : > { %5230 = vmatpush3.bf16.msra.mxu1 %v5639_v20  ;;  %v1490_v20 = vshll.u32 %v1447_v63, 16  ;;  %v1488_v61 = vor.u32 %v1486_v32, %v1484_v51  ;;  %v5658_v32 = vld [vmem:[%s7234_s3 + $0x1d8] sm:$0xff]  }
 0x12e   : > { %5231 = vmatprep.subr.bf16.mxu1 %v5641_v11  ;;  %7313 = vst [vmem:[#allocation28_spill] sm:$0xff] %v6391_v28  ;;  %v1485_v59 = vsel %vm1089_vm1, %v1480_v22, %v1484_v51  ;;  %v1958_v22 = vmul.bf16 %v6047_v12, %v6104_v3 }
 0x12f   : > { %5252 = vmatpush3.bf16.msra.mxu0 %v5640_v54  ;;  %v1652_v54 = vrot.slane %v1650_v7, 3 }
 0x130   : > { %5253 = vmatprep.subr.bf16.mxu0 %v5642_v58 }
 0x131   : > { %5232 = vmatpush3.bf16.msra.mxu1 %v5641_v11  ;;  %v5651_v11 = vld [vmem:[%s7234_s3 + $0x1a8] sm:$0xff]  }
 0x132   : > { %5233 = vmatprep.subr.bf16.mxu1 %v5643_v33 }
 0x133   : > { %5254 = vmatpush3.bf16.msra.mxu0 %v5642_v58  ;;  %v1660_v58 = vrot.slane %v1658_v57, 3  ;;  %v1630_v57 = vmul.bf16 %v6134_v14, %v6128_v9 }
 0x134   : > { %5255 = vmatprep.subr.bf16.mxu0 %v5644_v39 }
 0x135   : > { %5234 = vmatpush3.bf16.msra.mxu1 %v5643_v33  ;;  %v1492_v33 = vrot.slane %v1490_v20, 1  ;;  %v6395_v34 = vor.u32 %v1663_v40, %v1660_v58  ;;  %v1676_v20 = vshrl.u32 %v1630_v57, 16 }
 0x136   : > { %5235 = vmatprep.subr.bf16.mxu1 %v5645_v37 }
 0x137   : > { %5256 = vmatpush3.bf16.msra.mxu0 %v5644_v39  ;;  %v1656_v39 = vor.u32 %v1655_v18, %v1652_v54  ;;  %v1679_v54 = vshll.u32 %v1630_v57, 16  ;;  %v5661_v18 = vld [vmem:[%s7234_s3 + $0x180] sm:$0xff]   ;;  %v1678_v58 = vrot.slane %v1676_v20, 3 }
 0x138   : > { %5257 = vmatprep.subr.bf16.mxu0 %v5646_v44 }
 0x139   : > { %5236 = vmatpush3.bf16.msra.mxu1 %v5645_v37  ;;  %v1494_v37 = vshrl.u32 %v1447_v63, 16  ;;  %v1665_v50 = vsel %vm688_vm2, %v1656_v39, %v6395_v34  ;;  %v5656_v63 = vld [vmem:[%s7234_s3 + $0x1e0] sm:$0xff]   ;;  %v1681_v40 = vrot.slane %v1679_v54, 4  ;;  %v1959_v39 = vmul.bf16 %v6102_v62, %v6088_v48 }
 0x13a   : > { %5269 = vmatprep.subr.bf16.mxu1 %v5647_v60 }
 0x13b   : > { %5258 = vmatpush3.bf16.msra.mxu0 %v5646_v44  ;;  %v1493_v44 = vsel %vm1089_vm1, %v1488_v61, %v1492_v33  ;;  %v1496_v5 = vor.u32 %v1494_v37, %v1492_v33  ;;  %v1631_v61 = vmul.bf16 0, %v6106_v4  ;;  %v5663_v33 = vld [vmem:[%s7234_s3 + $0x238] sm:$0xff]  }
 0x13c   : > { %5238 = vmatmul.mubr.bf16.vlgmr.msra.gmra.mxu1 %v6088_v48  ;;  %5259 = vmatprep.subr.bf16.mxu0 %v5648_v15 }
 0x13d   : > { %5241 = vmatprep.mubr.bf16.mxu1 %v6139_v30  ;;  %5270 = vmatpush3.bf16.msra.mxu1 %v5647_v60  ;;  %v5654_v60 = vld [vmem:[%s7234_s3 + $0x1e8] sm:$0xff]   ;;  %v1688_v37 = vshll.u32 %v1631_v61, 16 }
 0x13e   : > { %5271 = vmatprep.subr.bf16.mxu1 %v5649_v29 }
 0x13f   : > { %5260 = vmatpush3.bf16.msra.mxu0 %v5648_v15  ;;  %v7242_v15 = vrot.slane %v6391_v28, 1 }
 0x140   : > { %5293 = vmatprep.subr.bf16.mxu0 %v5650_v45 }
 0x141   : > { %5272 = vmatpush3.bf16.msra.mxu1 %v5649_v29  ;;  %v1501_v7 = vsel %vm1089_vm1, %v1496_v5, %v7242_v15  ;;  %v1629_v29 = vmul.bf16 %v6081_v36, %v6139_v30  ;;  %v5665_v5 = vld [vmem:[%s7234_s3 + $0x230] sm:$0xff]  }
 0x142   : > { %5262 = vmatmul.mubr.bf16.vlgmr.msra.gmra.mxu0 %v1485_v59  ;;  %5273 = vmatprep.subr.bf16.mxu1 %v5651_v11  ;;  %v1685_v59 = vshrl.u32 %v1631_v61, 16  ;;  %v1835_v61 = vsel %vm561_vm3, %v569_v6, %v6044_v8 }
 0x143   : > { %5265 = vmatprep.mubr.bf16.mxu0 %v1493_v44  ;;  %5294 = vmatpush3.bf16.msra.mxu0 %v5650_v45  ;;  %v1667_v51 = vshrl.u32 %v1629_v29, 16  ;;  %v5660_v45 = vld [vmem:[%s7234_s3 + $0x1d0] sm:$0xff]   ;;  %v1682_v44 = vor.u32 %v1681_v40, %v1678_v58  ;;  %v1961_v58 = vmul.bf16 %v6199_v13, %v6128_v9  ;;  %v5670_v40 = vld [vmem:[%s7234_s3 + $0x208] sm:$0xff]  }
 0x144   : > { %5242 = vmatmul.mubr.bf16.gmra.mxu1 %v6128_v9  ;;  %5295 = vmatprep.subr.bf16.mxu0 %v5652_v43 }
 0x145   : > { %5274 = vmatpush3.bf16.msra.mxu1 %v5651_v11  ;;  %5285 = vmatprep.mubr.bf16.mxu1 %v1665_v50  ;;  %v1669_v26 = vrot.slane %v1667_v51, 3  ;;  %v5662_v11 = vld [vmem:[%s7234_s3 + $0x1c8] sm:$0xff]   ;;  %v1981_v50 = vshrl.u32 %v1958_v22, 16 }
 0x146   : > { %5275 = vmatprep.subr.bf16.mxu1 %v5653_v19  ;;  %v5666_v51 = vld [vmem:[%s7234_s3 + $0x228] sm:$0xff]  }
 0x147   : > { %5296 = vmatpush3.bf16.msra.mxu0 %v5652_v43  ;;  %v1983_v57 = vrot.slane %v1981_v50, 4 }
 0x148   : > { %5297 = vmatprep.subr.bf16.mxu0 %v5654_v60 }
 0x149   : > { %5276 = vmatpush3.bf16.msra.mxu1 %v5653_v19  ;;  %v5664_v19 = vld [vmem:[%s7234_s3 + $0x1c0] sm:$0xff]  }
 0x14a   : > { %5266 = vmatmul.mubr.bf16.gmra.mxu0 %v1501_v7  ;;  %5277 = vmatprep.subr.bf16.mxu1 %v5655_v46 }
 0x14b   : > { %5298 = vmatpush3.bf16.msra.mxu0 %v5654_v60  ;;  %5309 = vmatprep.mubr.bf16.mxu0 %v6123_v35  ;;  %v1670_v35 = vshll.u32 %v1629_v29, 16  ;;  %v1984_v60 = vshll.u32 %v1958_v22, 16  ;;  %v1690_v29 = vrot.slane %v1688_v37, 4 }
 0x14c   : > { %5299 = vmatprep.subr.bf16.mxu0 %v5656_v63 }
 0x14d   : > { %5278 = vmatpush3.bf16.msra.mxu1 %v5655_v46  ;;  %v1672_v31 = vrot.slane %v1670_v35, 4  ;;  %v1989_v46 = vshrl.u32 %v1959_v39, 16 }
 0x14e   : > { %5279 = vmatprep.subr.bf16.mxu1 %v5657_v16 }
 0x14f   : > { %5300 = vmatpush3.bf16.msra.mxu0 %v5656_v63  ;;  %v1673_v43 = vor.u32 %v1672_v31, %v1669_v26  ;;  %v1992_v63 = vshll.u32 %v1959_v39, 16  ;;  %v1991_v35 = vrot.slane %v1989_v46, 4  ;;  %v2010_v39 = vshll.u32 %v1961_v58, 16 }
 0x150   : > { %5301 = vmatprep.subr.bf16.mxu0 %v5658_v32 }
 0x151   : > { %5280 = vmatpush3.bf16.msra.mxu1 %v5657_v16  ;;  %v1674_v7 = vsel %vm688_vm2, %v6395_v34, %v1673_v43  ;;  %v1687_v16 = vrot.slane %v1685_v59, 3  ;;  %v2012_v50 = vrot.slane %v2010_v39, 5 }
 0x152   : > { %5281 = vmatprep.subr.bf16.mxu1 %v5659_v47 }
 0x153   : > { %5302 = vmatpush3.bf16.msra.mxu0 %v5658_v32  ;;  %v1683_v32 = vsel %vm688_vm2, %v1673_v43, %v1682_v44  ;;  %v6459_v20 = vor.u32 %v1690_v29, %v1687_v16  ;;  %v5671_v43 = vld [vmem:[%s7234_s3 + $0x200] sm:$0xff]  }
 0x154   : > { %5303 = vmatprep.subr.bf16.mxu0 %v5660_v45 }
 0x155   : > { %5282 = vmatpush3.bf16.msra.mxu1 %v5659_v47  ;;  %v1986_v47 = vrot.slane %v1984_v60, 5  ;;  %7314 = vst [vmem:[#allocation29_spill] sm:$0xff] %v6459_v20  ;;  %v1692_v26 = vsel %vm688_vm2, %v1682_v44, %v6459_v20  ;;  %v1962_v44 = vmul.bf16 0, %v6185_v10 }
 0x156   : > { %5283 = vmatprep.subr.bf16.mxu1 %v5661_v18 }
 0x157   : > { %5304 = vmatpush3.bf16.msra.mxu0 %v5660_v45  ;;  %v1994_v45 = vrot.slane %v1992_v63, 5  ;;  %v1987_v34 = vor.u32 %v1986_v47, %v1983_v57  ;;  %v2019_v46 = vshll.u32 %v1962_v44, 16 }
 0x158   : > { %5305 = vmatprep.subr.bf16.mxu0 %v5662_v11 }
 0x159   : > { %5284 = vmatpush3.bf16.msra.mxu1 %v5661_v18  ;;  %v1995_v54 = vor.u32 %v1994_v45, %v1991_v35  ;;  %v5667_v18 = vld [vmem:[%s7234_s3 + $0x220] sm:$0xff]   ;;  %v2021_v29 = vrot.slane %v2019_v46, 5 }
 0x15a   : > { %5317 = vmatprep.subr.bf16.mxu1 %v5663_v33 }
 0x15b   : > { %5306 = vmatpush3.bf16.msra.mxu0 %v5662_v11  ;;  %v1996_v31 = vsel %vm481_vm0, %v1987_v34, %v1995_v54  ;;  %v1960_v11 = vmul.bf16 %v6210_v38, %v6139_v30 }
 0x15c   : > { %5286 = vmatmul.mubr.bf16.vlgmr.msra.gmra.mxu1 %v1674_v7  ;;  %5307 = vmatprep.subr.bf16.mxu0 %v5664_v19 }
 0x15d   : > { %5289 = vmatprep.mubr.bf16.mxu1 %v1683_v32  ;;  %5318 = vmatpush3.bf16.msra.mxu1 %v5663_v33  ;;  %v1998_v22 = vshrl.u32 %v1960_v11, 16  ;;  %v2001_v6 = vshll.u32 %v1960_v11, 16  ;;  %v2007_v33 = vshrl.u32 %v1961_v58, 16 }
 0x15e   : > { %5319 = vmatprep.subr.bf16.mxu1 %v5665_v5 }
 0x15f   : > { %5308 = vmatpush3.bf16.msra.mxu0 %v5664_v19  ;;  %v2000_v59 = vrot.slane %v1998_v22, 4  ;;  %v2003_v37 = vrot.slane %v2001_v6, 5  ;;  %v2009_v19 = vrot.slane %v2007_v33, 4 }
 0x161   : > { %5320 = vmatpush3.bf16.msra.mxu1 %v5665_v5  ;;  %v2004_v60 = vor.u32 %v2003_v37, %v2000_v59  ;;  %v2016_v5 = vshrl.u32 %v1962_v44, 16  ;;  %v2013_v63 = vor.u32 %v2012_v50, %v2009_v19 }
 0x162   : > { %5310 = vmatmul.mubr.bf16.vlgmr.msra.gmra.mxu0 %v6163_v49  ;;  %5321 = vmatprep.subr.bf16.mxu1 %v5666_v51  ;;  %v5668_v49 = vld [vmem:[%s7234_s3 + $0x218] sm:$0xff]  }
 0x163   : > { %5313 = vmatprep.mubr.bf16.mxu0 %v6168_v53  ;;  %v5669_v53 = vld [vmem:[%s7234_s3 + $0x210] sm:$0xff]   ;;  %v2005_v7 = vsel %vm481_vm0, %v1995_v54, %v2004_v60  ;;  %v2018_v16 = vrot.slane %v2016_v5, 4  ;;  %v2014_v32 = vsel %vm481_vm0, %v2004_v60, %v2013_v63 }
 0x164   : > { %5290 = vmatmul.mubr.bf16.gmra.mxu1 %v1692_v26 }
 0x165   : > { %5322 = vmatpush3.bf16.msra.mxu1 %v5666_v51  ;;  %5333 = vmatprep.mubr.bf16.mxu1 %v1996_v31  ;;  %v6492_v57 = vor.u32 %v2021_v29, %v2018_v16 }
 0x166   : > { %5323 = vmatprep.subr.bf16.mxu1 %v5667_v18 }
 0x167   : > { %7315 = vst [vmem:[#allocation30_spill] sm:$0xff] %v6492_v57  ;;  %v2023_v47 = vsel %vm481_vm0, %v2013_v63, %v6492_v57 }
 0x169   : > { %5324 = vmatpush3.bf16.msra.mxu1 %v5667_v18 }
 0x16a   : > { %5314 = vmatmul.mubr.bf16.gmra.mxu0 %v1835_v61  ;;  %5325 = vmatprep.subr.bf16.mxu1 %v5668_v49 }
 0x16d   : > { %5326 = vmatpush3.bf16.msra.mxu1 %v5668_v49 }
 0x16e   : > { %5327 = vmatprep.subr.bf16.mxu1 %v5669_v53 }
 0x171   : > { %5328 = vmatpush3.bf16.msra.mxu1 %v5669_v53 }
 0x172   : > { %5329 = vmatprep.subr.bf16.mxu1 %v5670_v40 }
 0x175   : > { %5330 = vmatpush3.bf16.msra.mxu1 %v5670_v40 }
 0x176   : > { %5331 = vmatprep.subr.bf16.mxu1 %v5671_v43 }
 0x179   : > { %5332 = vmatpush3.bf16.msra.mxu1 %v5671_v43 }
 0x17c   : > { %5334 = vmatmul.mubr.bf16.vlgmr.msra.gmra.mxu1 %v2005_v7 }
 0x17d   : > { %5337 = vmatprep.mubr.bf16.mxu1 %v2014_v32 }
 0x184   : > { %5338 = vmatmul.mubr.bf16.gmra.mxu1 %v2023_v47 }
 0x1bb   : > { %v5143_v51 = vpop.f32.mrf.mxu1 }
 0x1bd   : > { %v657_v35 = vpop.f32.mrf.mxu1 }
 0x1bf   : > { %v5144_v45 = vpop.f32.mrf.mxu1 }
 0x1c1   : > { %v660_v18 = vpop.f32.mrf.mxu1 }
 0x1c2   : > { %v5167_v34 = vpop.f32.mrf.mxu0 }
 0x1c3   : > { %v6496_v31 = vpop.f32.mrf.mxu1  ;;  %v828_v14 = vadd.f32 %v5167_v34, %v5143_v51 }
 0x1c4   : > { %v819_v26 = vpop.f32.mrf.mxu0 }
 0x1c5   : > { %v673_v49 = vpop.f32.mrf.mxu1  ;;  %v820_v4 = vadd.f32 %v819_v26, %v657_v35 }
 0x1c6   : > { %v5168_v54 = vpop.f32.mrf.mxu0 }
 0x1c7   : > { %v6498_v53 = vpop.f32.mrf.mxu1  ;;  %v831_v42 = vadd.f32 %v5168_v54, %v5144_v45 }
 0x1c8   : > { %v822_v61 = vpop.f32.mrf.mxu0 }
 0x1c9   : > { %v6502_v58 = vpop.f32.mrf.mxu1  ;;  %v823_v36 = vadd.f32 %v822_v61, %v660_v18 }
 0x1ca   : > { %v6500_v11 = vpop.f32.mrf.mxu0 }
 0x1cc   : > { %v835_v22 = vpop.f32.mrf.mxu0 }
 0x1ce   : > { %v6504_v33 = vpop.f32.mrf.mxu0 }
 0x1d0   : > { %v838_v43 = vpop.f32.mrf.mxu0 }
 0x1d1   : > { %v839_v45 = vadd.f32 %v838_v43, %v6502_v58 }
 0x1db   : > { %v5191_v40 = vpop.f32.mrf.mxu1 }
 0x1dd   : > { %v1050_v6 = vpop.f32.mrf.mxu1 }
 0x1de   : > { %v1081_v8 = vadd.f32 %v1050_v6, %v820_v4  ;;  %v844_v4 = vadd.f32 %v6500_v11, %v6496_v31 }
 0x1df   : > { %v5192_v39 = vpop.f32.mrf.mxu1 }
 0x1e1   : > { %v1053_v59 = vpop.f32.mrf.mxu1 }
 0x1e2   : > { %v5215_v37 = vpop.f32.mrf.mxu0 }
 0x1e4   : > { %v6506_v44 = vpop.f32.mrf.mxu1  ;;  %v1251_v19 = vpop.f32.mrf.mxu0 }
 0x1e5   : > { %7316 = vst [vmem:[#allocation31_spill] sm:$0xff] %v6506_v44 }
 0x1e6   : > { %v1066_v50 = vpop.f32.mrf.mxu1  ;;  %v5216_v60 = vpop.f32.mrf.mxu0 }
 0x1e8   : > { %v6508_v5 = vpop.f32.mrf.mxu1  ;;  %v1254_v46 = vpop.f32.mrf.mxu0 }
 0x1e9   : > { %7317 = vst [vmem:[#allocation32_spill] sm:$0xff] %v6508_v5 }
 0x1ea   : > { %v1069_v63 = vpop.f32.mrf.mxu1  ;;  %v6510_v7 = vpop.f32.mrf.mxu0 }
 0x1eb   : > { %7318 = vst [vmem:[#allocation33_spill] sm:$0xff] %v6510_v7 }
 0x1ec   : > { %v1267_v29 = vpop.f32.mrf.mxu0 }
 0x1ee   : > { %v6512_v47 = vpop.f32.mrf.mxu0 }
 0x1ef   : > { %7319 = vst [vmem:[#allocation34_spill] sm:$0xff] %v6512_v47 }
 0x1f0   : > { %v6514_v21 = vpop.f32.mrf.mxu0 }
 0x1f1   : > { %7320 = vst [vmem:[#allocation35_spill] sm:$0xff] %v6514_v21 }
 0x1f2   : > { %v7330_v61 = vld [vmem:[#allocation33_spill] sm:$0xff] }
 0x1f6   : > { %v7332_v6 = vld [vmem:[#allocation34_spill] sm:$0xff] }
 0x1fc   : > { %v5239_v16 = vpop.f32.mrf.mxu1 }
 0x1fe   : > { %v1389_v32 = vpop.f32.mrf.mxu1 }
 0x200   : > { %v5240_v15 = vpop.f32.mrf.mxu1 }
 0x202   : > { %v1392_v9 = vpop.f32.mrf.mxu1  ;;  %v5263_v30 = vpop.f32.mrf.mxu0 }
 0x204   : > { %v6516_v48 = vpop.f32.mrf.mxu1  ;;  %v1588_v3 = vpop.f32.mrf.mxu0 }
 0x205   : > { %7321 = vst [vmem:[#allocation36_spill] sm:$0xff] %v6516_v48 }
 0x206   : > { %v1405_v57 = vpop.f32.mrf.mxu1  ;;  %v5264_v20 = vpop.f32.mrf.mxu0 }
 0x208   : > { %v6518_v12 = vpop.f32.mrf.mxu1  ;;  %v1591_v28 = vpop.f32.mrf.mxu0 }
 0x209   : > { %7322 = vst [vmem:[#allocation37_spill] sm:$0xff] %v6518_v12  ;;  %v1282_v12 = vadd.f32 %v1251_v19, %v1081_v8 }
 0x20a   : > { %v6520_v17 = vpop.f32.mrf.mxu1  ;;  %v6522_v1 = vpop.f32.mrf.mxu0 }
 0x20b   : > { %7323 = vst [vmem:[#allocation38_spill] sm:$0xff] %v6520_v17  ;;  %7324 = vst [vmem:[#allocation39_spill] sm:$0xff] %v6522_v1  ;;  %v1083_v1 = vadd.f32 %v5191_v40, %v828_v14  ;;  %v836_v17 = vadd.f32 %v835_v22, %v673_v49  ;;  %v1420_v21 = vadd.f32 %v1389_v32, %v1282_v12  ;;  %v7329_v49 = vld [vmem:[#allocation32_spill] sm:$0xff] }
 0x20c   : > { %v1604_v23 = vpop.f32.mrf.mxu0  ;;  %v847_v12 = vadd.f32 %v6504_v33, %v6498_v53  ;;  %v7333_v33 = vld [vmem:[#allocation36_spill] sm:$0xff] }
 0x20d   : > { %v1284_v48 = vadd.f32 %v5215_v37, %v1083_v1  ;;  %v1619_v34 = vadd.f32 %v1588_v3, %v1420_v21 }
 0x20e   : > { %v6524_v25 = vpop.f32.mrf.mxu0 }
 0x20f   : > { %7325 = vst [vmem:[#allocation40_spill] sm:$0xff] %v6524_v25  ;;  %v1082_v25 = vadd.f32 %v1053_v59, %v823_v36  ;;  %v1422_v35 = vadd.f32 %v5239_v16, %v1284_v48 }
 0x210   : > { %v6526_v2 = vpop.f32.mrf.mxu0  ;;  %v7335_v19 = vld [vmem:[#allocation37_spill] sm:$0xff] }
 0x211   : > { %7326 = vst [vmem:[#allocation41_spill] sm:$0xff] %v6526_v2  ;;  %v1084_v2 = vadd.f32 %v5192_v39, %v831_v42  ;;  %v1283_v47 = vadd.f32 %v1254_v46, %v1082_v25  ;;  %v1621_v18 = vadd.f32 %v5263_v30, %v1422_v35  ;;  %v7328_v25 = vld [vmem:[#allocation31_spill] sm:$0xff] }
 0x212   : > { %v7331_v30 = vld [vmem:[#allocation35_spill] sm:$0xff] }
 0x213   : > { %v1285_v44 = vadd.f32 %v5216_v60, %v1084_v2  ;;  %v1421_v51 = vadd.f32 %v1392_v9, %v1283_v47  ;;  %v1086_v2 = vadd.f32 %v1069_v63, %v839_v45 }
 0x215   : > { %v1423_v8 = vadd.f32 %v5240_v15, %v1285_v44  ;;  %v1620_v42 = vadd.f32 %v1591_v28, %v1421_v51  ;;  %v1287_v28 = vadd.f32 %v7331_v30, %v1086_v2 }
 0x217   : > { %v1622_v21 = vadd.f32 %v5264_v20, %v1423_v8  ;;  %v7334_v20 = vld [vmem:[#allocation38_spill] sm:$0xff] }
 0x21c   : > { %v5287_v52 = vpop.f32.mrf.mxu1 }
 0x21d   : > { %v1812_v26 = vadd.f32 %v5287_v52, %v1621_v18  ;;  %v1425_v52 = vadd.f32 %v7334_v20, %v1287_v28 }
 0x21e   : > { %v1779_v56 = vpop.f32.mrf.mxu1 }
 0x21f   : > { %v1810_v1 = vadd.f32 %v1779_v56, %v1619_v34 }
 0x220   : > { %v5288_v10 = vpop.f32.mrf.mxu1 }
 0x221   : > { %v1813_v58 = vadd.f32 %v5288_v10, %v1622_v21  ;;  %v7337_v10 = vld [vmem:[#allocation41_spill] sm:$0xff] }
 0x222   : > { %v1782_v55 = vpop.f32.mrf.mxu1  ;;  %v5311_v13 = vpop.f32.mrf.mxu0 }
 0x223   : > { %v1811_v31 = vadd.f32 %v1782_v55, %v1620_v42  ;;  %v1952_v53 = vadd.f32 %v5311_v13, %v1812_v26  ;;  %v1624_v13 = vadd.f32 %v7337_v10, %v1425_v52 }
 0x224   : > { %v6528_v38 = vpop.f32.mrf.mxu1  ;;  %v1919_v24 = vpop.f32.mrf.mxu0 }
 0x225   : > { %7327 = vst [vmem:[#allocation42_spill] sm:$0xff] %v6528_v38  ;;  %v1085_v38 = vadd.f32 %v1066_v50, %v836_v17  ;;  %v1087_v17 = vadd.f32 %v7328_v25, %v844_v4  ;;  %v1950_v54 = vadd.f32 %v1919_v24, %v1810_v1 }
 0x226   : > { %v1795_v41 = vpop.f32.mrf.mxu1  ;;  %v5312_v0 = vpop.f32.mrf.mxu0 }
 0x227   : > { %v1286_v14 = vadd.f32 %v1267_v29, %v1085_v38  ;;  %v1088_v38 = vadd.f32 %v7329_v49, %v847_v12  ;;  %v1288_v15 = vadd.f32 %v7330_v61, %v1087_v17  ;;  %v1953_v59 = vadd.f32 %v5312_v0, %v1813_v58  ;;  %v7338_v0 = vld [vmem:[#allocation40_spill] sm:$0xff] }
 0x228   : > { %v6530_v27 = vpop.f32.mrf.mxu1  ;;  %v1922_v62 = vpop.f32.mrf.mxu0 }
 0x229   : > { %v1424_v48 = vadd.f32 %v1405_v57, %v1286_v14  ;;  %v1951_v40 = vadd.f32 %v1922_v62, %v1811_v31  ;;  %v1289_v57 = vadd.f32 %v7332_v6, %v1088_v38  ;;  %v1426_v39 = vadd.f32 %v7333_v33, %v1288_v15  ;;  %v4567_v62 = vld [vmem:[%s7237_s6 + $0x1] ss:$0 sm:$0xff] }
 0x22a   : > { %v1798_v7 = vpop.f32.mrf.mxu1  ;;  %v5315_v5 = vpop.f32.mrf.mxu0  ;;  %v292_v15 = vlaneseq }
 0x22b   : > { %v1623_v56 = vadd.f32 %v1604_v23, %v1424_v48  ;;  %v1427_v50 = vadd.f32 %v7335_v19, %v1289_v57  ;;  %v7336_v23 = vld [vmem:[#allocation39_spill] sm:$0xff]  ;;  %v1815_v4 = vadd.f32 %v1798_v7, %v1624_v13 }
 0x22c   : > { %v1935_v9 = vpop.f32.mrf.mxu0  ;;  %v1625_v60 = vadd.f32 %v7336_v23, %v1426_v39  ;;  %v7339_v47 = vld [vmem:[#allocation42_spill] sm:$0xff]  ;;  %v6562_v30 = vand.u32 127, %v292_v15 }
 0x22d   : > { %v1814_v43 = vadd.f32 %v1795_v41, %v1623_v56  ;;  %v1626_v41 = vadd.f32 %v7338_v0, %v1427_v50 }
 0x22e   : > { %v5316_v55 = vpop.f32.mrf.mxu0  ;;  %v1816_v35 = vadd.f32 %v7339_v47, %v1625_v60  ;;  %7340 = vst [vmem:[#allocation31_spill] sm:$0xff] %v6562_v30  ;;  %vm2194_vm5 = vcmp.ge.s32.totalorder %v6562_v30, 4  ;;  %vm2195_vm6 = vcmp.lt.s32.totalorder %v6562_v30, 8  ;;  %vm2177_vm8 = vcmp.lt.s32.totalorder %v6562_v30, 4 }
 0x22f   : > { %v1954_v63 = vadd.f32 %v1935_v9, %v1814_v43  ;;  %v1817_v8 = vadd.f32 %v6530_v27, %v1626_v41  ;;  %vm6566_vm7 = vmand %vm2194_vm5, %vm2195_vm6 }
 0x230   : > { %v1938_v51 = vpop.f32.mrf.mxu0  ;;  %v1956_v42 = vadd.f32 %v5315_v5, %v1816_v35 }
 0x231   : > { %v1955_v1 = vadd.f32 %v1938_v51, %v1815_v4  ;;  %v1957_v17 = vadd.f32 %v5316_v55, %v1817_v8 }
 0x23c   : > { %v5335_v36 = vpop.f32.mrf.mxu1 }
 0x23d   : > { %v2143_v37 = vadd.f32 %v5335_v36, %v1952_v53  ;;  %v7341_v53 = vmov 0 }
 0x23e   : > { %v2110_v3 = vpop.f32.mrf.mxu1  ;;  %v7342_v53 = vsel %vm6566_vm7, 4294967295, %v7341_v53 }
 0x23f   : > { %v2141_v22 = vadd.f32 %v2110_v3, %v1950_v54  ;;  %v6556_v45 = vadd.f32 %v4567_v62, %v2143_v37  ;;  %7343 = vst [vmem:[#allocation32_spill] sm:$0xff] %v7342_v53 }
 0x240   : > { %v5336_v11 = vpop.f32.mrf.mxu1 }
 0x241   : > { %v6550_v16 = vadd.f32 %v4567_v62, %v2141_v22  ;;  %v2144_v29 = vadd.f32 %v5336_v11, %v1953_v59 }
 0x242   : > { %v2113_v24 = vpop.f32.mrf.mxu1 }
 0x243   : > { %v2142_v44 = vadd.f32 %v2113_v24, %v1951_v40  ;;  %v2156_v12 = vadd.f32 %v4567_v62, %v2144_v29 }
 0x244   : > { %v5339_v46 = vpop.f32.mrf.mxu1 }
 0x245   : > { %v6552_v32 = vadd.f32 %v4567_v62, %v2142_v44  ;;  %v2147_v48 = vadd.f32 %v5339_v46, %v1956_v42 }
 0x246   : > { %v2126_v34 = vpop.f32.mrf.mxu1 }
 0x247   : > { %v2163_v14 = vadd.f32 %v6552_v32, %v6550_v16  ;;  %v2145_v36 = vadd.f32 %v2126_v34, %v1954_v63  ;;  %v2159_v54 = vadd.f32 %v4567_v62, %v2147_v48 }
 0x248   : > { %v5340_v18 = vpop.f32.mrf.mxu1 }
 0x249   : > { %v2164_v25 = vadd.f32 %v2163_v14, %v6556_v45  ;;  %v2157_v9 = vadd.f32 %v4567_v62, %v2145_v36  ;;  %v2148_v26 = vadd.f32 %v5340_v18, %v1957_v17 }
 0x24a   : > { %v2129_v2 = vpop.f32.mrf.mxu1 }
 0x24b   : > { %v2165_v3 = vadd.f32 %v2164_v25, %v2156_v12  ;;  %v2146_v7 = vadd.f32 %v2129_v2, %v1955_v1  ;;  %v2160_v38 = vadd.f32 %v4567_v62, %v2148_v26 }
 0x24d   : > { %v2166_v21 = vadd.f32 %v2165_v3, %v2157_v9  ;;  %v2158_v31 = vadd.f32 %v4567_v62, %v2146_v7 }
 0x24f   : > { %v2167_v49 = vadd.f32 %v2166_v21, %v2158_v31 }
 0x251   : > { %v2168_v61 = vadd.f32 %v2167_v49, %v2159_v54 }
 0x253   : > { %v2169_v27 = vadd.f32 %v2168_v61, %v2160_v38 }
 0x255   : > { %v2170_v5 = vrot.slane %v2169_v27, 4 }
 0x257   : > { %v2171_v28 = vadd.f32 %v2170_v5, %v2169_v27 }
 0x259   : > { %v2172_v56 = vrot.slane %v2171_v28, 2 }
 0x25b   : > { %v2173_v11 = vadd.f32 %v2172_v56, %v2171_v28  ;;  %v5672_v28 = vld [vmem:[%s7235_s4 + $0x78] sm:$0xff]   ;;  %v5673_v56 = vld [vmem:[%s7235_s4 + $0x70] sm:$0xff]  }
 0x25c   : > { %5341 = vmatprep.subr.bf16.mxu0 %v5672_v28 }
 0x25d   : > { %v2174_v58 = vrot.slane %v2173_v11, 1  ;;  %5342 = vmatpush3.bf16.msra.mxu0 %v5672_v28 }
 0x25e   : > { %5343 = vmatprep.subr.bf16.mxu0 %v5673_v56 }
 0x25f   : > { %v2175_v40 = vadd.f32 %v2174_v58, %v2173_v11  ;;  %v5674_v11 = vld [vmem:[%s7235_s4 + $0x38] sm:$0xff]   ;;  %v5676_v58 = vld [vmem:[%s7235_s4 + $0x30] sm:$0xff]  }
 0x260   : > { %5365 = vmatprep.subr.bf16.mxu1 %v5674_v11 }
 0x261   : > { %v2197_v22 = vsel %vm6566_vm7, %v2175_v40, 0.0  ;;  %v2179_v6 = vsel %vm2177_vm8, %v2175_v40, 0.0  ;;  %5366 = vmatpush3.bf16.msra.mxu1 %v5674_v11  ;;  %v5675_v40 = vld [vmem:[%s7235_s4 + $0x68] sm:$0xff]   ;;  %5344 = vmatpush3.bf16.msra.mxu0 %v5673_v56 }
 0x262   : > { %v2198_v57 = vsel %vm2180_vm9, %v2197_v22, 0.0  ;;  %v2181_v33 = vsel %vm2180_vm9, %v2179_v6, 0.0  ;;  %5367 = vmatprep.subr.bf16.mxu1 %v5676_v58  ;;  %v5678_v22 = vld [vmem:[%s7235_s4 + $0x28] sm:$0xff]   ;;  %5345 = vmatprep.subr.bf16.mxu0 %v5675_v40  ;;  %v5677_v6 = vld [vmem:[%s7235_s4 + $0x60] sm:$0xff]  }
 0x263   : > { %2199 = vadd.xlane.f32.xlu0 %v2198_v57  ;;  %2182 = vadd.xlane.f32.xlu1 %v2181_v33  ;;  %v5680_v57 = vld [vmem:[%s7235_s4 + $0x20] sm:$0xff]   ;;  %v5679_v33 = vld [vmem:[%s7235_s4 + $0x58] sm:$0xff]  }
 0x265   : > { %5368 = vmatpush3.bf16.msra.mxu1 %v5676_v58  ;;  %5346 = vmatpush3.bf16.msra.mxu0 %v5675_v40 }
 0x266   : > { %5369 = vmatprep.subr.bf16.mxu1 %v5678_v22  ;;  %5347 = vmatprep.subr.bf16.mxu0 %v5677_v6 }
 0x269   : > { %5370 = vmatpush3.bf16.msra.mxu1 %v5678_v22  ;;  %5348 = vmatpush3.bf16.msra.mxu0 %v5677_v6 }
 0x26a   : > { %5371 = vmatprep.subr.bf16.mxu1 %v5680_v57  ;;  %5349 = vmatprep.subr.bf16.mxu0 %v5679_v33 }
 0x26d   : > { %5372 = vmatpush3.bf16.msra.mxu1 %v5680_v57  ;;  %5350 = vmatpush3.bf16.msra.mxu0 %v5679_v33 }
 0x2ec   : > { %v2200_v39 = vpop.xlane.xlu0 %2199  ;;  %v2183_v20 = vpop.xlane.xlu1 %2182 }
 0x2ed   : > { %v2201_v52 = vrot.slane %v2200_v39, 4  ;;  %v2184_v55 = vrot.slane %v2183_v20, 4 }
 0x2ef   : > { %v2202_v24 = vadd.f32 %v2201_v52, %v2200_v39  ;;  %v2185_v43 = vadd.f32 %v2184_v55, %v2183_v20  ;;  %v5682_v39 = vld [vmem:[%s7235_s4 + $0x18] sm:$0xff]   ;;  %v5681_v20 = vld [vmem:[%s7235_s4 + $0x50] sm:$0xff]   ;;  %v5683_v55 = vld [vmem:[%s7235_s4 + $0x48] sm:$0xff]  }
 0x2f0   : > { %5373 = vmatprep.subr.bf16.mxu1 %v5682_v39  ;;  %v5684_v52 = vld [vmem:[%s7235_s4 + $0x10] sm:$0xff]   ;;  %5351 = vmatprep.subr.bf16.mxu0 %v5681_v20 }
 0x2f1   : > { %v2203_v59 = vrot.slane %v2202_v24, 2  ;;  %v2186_v37 = vrot.slane %v2185_v43, 2  ;;  %5374 = vmatpush3.bf16.msra.mxu1 %v5682_v39  ;;  %5352 = vmatpush3.bf16.msra.mxu0 %v5681_v20 }
 0x2f2   : > { %5375 = vmatprep.subr.bf16.mxu1 %v5684_v52  ;;  %5353 = vmatprep.subr.bf16.mxu0 %v5683_v55 }
 0x2f3   : > { %v2187_v44 = vadd.f32 %v2186_v37, %v2185_v43  ;;  %v2204_v19 = vadd.f32 %v2203_v59, %v2202_v24  ;;  %v5686_v24 = vld [vmem:[%s7235_s4 + $0x8] sm:$0xff]   ;;  %v5685_v43 = vld [vmem:[%s7235_s4 + $0x40] sm:$0xff]  }
 0x2f5   : > { %v2188_v50 = vrot.slane %v2187_v44, 1  ;;  %v2205_v23 = vrot.slane %v2204_v19, 1  ;;  %5376 = vmatpush3.bf16.msra.mxu1 %v5684_v52  ;;  %5354 = vmatpush3.bf16.msra.mxu0 %v5683_v55 }
 0x2f6   : > { %5377 = vmatprep.subr.bf16.mxu1 %v5686_v24  ;;  %5355 = vmatprep.subr.bf16.mxu0 %v5685_v43 }
 0x2f7   : > { %v2189_v60 = vadd.f32 %v2188_v50, %v2187_v44  ;;  %v2206_v10 = vadd.f32 %v2205_v23, %v2204_v19 }
 0x2f9   : > { %5557 = vpush %v2189_v60  ;;  %5378 = vmatpush3.bf16.msra.mxu1 %v5686_v24  ;;  %5356 = vmatpush3.bf16.msra.mxu0 %v5685_v43  ;;  %v6670_v60 = vld [vmem:[%s7235_s4 + $0xb8] sm:$0xff]  }
 0x2fa   : > { %5559 = vpush %v2206_v10  ;;  %5389 = vmatprep.subr.bf16.mxu0 %v6670_v60 }
 0x32a   : > { %s5558_s30 = spop %5557 }
 0x32b   : > { %v2191_v13 = vstv %s5558_s30  ;;  %s5560_s8 = spop %5559 }
 0x32c   : > { %v2192_v62 = vmul.f32 0.00390625, %v2191_v13  ;;  %v2208_v46 = vstv %s5560_s8 }
 0x32d   : > { %v2209_v63 = vmul.f32 0.00390625, %v2208_v46 }
 0x32e   : > { %v2193_v29 = vsel %vm2177_vm8, %v2192_v62, 0.0 }
 0x32f   : > { %v2210_v0 = vsel %vm6566_vm7, %v2209_v63, %v2193_v29  ;;  %v5688_v63 = vld [vmem:[%s7235_s4] sm:$0xff]  }
 0x330   : > { %v6582_v41 = vsub.f32 %v6550_v16, %v2210_v0  ;;  %v6585_v47 = vsub.f32 %v6552_v32, %v2210_v0  ;;  %v6588_v35 = vsub.f32 %v6556_v45, %v2210_v0  ;;  %v6590_v51 = vsub.f32 %v2156_v12, %v2210_v0  ;;  %5379 = vmatprep.subr.bf16.mxu1 %v5688_v63 }
 0x331   : > { %v6596_v14 = vsub.f32 %v2157_v9, %v2210_v0  ;;  %v6600_v8 = vsub.f32 %v2158_v31, %v2210_v0  ;;  %v6604_v18 = vsub.f32 %v2159_v54, %v2210_v0  ;;  %v6608_v12 = vsub.f32 %v2160_v38, %v2210_v0  ;;  %5380 = vmatpush3.bf16.msra.mxu1 %v5688_v63 }
 0x332   : > { %v2219_v34 = vmul.f32 %v6582_v41, %v6582_v41  ;;  %v2220_v4 = vmul.f32 %v6585_v47, %v6585_v47  ;;  %v2221_v16 = vmul.f32 %v6588_v35, %v6588_v35  ;;  %v2222_v32 = vmul.f32 %v6590_v51, %v6590_v51 }
 0x333   : > { %v2223_v42 = vmul.f32 %v6596_v14, %v6596_v14  ;;  %v2224_v25 = vmul.f32 %v6600_v8, %v6600_v8  ;;  %v2225_v2 = vmul.f32 %v6604_v18, %v6604_v18  ;;  %v2226_v9 = vmul.f32 %v6608_v12, %v6608_v12 }
 0x334   : > { %v2227_v36 = vadd.f32 %v2220_v4, %v2219_v34 }
 0x336   : > { %v2228_v45 = vadd.f32 %v2227_v36, %v2221_v16  ;;  %v6679_v16 = vld [vmem:[%s7235_s4 + $0xf8] sm:$0xff]  }
 0x337   : > { %5413 = vmatprep.subr.bf16.mxu1 %v6679_v16 }
 0x338   : > { %v2229_v1 = vadd.f32 %v2228_v45, %v2222_v32 }
 0x33a   : > { %v2230_v17 = vadd.f32 %v2229_v1, %v2223_v42 }
 0x33c   : > { %v2231_v48 = vadd.f32 %v2230_v17, %v2224_v25 }
 0x33e   : > { %v2232_v3 = vadd.f32 %v2231_v48, %v2225_v2  ;;  %v4568_v48 = vld [vmem:[%s7237_s6 + $0x2] ss:$0 sm:$0xff] }
 0x340   : > { %v2233_v7 = vadd.f32 %v2232_v3, %v2226_v9 }
 0x342   : > { %v2234_v21 = vrot.slane %v2233_v7, 4 }
 0x344   : > { %v2235_v26 = vadd.f32 %v2234_v21, %v2233_v7 }
 0x346   : > { %v2236_v31 = vrot.slane %v2235_v26, 2 }
 0x348   : > { %v2237_v54 = vadd.f32 %v2236_v31, %v2235_v26  ;;  %v4569_v26 = vld [vmem:[%s7237_s6 + $0x3] ss:$0 sm:$0xff] }
 0x34a   : > { %v2238_v49 = vrot.slane %v2237_v54, 1 }
 0x34c   : > { %v2239_v38 = vadd.f32 %v2238_v49, %v2237_v54 }
 0x34e   : > { %v2254_v61 = vsel %vm6566_vm7, %v2239_v38, 0.0  ;;  %v2240_v27 = vsel %vm2177_vm8, %v2239_v38, 0.0 }
 0x34f   : > { %v2255_v15 = vsel %vm2180_vm9, %v2254_v61, 0.0  ;;  %v2241_v5 = vsel %vm2180_vm9, %v2240_v27, 0.0 }
 0x350   : > { %2256 = vadd.xlane.f32.xlu1 %v2255_v15  ;;  %2242 = vadd.xlane.f32.xlu0 %v2241_v5 }
 0x3d9   : > { %v2257_v59 = vpop.xlane.xlu1 %2256  ;;  %v2243_v37 = vpop.xlane.xlu0 %2242 }
 0x3da   : > { %v2258_v44 = vrot.slane %v2257_v59, 4  ;;  %v2244_v19 = vrot.slane %v2243_v37, 4 }
 0x3dc   : > { %v2259_v50 = vadd.f32 %v2258_v44, %v2257_v59  ;;  %v2245_v23 = vadd.f32 %v2244_v19, %v2243_v37 }
 0x3de   : > { %v2260_v10 = vrot.slane %v2259_v50, 2  ;;  %v2246_v13 = vrot.slane %v2245_v23, 2 }
 0x3e0   : > { %v2247_v62 = vadd.f32 %v2246_v13, %v2245_v23  ;;  %v2261_v46 = vadd.f32 %v2260_v10, %v2259_v50 }
 0x3e2   : > { %v2248_v29 = vrot.slane %v2247_v62, 1  ;;  %v2262_v0 = vrot.slane %v2261_v46, 1 }
 0x3e4   : > { %v2249_v34 = vadd.f32 %v2248_v29, %v2247_v62  ;;  %v2263_v4 = vadd.f32 %v2262_v0, %v2261_v46 }
 0x3e6   : > { %5561 = vpush %v2249_v34 }
 0x3e7   : > { %5563 = vpush %v2263_v4 }
 0x417   : > { %s5562_s28 = spop %5561 }
 0x418   : > { %v2251_v36 = vstv %s5562_s28  ;;  %s5564_s29 = spop %5563  ;;  %s7222_s28 = scalar_lea.vmem %s7238_s7, %s4800_s9 }
 0x419   : > { %v2252_v32 = vmul.f32 0.00390625, %v2251_v36  ;;  %v2265_v45 = vstv %s5564_s29 }
 0x41a   : > { %v2266_v42 = vmul.f32 0.00390625, %v2265_v45 }
 0x41b   : > { %v2253_v1 = vsel %vm2177_vm8, %v2252_v32, 0.0 }
 0x41c   : > { %v2267_v25 = vsel %vm6566_vm7, %v2266_v42, %v2253_v1 }
 0x41d   : > { %v2268_v17 = vadd.f32 1e-05, %v2267_v25 }
 0x41f   : > { %5760 = vrsqrt.f32 %v2268_v17 }
 0x42c   : > { %v5761_v2 = vpop.eup %5760 }
 0x42d   : > { %v2270_v9 = vmul.f32 %v5761_v2, %v6582_v41  ;;  %v2271_v3 = vmul.f32 %v5761_v2, %v6585_v47  ;;  %v2272_v7 = vmul.f32 %v5761_v2, %v6588_v35  ;;  %v2273_v21 = vmul.f32 %v5761_v2, %v6590_v51 }
 0x42e   : > { %v2274_v31 = vmul.f32 %v5761_v2, %v6596_v14  ;;  %v2275_v54 = vmul.f32 %v5761_v2, %v6600_v8  ;;  %v2276_v49 = vmul.f32 %v5761_v2, %v6604_v18  ;;  %v2277_v38 = vmul.f32 %v5761_v2, %v6608_v12 }
 0x42f   : > { %v2282_v61 = vmul.f32 %v4568_v48, %v2270_v9  ;;  %v2283_v41 = vmul.f32 %v4568_v48, %v2271_v3  ;;  %v2284_v27 = vmul.f32 %v4568_v48, %v2272_v7  ;;  %v2285_v47 = vmul.f32 %v4568_v48, %v2273_v21 }
 0x430   : > { %v2286_v15 = vmul.f32 %v4568_v48, %v2274_v31  ;;  %v2287_v35 = vmul.f32 %v4568_v48, %v2275_v54  ;;  %v2288_v5 = vmul.f32 %v4568_v48, %v2276_v49  ;;  %v2289_v51 = vmul.f32 %v4568_v48, %v2277_v38 }
 0x431   : > { %v2294_v28 = vadd.f32 %v4569_v26, %v2282_v61  ;;  %v2295_v56 = vadd.f32 %v4569_v26, %v2283_v41  ;;  %v2296_v11 = vadd.f32 %v4569_v26, %v2284_v27  ;;  %v2297_v58 = vadd.f32 %v4569_v26, %v2285_v47 }
 0x432   : > { %v6700_v40 = vadd.f32 %v4569_v26, %v2286_v15  ;;  %v6702_v14 = vadd.f32 %v4569_v26, %v2287_v35  ;;  %v6704_v8 = vadd.f32 %v4569_v26, %v2288_v5  ;;  %v6706_v18 = vadd.f32 %v4569_v26, %v2289_v51  ;;  %v7344_v15 = vld [vmem:[#allocation8_spill] sm:$0xff] }
 0x433   : > { %v2302_v12 = vsub.f32 0.0, %v2294_v28  ;;  %v2303_v22 = vsub.f32 0.0, %v2295_v56  ;;  %v2304_v6 = vsub.f32 0.0, %v2296_v11  ;;  %v2305_v57 = vsub.f32 0.0, %v2297_v58 }
 0x434   : > { %v2306_v33 = vsub.f32 0.0, %v6700_v40  ;;  %v2307_v39 = vsub.f32 0.0, %v6702_v14  ;;  %v2308_v20 = vsub.f32 0.0, %v6704_v8  ;;  %v2309_v59 = vsub.f32 0.0, %v6706_v18 }
 0x435   : > { %v2310_v52 = vmul.f32 1.442695, %v2302_v12  ;;  %v2312_v55 = vmul.f32 1.442695, %v2303_v22  ;;  %v2314_v24 = vmul.f32 1.442695, %v2304_v6 }
 0x436   : > { %v2316_v43 = vmul.f32 1.442695, %v2305_v57  ;;  %v2318_v37 = vmul.f32 1.442695, %v2306_v33  ;;  %v2320_v44 = vmul.f32 1.442695, %v2307_v39 }
 0x437   : > { %5762 = vpow2.f32 %v2310_v52  ;;  %v2322_v19 = vmul.f32 1.442695, %v2308_v20  ;;  %v2324_v50 = vmul.f32 1.442695, %v2309_v59  ;;  %v7348_v33 = vld [vmem:[#allocation7_spill] sm:$0xff]  ;;  %v7349_v59 = vld [vmem:[#allocation14_spill] sm:$0xff] }
 0x438   : > { %5764 = vpow2.f32 %v2312_v55 }
 0x439   : > { %5766 = vpow2.f32 %v2314_v24 }
 0x43a   : > { %5768 = vpow2.f32 %v2316_v43 }
 0x43b   : > { %5770 = vpow2.f32 %v2318_v37 }
 0x43c   : > { %5772 = vpow2.f32 %v2320_v44 }
 0x43d   : > { %5774 = vpow2.f32 %v2322_v19 }
 0x43e   : > { %5776 = vpow2.f32 %v2324_v50 }
 0x444   : > { %v5763_v23 = vpop.eup %5762 }
 0x445   : > { %v5765_v10 = vpop.eup %5764  ;;  %v2326_v13 = vadd.f32 1.0, %v5763_v23 }
 0x446   : > { %v5767_v62 = vpop.eup %5766  ;;  %v2327_v46 = vadd.f32 1.0, %v5765_v10 }
 0x447   : > { %v5769_v63 = vpop.eup %5768  ;;  %5778 = vrcp.f32 %v2326_v13  ;;  %v2328_v29 = vadd.f32 1.0, %v5767_v62 }
 0x448   : > { %v5771_v0 = vpop.eup %5770  ;;  %5780 = vrcp.f32 %v2327_v46  ;;  %v2329_v34 = vadd.f32 1.0, %v5769_v63 }
 0x449   : > { %v5773_v4 = vpop.eup %5772  ;;  %5782 = vrcp.f32 %v2328_v29  ;;  %v2330_v36 = vadd.f32 1.0, %v5771_v0  ;;  %v5691_v29 = vld [vmem:[%s7235_s4 + $0xa8] sm:$0xff]  }
 0x44a   : > { %v5775_v32 = vpop.eup %5774  ;;  %5784 = vrcp.f32 %v2329_v34  ;;  %v2331_v45 = vadd.f32 1.0, %v5773_v4 }
 0x44b   : > { %v5777_v42 = vpop.eup %5776  ;;  %5786 = vrcp.f32 %v2330_v36  ;;  %v2332_v1 = vadd.f32 1.0, %v5775_v32 }
 0x44c   : > { %5788 = vrcp.f32 %v2331_v45  ;;  %v2333_v25 = vadd.f32 1.0, %v5777_v42  ;;  %v7351_v45 = vld [vmem:[#allocation15_spill] sm:$0xff] }
 0x44d   : > { %5790 = vrcp.f32 %v2332_v1 }
 0x44e   : > { %5792 = vrcp.f32 %v2333_v25 }
 0x454   : > { %v5779_v17 = vpop.eup %5778 }
 0x455   : > { %v5781_v2 = vpop.eup %5780  ;;  %v2342_v48 = vmul.f32 %v5779_v17, %v2294_v28  ;;  %v7345_v28 = vld [vmem:[#allocation10_spill] sm:$0xff] }
 0x456   : > { %v5783_v9 = vpop.eup %5782  ;;  %v2343_v3 = vmul.f32 %v5781_v2, %v2295_v56 }
 0x457   : > { %v5785_v7 = vpop.eup %5784  ;;  %v2344_v21 = vmul.f32 %v5783_v9, %v2296_v11  ;;  %v7346_v11 = vld [vmem:[#allocation6_spill] sm:$0xff]  ;;  %v5692_v9 = vld [vmem:[%s7235_s4 + $0xf0] sm:$0xff]  }
 0x458   : > { %v5787_v26 = vpop.eup %5786  ;;  %v6712_v31 = vpack.c.bf16 %v2343_v3, %v2342_v48  ;;  %v2345_v54 = vmul.f32 %v5785_v7, %v2297_v58 }
 0x459   : > { %v5789_v49 = vpop.eup %5788  ;;  %v2346_v38 = vmul.f32 %v5787_v26, %v6700_v40  ;;  %v7347_v40 = vld [vmem:[#allocation3_spill] sm:$0xff] }
 0x45a   : > { %v5791_v61 = vpop.eup %5790  ;;  %v2396_v41 = vrot.slane %v6712_v31, 4  ;;  %v6716_v27 = vpack.c.bf16 %v2345_v54, %v2344_v21  ;;  %v2347_v47 = vmul.f32 %v5789_v49, %v6702_v14  ;;  %v2355_v35 = vmul.bf16 %v6712_v31, %v7344_v15 }
 0x45b   : > { %v5793_v5 = vpop.eup %5792  ;;  %v2348_v51 = vmul.f32 %v5791_v61, %v6704_v8  ;;  %v2674_v56 = vmul.bf16 %v6712_v31, %v7345_v28  ;;  %v6726_v58 = vmul.bf16 %v6712_v31, %v7346_v11  ;;  %v5689_v8 = vld [vmem:[%s7235_s4 + $0xb0] sm:$0xff]   ;;  %v5695_v11 = vld [vmem:[%s7235_s4 + $0x98] sm:$0xff]  }
 0x45c   : > { %v2397_v12 = vsel %vm561_vm3, %v7347_v40, %v2396_v41  ;;  %v2398_v22 = vrot.slane %v6716_v27, 4  ;;  %v6731_v6 = vpack.c.bf16 %v2347_v47, %v2346_v38  ;;  %v2522_v14 = vshrl.u32 %v2355_v35, 16  ;;  %v5693_v38 = vld [vmem:[%s7235_s4 + $0xa0] sm:$0xff]  }
 0x45d   : > { %5357 = vmatprep.mubr.bf16.mxu0 %v2397_v12  ;;  %v2525_v57 = vshll.u32 %v2355_v35, 16  ;;  %v2356_v39 = vmul.bf16 %v6716_v27, %v7348_v33  ;;  %v2349_v20 = vmul.f32 %v5793_v5, %v6706_v18  ;;  %v2696_v52 = vshrl.u32 %v2674_v56, 16  ;;  %v7352_v35 = vld [vmem:[#allocation17_spill] sm:$0xff] }
 0x45e   : > { %v6740_v55 = vsel %vm561_vm3, %v2396_v41, %v2398_v22  ;;  %v2400_v24 = vrot.slane %v6731_v6, 4  ;;  %v2524_v43 = vrot.slane %v2522_v14, 3  ;;  %v2357_v37 = vmul.bf16 %v6731_v6, %v7349_v59 }
 0x45f   : > { %5358 = vmatmul.mubr.bf16.vlgmr.msra.gmra.mxu0 %v6740_v55  ;;  %v2527_v44 = vrot.slane %v2525_v57, 4  ;;  %v2531_v19 = vshrl.u32 %v2356_v39, 16  ;;  %v2534_v50 = vshll.u32 %v2356_v39, 16  ;;  %v6746_v23 = vpack.c.bf16 %v2349_v20, %v2348_v51  ;;  %v5694_v51 = vld [vmem:[%s7235_s4 + $0xe8] sm:$0xff]   ;;  %v5697_v39 = vld [vmem:[%s7235_s4 + $0x90] sm:$0xff]  }
 0x460   : > { %5390 = vmatpush3.bf16.msra.mxu0 %v6670_v60  ;;  %v6750_v18 = vsel %vm561_vm3, %v2398_v22, %v2400_v24  ;;  %v2540_v10 = vshrl.u32 %v2357_v37, 16  ;;  %v2543_v13 = vshll.u32 %v2357_v37, 16  ;;  %v2698_v0 = vrot.slane %v2696_v52, 4  ;;  %v7350_v60 = vld [vmem:[#allocation12_spill] sm:$0xff]  ;;  %v5696_v22 = vld [vmem:[%s7235_s4 + $0xe0] sm:$0xff]  }
 0x461   : > { %5361 = vmatprep.mubr.bf16.mxu0 %v6750_v18  ;;  %5391 = vmatprep.subr.bf16.mxu0 %v5689_v8  ;;  %v2528_v62 = vor.u32 %v2527_v44, %v2524_v43  ;;  %v2533_v46 = vrot.slane %v2531_v19, 3  ;;  %v2536_v63 = vrot.slane %v2534_v50, 4  ;;  %v2699_v36 = vshll.u32 %v2674_v56, 16  ;;  %v7355_v20 = vld [vmem:[#allocation20_spill] sm:$0xff]  ;;  %v7356_v43 = vld [vmem:[#allocation19_spill] sm:$0xff] }
 0x462   : > { %v2542_v34 = vrot.slane %v2540_v10, 3  ;;  %v2545_v4 = vrot.slane %v2543_v13, 4  ;;  %v2358_v32 = vmul.bf16 %v6746_v23, %v7350_v60  ;;  %v2402_v25 = vrot.slane %v6746_v23, 4  ;;  %v5699_v44 = vld [vmem:[%s7235_s4 + $0x88] sm:$0xff]   ;;  %v5700_v10 = vld [vmem:[%s7235_s4 + $0xd0] sm:$0xff]   ;;  %v7359_v60 = vld [vmem:[#allocation18_spill] sm:$0xff] }
 0x463   : > { %v2529_v42 = vsel %vm688_vm2, %v7351_v45, %v2528_v62  ;;  %v2537_v1 = vor.u32 %v2536_v63, %v2533_v46  ;;  %v2878_v17 = vshrl.u32 %v6726_v58, 16  ;;  %v2701_v48 = vrot.slane %v2699_v36, 5  ;;  %v7357_v46 = vld [vmem:[#allocation21_spill] sm:$0xff]  ;;  %v5702_v45 = vld [vmem:[%s7235_s4 + $0xc8] sm:$0xff]  }
 0x464   : > { %5392 = vmatpush3.bf16.msra.mxu0 %v5689_v8  ;;  %5381 = vmatprep.mubr.bf16.mxu1 %v2529_v42  ;;  %v2546_v2 = vor.u32 %v2545_v4, %v2542_v34  ;;  %v2549_v3 = vshrl.u32 %v2358_v32, 16  ;;  %v2552_v7 = vshll.u32 %v2358_v32, 16  ;;  %v6778_v47 = vsel %vm561_vm3, %v2400_v24, %v2402_v25  ;;  %v5698_v24 = vld [vmem:[%s7235_s4 + $0xd8] sm:$0xff]  }
 0x465   : > { %v2538_v21 = vsel %vm688_vm2, %v2528_v62, %v2537_v1  ;;  %5393 = vmatprep.subr.bf16.mxu0 %v5691_v29  ;;  %v6766_v26 = vrot.slane %v2878_v17, 7  ;;  %v6769_v49 = vor.u32 %v2701_v48, %v2698_v0  ;;  %v2881_v56 = vshll.u32 %v6726_v58, 16  ;;  %v7353_v58 = vld [vmem:[#allocation5_spill] sm:$0xff]  ;;  %v7358_v0 = vld [vmem:[#allocation22_spill] sm:$0xff] }
 0x466   : > { %5382 = vmatmul.mubr.bf16.vlgmr.msra.gmra.mxu1 %v2538_v21  ;;  %v2547_v54 = vsel %vm688_vm2, %v2537_v1, %v2546_v2  ;;  %v2551_v61 = vrot.slane %v2549_v3, 3  ;;  %v2554_v41 = vrot.slane %v2552_v7, 4  ;;  %v7354_v8 = vrot.slane %v7353_v58, 7  ;;  %v5706_v58 = vld [vmem:[%s7235_s4 + $0x178] sm:$0xff]  }
 0x467   : > { %5414 = vmatpush3.bf16.msra.mxu1 %v6679_v16  ;;  %5385 = vmatprep.mubr.bf16.mxu1 %v2547_v54  ;;  %v2703_v5 = vsel %vm481_vm0, %v7352_v35, %v6769_v49  ;;  %v2883_v12 = vor.u32 %v2881_v56, %v6766_v26  ;;  %v2675_v52 = vmul.bf16 %v6716_v27, %v7355_v20  ;;  %v5704_v54 = vld [vmem:[%s7235_s4 + $0xc0] sm:$0xff]   ;;  %v5705_v35 = vld [vmem:[%s7235_s4 + $0x130] sm:$0xff]  }
 0x468   : > { %5362 = vmatmul.mubr.bf16.gmra.mxu0 %v6778_v47  ;;  %5415 = vmatprep.subr.bf16.mxu1 %v5692_v9  ;;  %v2555_v16 = vor.u32 %v2554_v41, %v2551_v61  ;;  %v2676_v37 = vmul.bf16 %v6731_v6, %v7356_v43  ;;  %v2857_v63 = vmul.bf16 %v6716_v27, %v7357_v46  ;;  %v7360_v61 = vld [vmem:[#allocation23_spill] sm:$0xff]  ;;  %v5709_v46 = vld [vmem:[%s7235_s4 + $0x120] sm:$0xff]  }
 0x469   : > { %5394 = vmatpush3.bf16.msra.mxu0 %v5691_v29  ;;  %5405 = vmatprep.mubr.bf16.mxu0 %v2703_v5  ;;  %v2884_v57 = vsel %vm1128_vm4, %v7354_v8, %v2883_v12  ;;  %v2705_v19 = vshrl.u32 %v2675_v52, 16  ;;  %v2708_v50 = vshll.u32 %v2675_v52, 16  ;;  %v5701_v29 = vld [vmem:[%s7235_s4 + $0x80] sm:$0xff]   ;;  %v2858_v34 = vmul.bf16 %v6731_v6, %v7358_v0 }
 0x46a   : > { %5395 = vmatprep.subr.bf16.mxu0 %v5693_v38  ;;  %v2556_v14 = vsel %vm688_vm2, %v2546_v2, %v2555_v16  ;;  %v2714_v13 = vshrl.u32 %v2676_v37, 16  ;;  %v2717_v62 = vshll.u32 %v2676_v37, 16  ;;  %v2677_v32 = vmul.bf16 %v6746_v23, %v7359_v60  ;;  %v5703_v2 = vld [vmem:[%s7235_s4 + $0x138] sm:$0xff]  }
 0x46b   : > { %5416 = vmatpush3.bf16.msra.mxu1 %v5692_v9  ;;  %v2707_v4 = vrot.slane %v2705_v19, 4  ;;  %v2710_v36 = vrot.slane %v2708_v50, 5  ;;  %v2886_v17 = vshrl.u32 %v2857_v63, 16  ;;  %v2894_v48 = vshrl.u32 %v2858_v34, 16  ;;  %v7362_v19 = vld [vmem:[#allocation25_spill] sm:$0xff] }
 0x46c   : > { %5417 = vmatprep.subr.bf16.mxu1 %v5694_v51  ;;  %v2716_v42 = vrot.slane %v2714_v13, 4  ;;  %v2719_v1 = vrot.slane %v2717_v62, 5  ;;  %v2723_v3 = vshrl.u32 %v2677_v32, 16  ;;  %v2726_v7 = vshll.u32 %v2677_v32, 16  ;;  %v5711_v32 = vld [vmem:[%s7235_s4 + $0x118] sm:$0xff]  }
 0x46d   : > { %5396 = vmatpush3.bf16.msra.mxu0 %v5693_v38  ;;  %v2711_v9 = vor.u32 %v2710_v36, %v2707_v4  ;;  %v2888_v38 = vrot.slane %v2886_v17, 7  ;;  %v2859_v41 = vmul.bf16 %v6746_v23, %v7360_v61  ;;  %v2896_v5 = vrot.slane %v2894_v48, 7  ;;  %v5714_v48 = vld [vmem:[%s7235_s4 + $0x158] sm:$0xff]   ;;  %v7364_v61 = vld [vmem:[#allocation2_spill] sm:$0xff] }
 0x46e   : > { %5386 = vmatmul.mubr.bf16.gmra.mxu1 %v2556_v14  ;;  %5397 = vmatprep.subr.bf16.mxu0 %v5695_v11  ;;  %v2720_v21 = vor.u32 %v2719_v1, %v2716_v42  ;;  %v2725_v12 = vrot.slane %v2723_v3, 4  ;;  %v2897_v8 = vshll.u32 %v2858_v34, 16  ;;  %v6854_v50 = vmul.bf16 %v6716_v27, %v7362_v19  ;;  %v5712_v42 = vld [vmem:[%s7235_s4 + $0x160] sm:$0xff]   ;;  %v5716_v3 = vld [vmem:[%s7235_s4 + $0x150] sm:$0xff]  }
 0x46f   : > { %5418 = vmatpush3.bf16.msra.mxu1 %v5694_v51  ;;  %5429 = vmatprep.mubr.bf16.mxu1 %v2884_v57  ;;  %v7361_v51 = vld [vmem:[#allocation24_spill] sm:$0xff]  ;;  %v2712_v16 = vsel %vm481_vm0, %v6769_v49, %v2711_v9  ;;  %v5707_v49 = vld [vmem:[%s7235_s4 + $0x128] sm:$0xff]   ;;  %v2905_v0 = vshll.u32 %v2859_v41, 16 }
 0x470   : > { %5419 = vmatprep.subr.bf16.mxu1 %v5696_v22  ;;  %v3172_v56 = vmul.bf16 %v6712_v31, %v7361_v51  ;;  %v2721_v14 = vsel %vm481_vm0, %v2711_v9, %v2720_v21  ;;  %v2899_v52 = vor.u32 %v2897_v8, %v2896_v5  ;;  %v3201_v4 = vshll.u32 %v6854_v50, 16  ;;  %v5715_v9 = vld [vmem:[%s7235_s4 + $0x108] sm:$0xff]  }
 0x471   : > { %5398 = vmatpush3.bf16.msra.mxu0 %v5695_v11  ;;  %v2889_v11 = vshll.u32 %v2857_v63, 16 }
 0x472   : > { %5399 = vmatprep.subr.bf16.mxu0 %v5697_v39  ;;  %v2900_v62 = vsel %vm1128_vm4, %v2888_v38, %v2899_v52  ;;  %v3194_v34 = vshrl.u32 %v3172_v56, 16 }
 0x473   : > { %5420 = vmatpush3.bf16.msra.mxu1 %v5696_v22  ;;  %v2728_v22 = vrot.slane %v2726_v7, 5  ;;  %v2891_v57 = vor.u32 %v2889_v11, %v2888_v38  ;;  %v5717_v7 = vld [vmem:[%s7235_s4 + $0x100] sm:$0xff]   ;;  %v5718_v38 = vld [vmem:[%s7235_s4 + $0x148] sm:$0xff]  }
 0x474   : > { %5421 = vmatprep.subr.bf16.mxu1 %v5698_v24  ;;  %v5720_v11 = vld [vmem:[%s7235_s4 + $0x140] sm:$0xff]  }
 0x475   : > { %5400 = vmatpush3.bf16.msra.mxu0 %v5697_v39  ;;  %v2902_v39 = vshrl.u32 %v2859_v41, 16  ;;  %v2729_v37 = vor.u32 %v2728_v22, %v2725_v12  ;;  %v3350_v41 = vmul.bf16 %v6712_v31, %v7364_v61 }
 0x476   : > { %5401 = vmatprep.subr.bf16.mxu0 %v5699_v44 }
 0x477   : > { %5422 = vmatpush3.bf16.msra.mxu1 %v5698_v24  ;;  %v3196_v24 = vshll.u32 %v3172_v56, 16  ;;  %v2904_v13 = vrot.slane %v2902_v39, 7  ;;  %v7365_v56 = vld [vmem:[#allocation27_spill] sm:$0xff]  ;;  %v3372_v12 = vshrl.u32 %v3350_v41, 16  ;;  %v3375_v22 = vshll.u32 %v3350_v41, 16 }
 0x478   : > { %5423 = vmatprep.subr.bf16.mxu1 %v5700_v10 }
 0x479   : > { %5402 = vmatpush3.bf16.msra.mxu0 %v5699_v44  ;;  %v5708_v44 = vld [vmem:[%s7235_s4 + $0x170] sm:$0xff]   ;;  %v3198_v63 = vrot.slane %v3196_v24, 1  ;;  %v2907_v36 = vor.u32 %v2905_v0, %v2904_v13  ;;  %v3374_v24 = vrot.slane %v3372_v12, 3  ;;  %v5723_v13 = vld [vmem:[%s7235_s4 + $0x1a8] sm:$0xff]   ;;  %v3673_v12 = vmul.bf16 %v6716_v27, %v7345_v28 }
 0x47a   : > { %5403 = vmatprep.subr.bf16.mxu0 %v5701_v29 }
 0x47b   : > { %5424 = vmatpush3.bf16.msra.mxu1 %v5700_v10  ;;  %v2892_v10 = vsel %vm1128_vm4, %v6766_v26, %v2891_v57  ;;  %v5710_v26 = vld [vmem:[%s7235_s4 + $0x168] sm:$0xff]   ;;  %v3199_v60 = vor.u32 %v3198_v63, %v3194_v34  ;;  %v2908_v1 = vsel %vm1128_vm4, %v2896_v5, %v2907_v36  ;;  %v5719_v5 = vld [vmem:[%s7235_s4 + $0x1b8] sm:$0xff]   ;;  %v3205_v57 = vshrl.u32 %v6854_v50, 16  ;;  %v5725_v34 = vld [vmem:[%s7235_s4 + $0x1a0] sm:$0xff]  }
 0x47c   : > { %5425 = vmatprep.subr.bf16.mxu1 %v5702_v45 }
 0x47d   : > { %5404 = vmatpush3.bf16.msra.mxu0 %v5701_v29  ;;  %v2730_v29 = vsel %vm481_vm0, %v2720_v21, %v2729_v37  ;;  %v7363_v21 = vld [vmem:[#allocation26_spill] sm:$0xff]  ;;  %v3377_v37 = vrot.slane %v3375_v22, 4  ;;  %v5735_v22 = vld [vmem:[%s7235_s4 + $0x238] sm:$0xff]  }
 0x47e   : > { %5437 = vmatprep.subr.bf16.mxu0 %v5703_v2 }
 0x47f   : > { %5426 = vmatpush3.bf16.msra.mxu1 %v5702_v45  ;;  %v3203_v45 = vrot.slane %v3201_v4, 1 }
 0x480   : > { %5406 = vmatmul.mubr.bf16.vlgmr.msra.gmra.mxu0 %v2712_v16  ;;  %5427 = vmatprep.subr.bf16.mxu1 %v5704_v54  ;;  %v3175_v16 = vmul.bf16 %v6746_v23, %v7365_v56  ;;  %v5734_v56 = vld [vmem:[%s7235_s4 + $0x1c8] sm:$0xff]  }
 0x481   : > { %5409 = vmatprep.mubr.bf16.mxu0 %v2721_v14  ;;  %5438 = vmatpush3.bf16.msra.mxu0 %v5703_v2  ;;  %v3204_v17 = vsel %vm1089_vm1, %v3199_v60, %v3203_v45  ;;  %v5713_v2 = vld [vmem:[%s7235_s4 + $0x110] sm:$0xff]   ;;  %v5726_v60 = vld [vmem:[%s7235_s4 + $0x1e8] sm:$0xff]  }
 0x482   : > { %5439 = vmatprep.subr.bf16.mxu0 %v5705_v35  ;;  %v3217_v52 = vshll.u32 %v3175_v16, 16  ;;  %v3221_v4 = vshrl.u32 %v3175_v16, 16 }
 0x483   : > { %5428 = vmatpush3.bf16.msra.mxu1 %v5704_v54  ;;  %v3174_v54 = vmul.bf16 %v6731_v6, %v7363_v21  ;;  %v5731_v21 = vld [vmem:[%s7235_s4 + $0x188] sm:$0xff]  }
 0x484   : > { %5461 = vmatprep.subr.bf16.mxu1 %v5706_v58 }
 0x485   : > { %5440 = vmatpush3.bf16.msra.mxu0 %v5705_v35  ;;  %v3351_v35 = vmul.bf16 %v6716_v27, %v7344_v15  ;;  %v3209_v51 = vshll.u32 %v3174_v54, 16  ;;  %v3213_v39 = vshrl.u32 %v3174_v54, 16 }
 0x486   : > { %5430 = vmatmul.mubr.bf16.vlgmr.msra.gmra.mxu1 %v2892_v10  ;;  %5441 = vmatprep.subr.bf16.mxu0 %v5707_v49  ;;  %v3207_v10 = vor.u32 %v3205_v57, %v3203_v45  ;;  %v5727_v45 = vld [vmem:[%s7235_s4 + $0x198] sm:$0xff]   ;;  %v3702_v57 = vshrl.u32 %v3673_v12, 16 }
 0x487   : > { %5433 = vmatprep.mubr.bf16.mxu1 %v2900_v62  ;;  %5462 = vmatpush3.bf16.msra.mxu1 %v5706_v58  ;;  %v3380_v14 = vshrl.u32 %v3351_v35, 16  ;;  %v3383_v15 = vshll.u32 %v3351_v35, 16  ;;  %v5721_v58 = vld [vmem:[%s7235_s4 + $0x1b0] sm:$0xff]   ;;  %v3211_v8 = vrot.slane %v3209_v51, 1  ;;  %v3219_v62 = vrot.slane %v3217_v52, 1 }
 0x488   : > { %5410 = vmatmul.mubr.bf16.gmra.mxu0 %v2730_v29  ;;  %5463 = vmatprep.subr.bf16.mxu1 %v5708_v44  ;;  %v5724_v29 = vld [vmem:[%s7235_s4 + $0x1f0] sm:$0xff]  }
 0x489   : > { %5442 = vmatpush3.bf16.msra.mxu0 %v5707_v49  ;;  %5453 = vmatprep.mubr.bf16.mxu0 %v6712_v31  ;;  %v5722_v49 = vld [vmem:[%s7235_s4 + $0x1f8] sm:$0xff]   ;;  %v3385_v19 = vrot.slane %v3383_v15, 4  ;;  %v3215_v50 = vor.u32 %v3213_v39, %v3211_v8  ;;  %v3212_v0 = vsel %vm1089_vm1, %v3207_v10, %v3211_v8  ;;  %v3705_v39 = vshll.u32 %v3673_v12, 16 }
 0x48a   : > { %5443 = vmatprep.subr.bf16.mxu0 %v5709_v46 }
 0x48b   : > { %5464 = vmatpush3.bf16.msra.mxu1 %v5708_v44  ;;  %v3382_v44 = vrot.slane %v3380_v14, 3 }
 0x48c   : > { %5465 = vmatprep.subr.bf16.mxu1 %v5710_v26 }
 0x48d   : > { %5444 = vmatpush3.bf16.msra.mxu0 %v5709_v46  ;;  %v3378_v46 = vor.u32 %v3377_v37, %v3374_v24  ;;  %v6920_v63 = vor.u32 %v3385_v19, %v3382_v44  ;;  %v3704_v37 = vrot.slane %v3702_v57, 4  ;;  %v3707_v44 = vrot.slane %v3705_v39, 5  ;;  %v5738_v19 = vld [vmem:[%s7235_s4 + $0x228] sm:$0xff]  }
 0x48e   : > { %5434 = vmatmul.mubr.bf16.gmra.mxu1 %v2908_v1  ;;  %5445 = vmatprep.subr.bf16.mxu0 %v5711_v32  ;;  %v7366_v1 = vld [vmem:[#allocation28_spill] sm:$0xff] }
 0x48f   : > { %5466 = vmatpush3.bf16.msra.mxu1 %v5710_v26  ;;  %5477 = vmatprep.mubr.bf16.mxu1 %v3204_v17  ;;  %v3220_v26 = vsel %vm1089_vm1, %v3215_v50, %v3219_v62  ;;  %v3387_v36 = vsel %vm688_vm2, %v3378_v46, %v6920_v63  ;;  %v7367_v17 = vrot.slane %v7366_v1, 1  ;;  %v3708_v50 = vor.u32 %v3707_v44, %v3704_v37 }
 0x490   : > { %5467 = vmatprep.subr.bf16.mxu1 %v5712_v42 }
 0x491   : > { %5446 = vmatpush3.bf16.msra.mxu0 %v5711_v32  ;;  %v3223_v32 = vor.u32 %v3221_v4, %v3219_v62  ;;  %v7369_v62 = vld [vmem:[#allocation29_spill] sm:$0xff] }
 0x492   : > { %5447 = vmatprep.subr.bf16.mxu0 %v5713_v2 }
 0x493   : > { %5468 = vmatpush3.bf16.msra.mxu1 %v5712_v42  ;;  %v5728_v42 = vld [vmem:[%s7235_s4 + $0x1e0] sm:$0xff]  }
 0x494   : > { %5469 = vmatprep.subr.bf16.mxu1 %v5714_v48 }
 0x495   : > { %5448 = vmatpush3.bf16.msra.mxu0 %v5713_v2  ;;  %v3224_v2 = vsel %vm1089_vm1, %v3223_v32, %v7367_v17  ;;  %v7370_v17 = vld [vmem:[#allocation30_spill] sm:$0xff] }
 0x496   : > { %5449 = vmatprep.subr.bf16.mxu0 %v5715_v9 }
 0x497   : > { %5470 = vmatpush3.bf16.msra.mxu1 %v5714_v48  ;;  %v5729_v48 = vld [vmem:[%s7235_s4 + $0x190] sm:$0xff]  }
 0x498   : > { %5471 = vmatprep.subr.bf16.mxu1 %v5716_v3 }
 0x499   : > { %5450 = vmatpush3.bf16.msra.mxu0 %v5715_v9  ;;  %v3352_v9 = vmul.bf16 %v6731_v6, %v7348_v33  ;;  %v5732_v33 = vld [vmem:[%s7235_s4 + $0x1d0] sm:$0xff]  }
 0x49a   : > { %5451 = vmatprep.subr.bf16.mxu0 %v5717_v7 }
 0x49b   : > { %5472 = vmatpush3.bf16.msra.mxu1 %v5716_v3  ;;  %v5730_v3 = vld [vmem:[%s7235_s4 + $0x1d8] sm:$0xff]   ;;  %v3389_v54 = vshrl.u32 %v3352_v9, 16 }
 0x49c   : > { %5473 = vmatprep.subr.bf16.mxu1 %v5718_v38 }
 0x49d   : > { %5452 = vmatpush3.bf16.msra.mxu0 %v5717_v7  ;;  %v3353_v7 = vmul.bf16 %v6746_v23, %v7349_v59  ;;  %v5733_v59 = vld [vmem:[%s7235_s4 + $0x180] sm:$0xff]   ;;  %v3391_v41 = vrot.slane %v3389_v54, 3 }
 0x49e   : > { %5485 = vmatprep.subr.bf16.mxu0 %v5719_v5 }
 0x49f   : > { %5474 = vmatpush3.bf16.msra.mxu1 %v5718_v38  ;;  %v3398_v38 = vshrl.u32 %v3353_v7, 16  ;;  %v3401_v61 = vshll.u32 %v3353_v7, 16 }
 0x4a0   : > { %5454 = vmatmul.mubr.bf16.vlgmr.msra.gmra.mxu0 %v6716_v27  ;;  %5475 = vmatprep.subr.bf16.mxu1 %v5720_v11  ;;  %v5737_v27 = vld [vmem:[%s7235_s4 + $0x230] sm:$0xff]  }
 0x4a1   : > { %5457 = vmatprep.mubr.bf16.mxu0 %v6731_v6  ;;  %5486 = vmatpush3.bf16.msra.mxu0 %v5719_v5  ;;  %v7368_v5 = vld [vmem:[#allocation4_spill] sm:$0xff]  ;;  %v3400_v16 = vrot.slane %v3398_v38, 3 }
 0x4a2   : > { %5487 = vmatprep.subr.bf16.mxu0 %v5721_v58  ;;  %v3672_v51 = vmul.bf16 %v6712_v31, %v7368_v5 }
 0x4a3   : > { %5476 = vmatpush3.bf16.msra.mxu1 %v5720_v11  ;;  %v3403_v11 = vrot.slane %v3401_v61, 4 }
 0x4a4   : > { %5509 = vmatprep.subr.bf16.mxu1 %v5722_v49  ;;  %v3694_v15 = vshrl.u32 %v3672_v51, 16  ;;  %v3697_v8 = vshll.u32 %v3672_v51, 16 }
 0x4a5   : > { %5488 = vmatpush3.bf16.msra.mxu0 %v5721_v58  ;;  %v3404_v31 = vor.u32 %v3403_v11, %v3400_v16  ;;  %v5736_v58 = vld [vmem:[%s7235_s4 + $0x1c0] sm:$0xff]  }
 0x4a6   : > { %5478 = vmatmul.mubr.bf16.vlgmr.msra.gmra.mxu1 %v3212_v0  ;;  %5489 = vmatprep.subr.bf16.mxu0 %v5723_v13  ;;  %v3696_v52 = vrot.slane %v3694_v15, 4  ;;  %v3699_v24 = vrot.slane %v3697_v8, 5  ;;  %v3674_v0 = vmul.bf16 %v6731_v6, %v7355_v20 }
 0x4a7   : > { %5481 = vmatprep.mubr.bf16.mxu1 %v3220_v26  ;;  %5510 = vmatpush3.bf16.msra.mxu1 %v5722_v49  ;;  %v3406_v46 = vsel %vm688_vm2, %v3404_v31, %v7369_v62  ;;  %v3675_v26 = vmul.bf16 %v6746_v23, %v7356_v43 }
 0x4a8   : > { %5458 = vmatmul.mubr.bf16.gmra.mxu0 %v6746_v23  ;;  %5511 = vmatprep.subr.bf16.mxu1 %v5724_v29  ;;  %v3700_v10 = vor.u32 %v3699_v24, %v3696_v52  ;;  %v3711_v4 = vshrl.u32 %v3674_v0, 16 }
 0x4a9   : > { %5490 = vmatpush3.bf16.msra.mxu0 %v5723_v13  ;;  %5501 = vmatprep.mubr.bf16.mxu0 %v3387_v36  ;;  %v5739_v13 = vld [vmem:[%s7235_s4 + $0x220] sm:$0xff]   ;;  %v3723_v36 = vshll.u32 %v3675_v26, 16 }
 0x4aa   : > { %5491 = vmatprep.subr.bf16.mxu0 %v5725_v34  ;;  %v3713_v6 = vrot.slane %v3711_v4, 4 }
 0x4ab   : > { %5512 = vmatpush3.bf16.msra.mxu1 %v5724_v29  ;;  %v3549_v29 = vsel %vm561_vm3, %v2402_v25, %v7347_v40  ;;  %v3714_v40 = vshll.u32 %v3674_v0, 16  ;;  %v3720_v25 = vshrl.u32 %v3675_v26, 16  ;;  %v3725_v23 = vrot.slane %v3723_v36, 5 }
 0x4ac   : > { %5513 = vmatprep.subr.bf16.mxu1 %v5726_v60 }
 0x4ad   : > { %5492 = vmatpush3.bf16.msra.mxu0 %v5725_v34  ;;  %v5742_v34 = vld [vmem:[%s7235_s4 + $0x208] sm:$0xff]   ;;  %v3716_v20 = vrot.slane %v3714_v40, 5  ;;  %v3722_v32 = vrot.slane %v3720_v25, 4 }
 0x4ae   : > { %5482 = vmatmul.mubr.bf16.gmra.mxu1 %v3224_v2  ;;  %5493 = vmatprep.subr.bf16.mxu0 %v5727_v45 }
 0x4af   : > { %5514 = vmatpush3.bf16.msra.mxu1 %v5726_v60  ;;  %5525 = vmatprep.mubr.bf16.mxu1 %v6740_v55  ;;  %v3392_v55 = vshll.u32 %v3352_v9, 16  ;;  %v5743_v60 = vld [vmem:[%s7235_s4 + $0x200] sm:$0xff]   ;;  %v3717_v43 = vor.u32 %v3716_v20, %v3713_v6 }
 0x4b0   : > { %5515 = vmatprep.subr.bf16.mxu1 %v5728_v42 }
 0x4b1   : > { %5494 = vmatpush3.bf16.msra.mxu0 %v5727_v45  ;;  %v3394_v35 = vrot.slane %v3392_v55, 4  ;;  %v3726_v45 = vor.u32 %v3725_v23, %v3722_v32 }
 0x4b2   : > { %5495 = vmatprep.subr.bf16.mxu0 %v5729_v48 }
 0x4b3   : > { %5516 = vmatpush3.bf16.msra.mxu1 %v5728_v42  ;;  %v3395_v14 = vor.u32 %v3394_v35, %v3391_v41  ;;  %v3718_v42 = vsel %vm481_vm0, %v3708_v50, %v3717_v43  ;;  %v3727_v1 = vsel %vm481_vm0, %v3717_v43, %v3726_v45  ;;  %v3728_v2 = vsel %vm481_vm0, %v3726_v45, %v7370_v17 }
 0x4b4   : > { %5517 = vmatprep.subr.bf16.mxu1 %v5730_v3 }
 0x4b5   : > { %5496 = vmatpush3.bf16.msra.mxu0 %v5729_v48  ;;  %v3396_v28 = vsel %vm688_vm2, %v6920_v63, %v3395_v14  ;;  %v3405_v49 = vsel %vm688_vm2, %v3395_v14, %v3404_v31  ;;  %v3709_v63 = vsel %vm481_vm0, %v3700_v10, %v3708_v50 }
 0x4b6   : > { %5497 = vmatprep.subr.bf16.mxu0 %v5731_v21 }
 0x4b7   : > { %5518 = vmatpush3.bf16.msra.mxu1 %v5730_v3 }
 0x4b8   : > { %5519 = vmatprep.subr.bf16.mxu1 %v5732_v33 }
 0x4b9   : > { %5498 = vmatpush3.bf16.msra.mxu0 %v5731_v21 }
 0x4ba   : > { %5499 = vmatprep.subr.bf16.mxu0 %v5733_v59 }
 0x4bb   : > { %5520 = vmatpush3.bf16.msra.mxu1 %v5732_v33 }
 0x4bc   : > { %5521 = vmatprep.subr.bf16.mxu1 %v5734_v56 }
 0x4bd   : > { %5500 = vmatpush3.bf16.msra.mxu0 %v5733_v59 }
 0x4be   : > { %5533 = vmatprep.subr.bf16.mxu0 %v5735_v22 }
 0x4bf   : > { %5522 = vmatpush3.bf16.msra.mxu1 %v5734_v56 }
 0x4c0   : > { %5502 = vmatmul.mubr.bf16.vlgmr.msra.gmra.mxu0 %v3396_v28  ;;  %5523 = vmatprep.subr.bf16.mxu1 %v5736_v58 }
 0x4c1   : > { %5505 = vmatprep.mubr.bf16.mxu0 %v3405_v49  ;;  %5534 = vmatpush3.bf16.msra.mxu0 %v5735_v22 }
 0x4c2   : > { %5535 = vmatprep.subr.bf16.mxu0 %v5737_v27 }
 0x4c3   : > { %5524 = vmatpush3.bf16.msra.mxu1 %v5736_v58 }
 0x4c5   : > { %5536 = vmatpush3.bf16.msra.mxu0 %v5737_v27 }
 0x4c6   : > { %5526 = vmatmul.mubr.bf16.vlgmr.msra.gmra.mxu1 %v6750_v18  ;;  %5537 = vmatprep.subr.bf16.mxu0 %v5738_v19  ;;  %v5740_v18 = vld [vmem:[%s7235_s4 + $0x218] sm:$0xff]  }
 0x4c7   : > { %5529 = vmatprep.mubr.bf16.mxu1 %v6778_v47  ;;  %v5741_v47 = vld [vmem:[%s7235_s4 + $0x210] sm:$0xff]  }
 0x4c8   : > { %5506 = vmatmul.mubr.bf16.gmra.mxu0 %v3406_v46 }
 0x4c9   : > { %5538 = vmatpush3.bf16.msra.mxu0 %v5738_v19  ;;  %5549 = vmatprep.mubr.bf16.mxu0 %v3709_v63 }
 0x4ca   : > { %5539 = vmatprep.subr.bf16.mxu0 %v5739_v13 }
 0x4cd   : > { %5540 = vmatpush3.bf16.msra.mxu0 %v5739_v13 }
 0x4ce   : > { %5530 = vmatmul.mubr.bf16.gmra.mxu1 %v3549_v29  ;;  %5541 = vmatprep.subr.bf16.mxu0 %v5740_v18 }
 0x4d1   : > { %5542 = vmatpush3.bf16.msra.mxu0 %v5740_v18 }
 0x4d2   : > { %5543 = vmatprep.subr.bf16.mxu0 %v5741_v47 }
 0x4d5   : > { %5544 = vmatpush3.bf16.msra.mxu0 %v5741_v47 }
 0x4d6   : > { %5545 = vmatprep.subr.bf16.mxu0 %v5742_v34 }
 0x4d9   : > { %5546 = vmatpush3.bf16.msra.mxu0 %v5742_v34 }
 0x4da   : > { %5547 = vmatprep.subr.bf16.mxu0 %v5743_v60 }
 0x4dd   : > { %5548 = vmatpush3.bf16.msra.mxu0 %v5743_v60 }
 0x4e0   : > { %5550 = vmatmul.mubr.bf16.vlgmr.msra.gmra.mxu0 %v3718_v42 }
 0x4e1   : > { %5553 = vmatprep.mubr.bf16.mxu0 %v3727_v1 }
 0x4e8   : > { %5554 = vmatmul.mubr.bf16.gmra.mxu0 %v3728_v2 }
 0x51f   : > { %v5359_v48 = vpop.f32.mrf.mxu0 }
 0x521   : > { %v2490_v9 = vpop.f32.mrf.mxu0 }
 0x523   : > { %v5360_v3 = vpop.f32.mrf.mxu0 }
 0x525   : > { %v2493_v7 = vpop.f32.mrf.mxu0 }
 0x526   : > { %v5383_v21 = vpop.f32.mrf.mxu1 }
 0x527   : > { %v2652_v42 = vadd.f32 %v5383_v21, %v5359_v48 }
 0x528   : > { %v7019_v54 = vpop.f32.mrf.mxu0  ;;  %v2643_v55 = vpop.f32.mrf.mxu1 }
 0x529   : > { %v2644_v45 = vadd.f32 %v2643_v55, %v2490_v9 }
 0x52a   : > { %v2506_v33 = vpop.f32.mrf.mxu0  ;;  %v5384_v38 = vpop.f32.mrf.mxu1 }
 0x52b   : > { %v2655_v53 = vadd.f32 %v5384_v38, %v5360_v3 }
 0x52c   : > { %v7021_v61 = vpop.f32.mrf.mxu0  ;;  %v2646_v59 = vpop.f32.mrf.mxu1 }
 0x52d   : > { %v2647_v1 = vadd.f32 %v2646_v59, %v2493_v7 }
 0x52e   : > { %v7023_v41 = vpop.f32.mrf.mxu0  ;;  %v7025_v35 = vpop.f32.mrf.mxu1 }
 0x52f   : > { %v2668_v21 = vadd.f32 %v7025_v35, %v7019_v54 }
 0x530   : > { %v2659_v51 = vpop.f32.mrf.mxu1 }
 0x532   : > { %v7027_v16 = vpop.f32.mrf.mxu1 }
 0x534   : > { %v2662_v12 = vpop.f32.mrf.mxu1 }
 0x535   : > { %v2663_v3 = vadd.f32 %v2662_v12, %v7023_v41 }
 0x540   : > { %v5407_v5 = vpop.f32.mrf.mxu0 }
 0x542   : > { %v2817_v56 = vpop.f32.mrf.mxu0 }
 0x543   : > { %v2848_v17 = vadd.f32 %v2817_v56, %v2644_v45 }
 0x544   : > { %v5408_v11 = vpop.f32.mrf.mxu0 }
 0x546   : > { %v2820_v22 = vpop.f32.mrf.mxu0  ;;  %v5431_v14 = vpop.f32.mrf.mxu1 }
 0x548   : > { %v7029_v15 = vpop.f32.mrf.mxu0  ;;  %v2995_v31 = vpop.f32.mrf.mxu1 }
 0x549   : > { %7371 = vst [vmem:[#allocation33_spill] sm:$0xff] %v7029_v15 }
 0x54a   : > { %v2833_v58 = vpop.f32.mrf.mxu0  ;;  %v5432_v8 = vpop.f32.mrf.mxu1 }
 0x54c   : > { %v7031_v57 = vpop.f32.mrf.mxu0  ;;  %v2998_v39 = vpop.f32.mrf.mxu1 }
 0x54d   : > { %7372 = vst [vmem:[#allocation35_spill] sm:$0xff] %v7031_v57 }
 0x54e   : > { %v2836_v27 = vpop.f32.mrf.mxu0  ;;  %v7033_v28 = vpop.f32.mrf.mxu1 }
 0x54f   : > { %7373 = vst [vmem:[#allocation34_spill] sm:$0xff] %v7033_v28 }
 0x550   : > { %v3011_v49 = vpop.f32.mrf.mxu1  ;;  %v7383_v56 = vld [vmem:[#allocation33_spill] sm:$0xff] }
 0x552   : > { %v7035_v37 = vpop.f32.mrf.mxu1 }
 0x553   : > { %7374 = vst [vmem:[#allocation36_spill] sm:$0xff] %v7035_v37 }
 0x554   : > { %v7037_v19 = vpop.f32.mrf.mxu1  ;;  %v7384_v41 = vld [vmem:[#allocation35_spill] sm:$0xff] }
 0x555   : > { %7375 = vst [vmem:[#allocation38_spill] sm:$0xff] %v7037_v19 }
 0x560   : > { %v5455_v52 = vpop.f32.mrf.mxu0 }
 0x562   : > { %v3133_v24 = vpop.f32.mrf.mxu0 }
 0x564   : > { %v5456_v44 = vpop.f32.mrf.mxu0 }
 0x566   : > { %v3136_v10 = vpop.f32.mrf.mxu0  ;;  %v5479_v50 = vpop.f32.mrf.mxu1 }
 0x568   : > { %v7039_v13 = vpop.f32.mrf.mxu0  ;;  %v3311_v62 = vpop.f32.mrf.mxu1 }
 0x569   : > { %7376 = vst [vmem:[#allocation37_spill] sm:$0xff] %v7039_v13 }
 0x56a   : > { %v3149_v46 = vpop.f32.mrf.mxu0  ;;  %v5480_v63 = vpop.f32.mrf.mxu1 }
 0x56c   : > { %v7041_v18 = vpop.f32.mrf.mxu0  ;;  %v3314_v29 = vpop.f32.mrf.mxu1 }
 0x56d   : > { %7377 = vst [vmem:[#allocation39_spill] sm:$0xff] %v7041_v18  ;;  %v3026_v18 = vadd.f32 %v2995_v31, %v2848_v17 }
 0x56e   : > { %v7043_v47 = vpop.f32.mrf.mxu0  ;;  %v7045_v0 = vpop.f32.mrf.mxu1 }
 0x56f   : > { %7378 = vst [vmem:[#allocation41_spill] sm:$0xff] %v7043_v47  ;;  %7379 = vst [vmem:[#allocation40_spill] sm:$0xff] %v7045_v0  ;;  %v2850_v0 = vadd.f32 %v5407_v5, %v2652_v42  ;;  %v2660_v47 = vadd.f32 %v2659_v51, %v2506_v33  ;;  %v3164_v19 = vadd.f32 %v3133_v24, %v3026_v18 }
 0x570   : > { %v3327_v34 = vpop.f32.mrf.mxu1  ;;  %v2671_v51 = vadd.f32 %v7027_v16, %v7021_v61 }
 0x571   : > { %v3028_v13 = vadd.f32 %v5431_v14, %v2850_v0  ;;  %v3342_v7 = vadd.f32 %v3311_v62, %v3164_v19 }
 0x572   : > { %v7047_v40 = vpop.f32.mrf.mxu1  ;;  %v2855_v12 = vadd.f32 %v7384_v41, %v2671_v51 }
 0x573   : > { %7380 = vst [vmem:[#allocation42_spill] sm:$0xff] %v7047_v40  ;;  %v2849_v40 = vadd.f32 %v2820_v22, %v2647_v1  ;;  %v3166_v9 = vadd.f32 %v5455_v52, %v3028_v13  ;;  %v2853_v22 = vadd.f32 %v2836_v27, %v2663_v3  ;;  %v7385_v52 = vld [vmem:[#allocation34_spill] sm:$0xff]  ;;  %v7387_v27 = vld [vmem:[#allocation36_spill] sm:$0xff]  ;;  %v7388_v13 = vld [vmem:[#allocation37_spill] sm:$0xff] }
 0x574   : > { %v7049_v36 = vpop.f32.mrf.mxu1 }
 0x575   : > { %7381 = vst [vmem:[#allocation8_spill] sm:$0xff] %v7049_v36  ;;  %v2851_v36 = vadd.f32 %v5408_v11, %v2655_v53  ;;  %v3027_v37 = vadd.f32 %v2998_v39, %v2849_v40  ;;  %v3344_v33 = vadd.f32 %v5479_v50, %v3166_v9  ;;  %v2854_v11 = vadd.f32 %v7383_v56, %v2668_v21  ;;  %v7390_v40 = vld [vmem:[#allocation39_spill] sm:$0xff] }
 0x576   : > { %v3033_v50 = vadd.f32 %v7387_v27, %v2855_v12 }
 0x577   : > { %v3029_v15 = vadd.f32 %v5432_v8, %v2851_v36  ;;  %v3165_v48 = vadd.f32 %v3136_v10, %v3027_v37 }
 0x578   : > { %v3171_v36 = vadd.f32 %v7390_v40, %v3033_v50 }
 0x579   : > { %v3167_v59 = vadd.f32 %v5456_v44, %v3029_v15  ;;  %v3343_v53 = vadd.f32 %v3314_v29, %v3165_v48  ;;  %v3032_v15 = vadd.f32 %v7385_v52, %v2854_v11 }
 0x57b   : > { %v3345_v8 = vadd.f32 %v5480_v63, %v3167_v59  ;;  %v3170_v62 = vadd.f32 %v7388_v13, %v3032_v15 }
 0x580   : > { %v5503_v26 = vpop.f32.mrf.mxu0 }
 0x581   : > { %v3526_v39 = vadd.f32 %v5503_v26, %v3344_v33 }
 0x582   : > { %v3493_v4 = vpop.f32.mrf.mxu0 }
 0x583   : > { %v3524_v5 = vadd.f32 %v3493_v4, %v3342_v7 }
 0x584   : > { %v5504_v25 = vpop.f32.mrf.mxu0 }
 0x585   : > { %v3527_v19 = vadd.f32 %v5504_v25, %v3345_v8  ;;  %v7392_v25 = vld [vmem:[#allocation8_spill] sm:$0xff] }
 0x586   : > { %v3496_v60 = vpop.f32.mrf.mxu0  ;;  %v5527_v6 = vpop.f32.mrf.mxu1 }
 0x587   : > { %v3525_v54 = vadd.f32 %v3496_v60, %v3343_v53  ;;  %v3666_v61 = vadd.f32 %v5527_v6, %v3526_v39 }
 0x588   : > { %v7051_v20 = vpop.f32.mrf.mxu0  ;;  %v3633_v32 = vpop.f32.mrf.mxu1 }
 0x589   : > { %7382 = vst [vmem:[#allocation10_spill] sm:$0xff] %v7051_v20  ;;  %v2852_v20 = vadd.f32 %v2833_v58, %v2660_v47  ;;  %v3664_v35 = vadd.f32 %v3633_v32, %v3524_v5 }
 0x58a   : > { %v3509_v23 = vpop.f32.mrf.mxu0  ;;  %v5528_v43 = vpop.f32.mrf.mxu1 }
 0x58b   : > { %v3030_v55 = vadd.f32 %v3011_v49, %v2852_v20  ;;  %v7386_v49 = vld [vmem:[#allocation38_spill] sm:$0xff]  ;;  %v3667_v0 = vadd.f32 %v5528_v43, %v3527_v19 }
 0x58c   : > { %v7053_v2 = vpop.f32.mrf.mxu0  ;;  %v3636_v30 = vpop.f32.mrf.mxu1  ;;  %v3031_v24 = vadd.f32 %v7386_v49, %v2853_v22  ;;  %v4772_v19 = vld [vmem:[%s7237_s6 + $0x6] ss:$0 sm:$0xff] }
 0x58d   : > { %v3168_v14 = vadd.f32 %v3149_v46, %v3030_v55  ;;  %v3665_v16 = vadd.f32 %v3636_v30, %v3525_v54  ;;  %v7389_v46 = vld [vmem:[#allocation41_spill] sm:$0xff]  ;;  %v4770_v30 = vld [vmem:[%s7237_s6 + $0x4] ss:$0 sm:$0xff] }
 0x58e   : > { %v3512_v28 = vpop.f32.mrf.mxu0  ;;  %v5531_v57 = vpop.f32.mrf.mxu1  ;;  %v3169_v63 = vadd.f32 %v7389_v46, %v3031_v24 }
 0x58f   : > { %v3346_v37 = vadd.f32 %v3327_v34, %v3168_v14  ;;  %v7391_v34 = vld [vmem:[#allocation40_spill] sm:$0xff] }
 0x590   : > { %v3649_v31 = vpop.f32.mrf.mxu1  ;;  %v3348_v60 = vadd.f32 %v7391_v34, %v3170_v62  ;;  %v3347_v6 = vadd.f32 %v7392_v25, %v3169_v63  ;;  %v7394_v17 = vld [vmem:[#allocation10_spill] sm:$0xff] }
 0x591   : > { %v3528_v47 = vadd.f32 %v3509_v23, %v3346_v37  ;;  %v7393_v23 = vld [vmem:[#allocation42_spill] sm:$0xff] }
 0x592   : > { %v5532_v18 = vpop.f32.mrf.mxu1  ;;  %v3349_v43 = vadd.f32 %v7393_v23, %v3171_v36  ;;  %v3530_v9 = vadd.f32 %v7394_v17, %v3348_v60  ;;  %v3529_v21 = vadd.f32 %v3512_v28, %v3347_v6 }
 0x593   : > { %v3668_v32 = vadd.f32 %v3649_v31, %v3528_v47 }
 0x594   : > { %v3652_v48 = vpop.f32.mrf.mxu1  ;;  %v3531_v59 = vadd.f32 %v7053_v2, %v3349_v43  ;;  %v3670_v53 = vadd.f32 %v5531_v57, %v3530_v9 }
 0x595   : > { %v3669_v5 = vadd.f32 %v3652_v48, %v3529_v21 }
 0x596   : > { %v3671_v11 = vadd.f32 %v5532_v18, %v3531_v59 }
 0x5a0   : > { %v5551_v38 = vpop.f32.mrf.mxu0 }
 0x5a1   : > { %v3848_v26 = vadd.f32 %v5551_v38, %v3666_v61 }
 0x5a2   : > { %v3815_v58 = vpop.f32.mrf.mxu0 }
 0x5a3   : > { %v3846_v10 = vadd.f32 %v3815_v58, %v3664_v35  ;;  %v3860_v3 = vadd.f32 %v4770_v30, %v3848_v26 }
 0x5a4   : > { %v5552_v44 = vpop.f32.mrf.mxu0 }
 0x5a5   : > { %v7073_v45 = vadd.f32 %v4770_v30, %v3846_v10  ;;  %v3849_v42 = vadd.f32 %v5552_v44, %v3667_v0 }
 0x5a6   : > { %v3818_v29 = vpop.f32.mrf.mxu0 }
 0x5a7   : > { %v3847_v4 = vadd.f32 %v3818_v29, %v3665_v16  ;;  %v3861_v51 = vadd.f32 %v4770_v30, %v3849_v42 }
 0x5a8   : > { %v5555_v20 = vpop.f32.mrf.mxu0 }
 0x5a9   : > { %v7075_v1 = vadd.f32 %v4770_v30, %v3847_v4  ;;  %v3852_v14 = vadd.f32 %v5555_v20, %v3670_v53 }
 0x5aa   : > { %v3831_v7 = vpop.f32.mrf.mxu0 }
 0x5ab   : > { %v3868_v55 = vadd.f32 %v7075_v1, %v7073_v45  ;;  %v3850_v38 = vadd.f32 %v3831_v7, %v3668_v32  ;;  %v3864_v35 = vadd.f32 %v4770_v30, %v3852_v14 }
 0x5ac   : > { %v5556_v33 = vpop.f32.mrf.mxu0 }
 0x5ad   : > { %v3869_v56 = vadd.f32 %v3868_v55, %v3860_v3  ;;  %v3862_v31 = vadd.f32 %v4770_v30, %v3850_v38  ;;  %v3853_v28 = vadd.f32 %v5556_v33, %v3671_v11 }
 0x5ae   : > { %v3834_v22 = vpop.f32.mrf.mxu0 }
 0x5af   : > { %v3870_v58 = vadd.f32 %v3869_v56, %v3861_v51  ;;  %v3851_v8 = vadd.f32 %v3834_v22, %v3669_v5  ;;  %v3865_v12 = vadd.f32 %v4770_v30, %v3853_v28 }
 0x5b1   : > { %v3871_v39 = vadd.f32 %v3870_v58, %v3862_v31  ;;  %v3863_v54 = vadd.f32 %v4770_v30, %v3851_v8 }
 0x5b3   : > { %v3872_v41 = vadd.f32 %v3871_v39, %v3863_v54 }
 0x5b5   : > { %v3873_v52 = vadd.f32 %v3872_v41, %v3864_v35 }
 0x5b7   : > { %v3874_v15 = vadd.f32 %v3873_v52, %v3865_v12 }
 0x5b9   : > { %v3875_v2 = vrot.slane %v3874_v15, 4 }
 0x5bb   : > { %v3876_v49 = vadd.f32 %v3875_v2, %v3874_v15 }
 0x5bd   : > { %v3877_v57 = vrot.slane %v3876_v49, 2 }
 0x5bf   : > { %v3878_v24 = vadd.f32 %v3877_v57, %v3876_v49  ;;  %v5744_v49 = vld [vmem:[%s7236_s5 + $0x78] sm:$0xff]  }
 0x5c0   : > { %v5745_v57 = vld [vmem:[%s7236_s5 + $0x38] sm:$0xff]   ;;  %5061 = vmatprep.subr.bf16.mxu1 %v5744_v49 }
 0x5c1   : > { %v3879_v37 = vrot.slane %v3878_v24, 1  ;;  %5062 = vmatpush3.bf16.msra.mxu1 %v5745_v57 }
 0x5c3   : > { %v3880_v44 = vadd.f32 %v3879_v37, %v3878_v24  ;;  %v5746_v24 = vld [vmem:[%s7236_s5 + $0x70] sm:$0xff]  }
 0x5c4   : > { %v5747_v37 = vld [vmem:[%s7236_s5 + $0x30] sm:$0xff]   ;;  %5063 = vmatprep.subr.bf16.mxu1 %v5746_v24 }
 0x5c5   : > { %v3895_v61 = vsel %vm6566_vm7, %v3880_v44, 0.0  ;;  %v3881_v10 = vsel %vm2177_vm8, %v3880_v44, 0.0  ;;  %v5748_v44 = vld [vmem:[%s7236_s5 + $0x68] sm:$0xff]   ;;  %5064 = vmatpush3.bf16.msra.mxu1 %v5747_v37 }
 0x5c6   : > { %v3896_v27 = vsel %vm2180_vm9, %v3895_v61, 0.0  ;;  %v3882_v50 = vsel %vm2180_vm9, %v3881_v10, 0.0  ;;  %v5749_v61 = vld [vmem:[%s7236_s5 + $0x28] sm:$0xff]   ;;  %5065 = vmatprep.subr.bf16.mxu1 %v5748_v44  ;;  %v5750_v10 = vld [vmem:[%s7236_s5 + $0x60] sm:$0xff]  }
 0x5c7   : > { %3897 = vadd.xlane.f32.xlu1 %v3896_v27  ;;  %3883 = vadd.xlane.f32.xlu0 %v3882_v50  ;;  %v5751_v27 = vld [vmem:[%s7236_s5 + $0x20] sm:$0xff]   ;;  %v5752_v50 = vld [vmem:[%s7236_s5 + $0x58] sm:$0xff]  }
 0x5c9   : > { %5066 = vmatpush3.bf16.msra.mxu1 %v5749_v61 }
 0x5ca   : > { %5067 = vmatprep.subr.bf16.mxu1 %v5750_v10 }
 0x5cd   : > { %5068 = vmatpush3.bf16.msra.mxu1 %v5751_v27 }
 0x5ce   : > { %5069 = vmatprep.subr.bf16.mxu1 %v5752_v50 }
 0x650   : > { %v3898_v13 = vpop.xlane.xlu1 %3897  ;;  %v3884_v62 = vpop.xlane.xlu0 %3883 }
 0x651   : > { %v3899_v46 = vrot.slane %v3898_v13, 4  ;;  %v3885_v63 = vrot.slane %v3884_v62, 4 }
 0x653   : > { %v3900_v18 = vadd.f32 %v3899_v46, %v3898_v13  ;;  %v3886_v29 = vadd.f32 %v3885_v63, %v3884_v62  ;;  %v5753_v13 = vld [vmem:[%s7236_s5 + $0x18] sm:$0xff]   ;;  %v5754_v62 = vld [vmem:[%s7236_s5 + $0x50] sm:$0xff]   ;;  %v5756_v63 = vld [vmem:[%s7236_s5 + $0x48] sm:$0xff]  }
 0x654   : > { %5070 = vmatpush3.bf16.msra.mxu1 %v5753_v13  ;;  %v5755_v46 = vld [vmem:[%s7236_s5 + $0x10] sm:$0xff]  }
 0x655   : > { %v3901_v47 = vrot.slane %v3900_v18, 2  ;;  %v3887_v0 = vrot.slane %v3886_v29, 2  ;;  %5071 = vmatprep.subr.bf16.mxu1 %v5754_v62 }
 0x657   : > { %v3888_v26 = vadd.f32 %v3887_v0, %v3886_v29  ;;  %v3902_v4 = vadd.f32 %v3901_v47, %v3900_v18  ;;  %v5757_v18 = vld [vmem:[%s7236_s5 + $0x8] sm:$0xff]   ;;  %v5758_v29 = vld [vmem:[%s7236_s5 + $0x40] sm:$0xff]  }
 0x658   : > { %5072 = vmatpush3.bf16.msra.mxu1 %v5755_v46  ;;  %v5759_v47 = vld [vmem:[%s7236_s5] sm:$0xff]  }
 0x659   : > { %v3889_v40 = vrot.slane %v3888_v26, 1  ;;  %v3903_v36 = vrot.slane %v3902_v4, 1  ;;  %5073 = vmatprep.subr.bf16.mxu1 %v5756_v63 }
 0x65b   : > { %v3890_v34 = vadd.f32 %v3889_v40, %v3888_v26  ;;  %v3904_v60 = vadd.f32 %v3903_v36, %v3902_v4 }
 0x65c   : > { %5074 = vmatpush3.bf16.msra.mxu1 %v5757_v18 }
 0x65d   : > { %5565 = vpush %v3890_v34  ;;  %5075 = vmatprep.subr.bf16.mxu1 %v5758_v29 }
 0x65e   : > { %5567 = vpush %v3904_v60 }
 0x660   : > { %5076 = vmatpush3.bf16.msra.mxu1 %v5759_v47 }
 0x68e   : > { %s5566_s12 = spop %5565 }
 0x68f   : > { %v3892_v25 = vstv %s5566_s12  ;;  %s5568_s23 = spop %5567 }
 0x690   : > { %v3893_v6 = vmul.f32 0.00390625, %v3892_v25  ;;  %v3906_v30 = vstv %s5568_s23 }
 0x691   : > { %v3907_v20 = vmul.f32 0.00390625, %v3906_v30 }
 0x692   : > { %v3894_v32 = vsel %vm2177_vm8, %v3893_v6, 0.0 }
 0x693   : > { %v3908_v42 = vsel %vm6566_vm7, %v3907_v20, %v3894_v32 }
 0x694   : > { %v7093_v23 = vsub.f32 %v7073_v45, %v3908_v42  ;;  %v7096_v43 = vsub.f32 %v7075_v1, %v3908_v42  ;;  %v7098_v17 = vsub.f32 %v3860_v3, %v3908_v42  ;;  %v7100_v9 = vsub.f32 %v3861_v51, %v3908_v42 }
 0x695   : > { %v7106_v21 = vsub.f32 %v3862_v31, %v3908_v42  ;;  %v7110_v38 = vsub.f32 %v3863_v54, %v3908_v42  ;;  %v7114_v59 = vsub.f32 %v3864_v35, %v3908_v42  ;;  %v7118_v5 = vsub.f32 %v3865_v12, %v3908_v42 }
 0x696   : > { %v3917_v48 = vmul.f32 %v7093_v23, %v7093_v23  ;;  %v3918_v7 = vmul.f32 %v7096_v43, %v7096_v43  ;;  %v3919_v55 = vmul.f32 %v7098_v17, %v7098_v17  ;;  %v3920_v1 = vmul.f32 %v7100_v9, %v7100_v9 }
 0x697   : > { %v3921_v33 = vmul.f32 %v7106_v21, %v7106_v21  ;;  %v3922_v51 = vmul.f32 %v7110_v38, %v7110_v38  ;;  %v3923_v11 = vmul.f32 %v7114_v59, %v7114_v59  ;;  %v3924_v14 = vmul.f32 %v7118_v5, %v7118_v5 }
 0x698   : > { %v3925_v45 = vadd.f32 %v3918_v7, %v3917_v48 }
 0x69a   : > { %v3926_v3 = vadd.f32 %v3925_v45, %v3919_v55 }
 0x69c   : > { %v3927_v53 = vadd.f32 %v3926_v3, %v3920_v1 }
 0x69e   : > { %v3928_v56 = vadd.f32 %v3927_v53, %v3921_v33 }
 0x6a0   : > { %v3929_v22 = vadd.f32 %v3928_v56, %v3922_v51  ;;  %v4771_v56 = vld [vmem:[%s7237_s6 + $0x5] ss:$0 sm:$0xff] }
 0x6a2   : > { %v3930_v31 = vadd.f32 %v3929_v22, %v3923_v11 }
 0x6a4   : > { %v3931_v58 = vadd.f32 %v3930_v31, %v3924_v14 }
 0x6a6   : > { %v3932_v8 = vrot.slane %v3931_v58, 4 }
 0x6a8   : > { %v3933_v39 = vadd.f32 %v3932_v8, %v3931_v58 }
 0x6aa   : > { %v3934_v28 = vrot.slane %v3933_v39, 2 }
 0x6ac   : > { %v3935_v54 = vadd.f32 %v3934_v28, %v3933_v39 }
 0x6ae   : > { %v3936_v35 = vrot.slane %v3935_v54, 1 }
 0x6b0   : > { %v3937_v41 = vadd.f32 %v3936_v35, %v3935_v54 }
 0x6b2   : > { %v3952_v12 = vsel %vm6566_vm7, %v3937_v41, 0.0  ;;  %v3938_v52 = vsel %vm2177_vm8, %v3937_v41, 0.0 }
 0x6b3   : > { %v3953_v15 = vsel %vm2180_vm9, %v3952_v12, 0.0  ;;  %v3939_v2 = vsel %vm2180_vm9, %v3938_v52, 0.0 }
 0x6b4   : > { %3954 = vadd.xlane.f32.xlu1 %v3953_v15  ;;  %3940 = vadd.xlane.f32.xlu0 %v3939_v2 }
 0x73d   : > { %v3955_v0 = vpop.xlane.xlu1 %3954  ;;  %v3941_v26 = vpop.xlane.xlu0 %3940 }
 0x73e   : > { %v3956_v4 = vrot.slane %v3955_v0, 4  ;;  %v3942_v40 = vrot.slane %v3941_v26, 4 }
 0x740   : > { %v3957_v36 = vadd.f32 %v3956_v4, %v3955_v0  ;;  %v3943_v34 = vadd.f32 %v3942_v40, %v3941_v26 }
 0x742   : > { %v3958_v60 = vrot.slane %v3957_v36, 2  ;;  %v3944_v25 = vrot.slane %v3943_v34, 2 }
 0x744   : > { %v3959_v6 = vadd.f32 %v3958_v60, %v3957_v36  ;;  %v3945_v30 = vadd.f32 %v3944_v25, %v3943_v34 }
 0x746   : > { %v3946_v20 = vrot.slane %v3945_v30, 1  ;;  %v3960_v32 = vrot.slane %v3959_v6, 1 }
 0x748   : > { %v3947_v42 = vadd.f32 %v3946_v20, %v3945_v30  ;;  %v3961_v48 = vadd.f32 %v3960_v32, %v3959_v6 }
 0x74a   : > { %5569 = vpush %v3947_v42 }
 0x74b   : > { %5571 = vpush %v3961_v48 }
 0x77b   : > { %s5570_s17 = spop %5569 }
 0x77c   : > { %v3949_v7 = vstv %s5570_s17  ;;  %s5572_s18 = spop %5571 }
 0x77d   : > { %v3950_v55 = vmul.f32 0.00390625, %v3949_v7  ;;  %v3963_v45 = vstv %s5572_s18 }
 0x77e   : > { %v3964_v1 = vmul.f32 0.00390625, %v3963_v45 }
 0x77f   : > { %v3951_v3 = vsel %vm2177_vm8, %v3950_v55, 0.0 }
 0x780   : > { %v3965_v33 = vsel %vm6566_vm7, %v3964_v1, %v3951_v3 }
 0x781   : > { %v3966_v53 = vadd.f32 1e-05, %v3965_v33 }
 0x783   : > { %5794 = vrsqrt.f32 %v3966_v53 }
 0x790   : > { %v5795_v51 = vpop.eup %5794 }
 0x791   : > { %v3968_v11 = vmul.f32 %v5795_v51, %v7093_v23  ;;  %v3969_v22 = vmul.f32 %v5795_v51, %v7096_v43  ;;  %v3970_v14 = vmul.f32 %v5795_v51, %v7098_v17  ;;  %v3971_v31 = vmul.f32 %v5795_v51, %v7100_v9 }
 0x792   : > { %v3972_v16 = vmul.f32 %v5795_v51, %v7106_v21  ;;  %v3973_v58 = vmul.f32 %v5795_v51, %v7110_v38  ;;  %v3974_v8 = vmul.f32 %v5795_v51, %v7114_v59  ;;  %v3975_v39 = vmul.f32 %v5795_v51, %v7118_v5 }
 0x793   : > { %v3980_v28 = vmul.f32 %v4771_v56, %v3968_v11  ;;  %v3981_v23 = vmul.f32 %v4771_v56, %v3969_v22  ;;  %v3982_v54 = vmul.f32 %v4771_v56, %v3970_v14  ;;  %v3983_v43 = vmul.f32 %v4771_v56, %v3971_v31 }
 0x794   : > { %v3984_v35 = vmul.f32 %v4771_v56, %v3972_v16  ;;  %v3985_v17 = vmul.f32 %v4771_v56, %v3973_v58  ;;  %v3986_v41 = vmul.f32 %v4771_v56, %v3974_v8  ;;  %v3987_v38 = vmul.f32 %v4771_v56, %v3975_v39  ;;  %v7397_v16 = vld [vmem:[#allocation11_spill] sm:$0xff] }
 0x795   : > { %v3992_v9 = vadd.f32 %v4772_v19, %v3980_v28  ;;  %v3993_v12 = vadd.f32 %v4772_v19, %v3981_v23  ;;  %v3994_v52 = vadd.f32 %v4772_v19, %v3982_v54  ;;  %v3995_v15 = vadd.f32 %v4772_v19, %v3983_v43  ;;  %v7398_v54 = vld [vmem:[#allocation9_spill] sm:$0xff] }
 0x796   : > { %v7198_v2 = vadd.f32 %v4772_v19, %v3984_v35  ;;  %v7200_v21 = vadd.f32 %v4772_v19, %v3985_v17  ;;  %v7204_v27 = vadd.f32 %v4772_v19, %v3986_v41  ;;  %v3999_v13 = vadd.f32 %v4772_v19, %v3987_v38  ;;  %v7399_v41 = vld [vmem:[#allocation16_spill] sm:$0xff] }
 0x797   : > { %v4000_v49 = vsub.f32 0.0, %v3992_v9  ;;  %v4001_v59 = vsub.f32 0.0, %v3993_v12  ;;  %v4002_v57 = vsub.f32 0.0, %v3994_v52  ;;  %v4003_v5 = vsub.f32 0.0, %v3995_v15 }
 0x798   : > { %v4004_v24 = vsub.f32 0.0, %v7198_v2  ;;  %v4005_v37 = vsub.f32 0.0, %v7200_v21  ;;  %v4006_v63 = vsub.f32 0.0, %v7204_v27  ;;  %v4007_v18 = vsub.f32 0.0, %v3999_v13 }
 0x799   : > { %v4008_v44 = vmul.f32 1.442695, %v4000_v49  ;;  %v4010_v61 = vmul.f32 1.442695, %v4001_v59  ;;  %v4012_v10 = vmul.f32 1.442695, %v4002_v57 }
 0x79a   : > { %v4014_v50 = vmul.f32 1.442695, %v4003_v5  ;;  %v4016_v62 = vmul.f32 1.442695, %v4004_v24  ;;  %v4018_v46 = vmul.f32 1.442695, %v4005_v37 }
 0x79b   : > { %5796 = vpow2.f32 %v4008_v44  ;;  %v4020_v29 = vmul.f32 1.442695, %v4006_v63  ;;  %v4022_v47 = vmul.f32 1.442695, %v4007_v18 }
 0x79c   : > { %5798 = vpow2.f32 %v4010_v61 }
 0x79d   : > { %5800 = vpow2.f32 %v4012_v10 }
 0x79e   : > { %5802 = vpow2.f32 %v4014_v50 }
 0x79f   : > { %5804 = vpow2.f32 %v4016_v62 }
 0x7a0   : > { %5806 = vpow2.f32 %v4018_v46 }
 0x7a1   : > { %5808 = vpow2.f32 %v4020_v29 }
 0x7a2   : > { %5810 = vpow2.f32 %v4022_v47 }
 0x7a8   : > { %v5797_v0 = vpop.eup %5796 }
 0x7a9   : > { %v5799_v26 = vpop.eup %5798  ;;  %v4024_v4 = vadd.f32 1.0, %v5797_v0 }
 0x7aa   : > { %v5801_v40 = vpop.eup %5800  ;;  %v4025_v36 = vadd.f32 1.0, %v5799_v26 }
 0x7ab   : > { %v5803_v34 = vpop.eup %5802  ;;  %5812 = vrcp.f32 %v4024_v4  ;;  %v4026_v60 = vadd.f32 1.0, %v5801_v40 }
 0x7ac   : > { %v5805_v25 = vpop.eup %5804  ;;  %5814 = vrcp.f32 %v4025_v36  ;;  %v4027_v6 = vadd.f32 1.0, %v5803_v34 }
 0x7ad   : > { %v5807_v30 = vpop.eup %5806  ;;  %5816 = vrcp.f32 %v4026_v60  ;;  %v4028_v20 = vadd.f32 1.0, %v5805_v25 }
 0x7ae   : > { %5818 = vrcp.f32 %v4027_v6  ;;  %v4029_v32 = vadd.f32 1.0, %v5807_v30  ;;  %v5809_v42 = vpop.eup %5808 }
 0x7af   : > { %5820 = vrcp.f32 %v4028_v20  ;;  %v5811_v48 = vpop.eup %5810  ;;  %v4030_v7 = vadd.f32 1.0, %v5809_v42 }
 0x7b0   : > { %5822 = vrcp.f32 %v4029_v32  ;;  %v4031_v55 = vadd.f32 1.0, %v5811_v48 }
 0x7b1   : > { %5824 = vrcp.f32 %v4030_v7 }
 0x7b2   : > { %5826 = vrcp.f32 %v4031_v55 }
 0x7b8   : > { %v5813_v45 = vpop.eup %5812 }
 0x7b9   : > { %v5815_v1 = vpop.eup %5814  ;;  %v4040_v3 = vmul.f32 %v5813_v45, %v3992_v9  ;;  %v7400_v9 = vld [vmem:[#allocation13_spill] sm:$0xff] }
 0x7ba   : > { %v5817_v33 = vpop.eup %5816  ;;  %v4041_v53 = vmul.f32 %v5815_v1, %v3993_v12 }
 0x7bb   : > { %v5819_v51 = vpop.eup %5818  ;;  %v4042_v56 = vmul.f32 %v5817_v33, %v3994_v52 }
 0x7bc   : > { %v4048_v11 = vpack.c.bf16 %v4041_v53, %v4040_v3  ;;  %v4043_v22 = vmul.f32 %v5819_v51, %v3995_v15  ;;  %v5821_v14 = vpop.eup %5820 }
 0x7bd   : > { %v5823_v19 = vpop.eup %5822  ;;  %v4044_v58 = vmul.f32 %v5821_v14, %v7198_v2 }
 0x7be   : > { %4217 = vmatprep.mubr.bf16.mxu1 %v4048_v11  ;;  %v4049_v31 = vpack.c.bf16 %v4043_v22, %v4042_v56  ;;  %v4045_v8 = vmul.f32 %v5823_v19, %v7200_v21  ;;  %v5825_v39 = vpop.eup %5824  ;;  %v4773_v21 = vld [vmem:[%s7237_s6 + $0x7] ss:$0 sm:$0xff] }
 0x7bf   : > { %4218 = vmatmul.mubr.bf16.vlgmr.msra.gmra.mxu1 %v7397_v16  ;;  %v5827_v23 = vpop.eup %5826  ;;  %v4046_v43 = vmul.f32 %v5825_v39, %v7204_v27 }
 0x7c0   : > { %4225 = vmatprep.mubr.bf16.mxu1 %v4049_v31  ;;  %v4050_v28 = vpack.c.bf16 %v4045_v8, %v4044_v58  ;;  %v4047_v35 = vmul.f32 %v5827_v23, %v3999_v13 }
 0x7c2   : > { %v4051_v17 = vpack.c.bf16 %v4047_v35, %v4046_v43 }
 0x7c7   : > { %4226 = vmatmul.mubr.bf16.gmra.mxu1 %v7398_v54 }
 0x7c8   : > { %4233 = vmatprep.mubr.bf16.mxu1 %v4050_v28 }
 0x7cf   : > { %4234 = vmatmul.mubr.bf16.gmra.mxu1 %v7399_v41 }
 0x7d0   : > { %4241 = vmatprep.mubr.bf16.mxu1 %v4051_v17 }
 0x7d7   : > { %4242 = vmatmul.mubr.bf16.gmra.mxu1 %v7400_v9 }
 0x87f   : > { %v5077_v12 = vpop.f32.mrf.mxu1 }
 0x881   : > { %v5078_v52 = vpop.f32.mrf.mxu1 }
 0x882   : > { %v5079_v2 = vadd.f32 %v5078_v52, %v5077_v12 }
 0x883   : > { %v5080_v15 = vpop.f32.mrf.mxu1 }
 0x884   : > { %v4220_v57 = vadd.f32 %v5079_v2, %v4773_v21 }
 0x885   : > { %v5081_v38 = vpop.f32.mrf.mxu1 }
 0x886   : > { %v5082_v49 = vadd.f32 %v5081_v38, %v5080_v15 }
 0x887   : > { %v5083_v59 = vpop.f32.mrf.mxu1 }
 0x888   : > { %v4223_v5 = vadd.f32 %v5082_v49, %v4773_v21 }
 0x889   : > { %v5084_v24 = vpop.f32.mrf.mxu1 }
 0x88a   : > { %v4813_v37 = vpack.c.bf16 %v4223_v5, %v4220_v57  ;;  %v5085_v61 = vadd.f32 %v5084_v24, %v5083_v59 }
 0x88b   : > { %v5086_v44 = vpop.f32.mrf.mxu1 }
 0x88c   : > { %4814 = vst [vmem:[%s7222_s28] sm:$0xff] %v4813_v37   ;;  %v4228_v13 = vadd.f32 %v5085_v61, %v4773_v21 }
 0x88d   : > { %v5087_v10 = vpop.f32.mrf.mxu1 }
 0x88e   : > { %v5088_v27 = vadd.f32 %v5087_v10, %v5086_v44 }
 0x88f   : > { %v5089_v50 = vpop.f32.mrf.mxu1 }
 0x890   : > { %v4231_v62 = vadd.f32 %v5088_v27, %v4773_v21 }
 0x891   : > { %v5090_v46 = vpop.f32.mrf.mxu1 }
 0x892   : > { %v4818_v63 = vpack.c.bf16 %v4231_v62, %v4228_v13  ;;  %v5091_v29 = vadd.f32 %v5090_v46, %v5089_v50 }
 0x893   : > { %v5092_v18 = vpop.f32.mrf.mxu1 }
 0x894   : > { %4830 = vst [vmem:[%s7222_s28 + $0x8] sm:$0xff] %v4818_v63   ;;  %v4236_v4 = vadd.f32 %v5091_v29, %v4773_v21 }
 0x895   : > { %v5093_v47 = vpop.f32.mrf.mxu1 }
 0x896   : > { %v5094_v0 = vadd.f32 %v5093_v47, %v5092_v18 }
 0x897   : > { %v5095_v26 = vpop.f32.mrf.mxu1 }
 0x898   : > { %v4239_v40 = vadd.f32 %v5094_v0, %v4773_v21 }
 0x899   : > { %v5096_v36 = vpop.f32.mrf.mxu1 }
 0x89a   : > { %v4823_v34 = vpack.c.bf16 %v4239_v40, %v4236_v4  ;;  %v5097_v25 = vadd.f32 %v5096_v36, %v5095_v26 }
 0x89b   : > { %v5098_v60 = vpop.f32.mrf.mxu1 }
 0x89c   : > { %4831 = vst [vmem:[%s7222_s28 + $0x10] sm:$0xff] %v4823_v34   ;;  %v4244_v20 = vadd.f32 %v5097_v25, %v4773_v21 }
 0x89d   : > { %v5099_v6 = vpop.f32.mrf.mxu1 }
 0x89e   : > { %v5100_v30 = vadd.f32 %v5099_v6, %v5098_v60 }
 0x8a0   : > { %v4247_v32 = vadd.f32 %v5100_v30, %v4773_v21 }
 0x8a2   : > { %v4828_v42 = vpack.c.bf16 %v4247_v32, %v4244_v20 }
 0x8a4   : > { %4832 = vst [vmem:[%s7222_s28 + $0x18] sm:$0xff] %v4828_v42  }
 0x8a5 PF: > { %s17_s24 = sadd.s32 1, %s5834_s24  }
 0x8a6   : > { %p14_p4 = scmp.ge.s32.totalorder %s17_s24, 4  }
 0x8a8   :  { %16 = sbr.rel (!%p14_p4) target bundleno = 1 (0x1), region = 94 }

</bundles_post_ra>
